<compile_context>
chip_gen: v7x
topology: tpu7x:2x2x1
jax: 0.10.0
libtpu: 0.0.40
codegen_flags: <defaults>
</compile_context>

<pallas_src>
import functools
import math

import jax
import jax.numpy as jnp
from jax.experimental import pallas as pl
from jax.experimental.pallas import tpu as pltpu


# ----------------------------- config (small synthetic BERT) -----------------
CFG = dict(
    vocab_size=512,
    hidden=128,
    num_layers=2,
    num_heads=4,
    head_dim=32,          # num_heads * head_dim == hidden
    intermediate=256,
    max_pos=64,
    type_vocab=2,
    ln_eps=1e-12,
)


# ----------------------------- fused Pallas kernel ----------------------------
def _bert_fused_kernel(
    # inputs (7 consolidated refs)
    emb_ref,        # (B*S, H)        embeddings (pre-LN)
    bias_ref,       # (B*S, B*S)      additive attention bias (mask + block-diag batch)
    wbig_ref,       # (L, H, 3H+H+I)  [Wqkv | Wo | W1]
    w2_ref,         # (L, I, H)
    lvec_ref,       # (L, 8, 3H)      per-layer row vectors (see pack_params)
    gmat_ref,       # (H, 2H)         [pool_w | cls_w(padded to 128 lanes)]
    gvec_ref,       # (4, H)          [emb_ln_g, emb_ln_b, pool_b, cls_b(padded)]
    # output
    prob_ref,       # (out_rows, 128) sigmoid probs; only [:batch, 0] is real
    *, num_layers, num_heads, head_dim, hidden, inter, seq, batch, out_rows,
    eps, scale):

    H = hidden
    W3 = 3 * H

    def layernorm(x, g, b):
        # var = E[x^2] - E[x]^2 -> the two XLU reductions are independent and pipeline.
        mu = jnp.mean(x, axis=-1, keepdims=True)
        ms = jnp.mean(x * x, axis=-1, keepdims=True)
        return (x - mu) * jax.lax.rsqrt(ms - mu * mu + eps) * g + b

    # combined additive bias over flattened tokens: HF-style key mask + block-diagonal
    # batch mask (cross-batch entries at -1e9 -> exp underflows to exactly 0 in f32).
    bias = bias_ref[...]                                           # (B*S, B*S)

    # --- embeddings LayerNorm (no residual) ---
    h = layernorm(emb_ref[...], gvec_ref[0:1, :], gvec_ref[1:2, :])   # (B*S, H)

    # --- transformer encoder layers (statically unrolled, weights VMEM-resident) ---
    for l in range(num_layers):
        wqkv = wbig_ref[l, :, 0:W3]                                # (H, 3H)
        wo = wbig_ref[l, :, W3:W3 + H]                             # (H, H)
        w1 = wbig_ref[l, :, W3 + H:W3 + H + inter]                 # (H, I)

        # fused QKV projection, kept as a value (no scratch round-trip)
        qkv = (jnp.dot(h, wqkv, preferred_element_type=jnp.float32)
               + lvec_ref[l, 0:1, :])                              # (B*S, 3H)

        # attention: all batches & heads in this invocation; head slices are vreg slices
        heads = []
        for hh in range(num_heads):
            lo = hh * head_dim
            q_h = qkv[:, lo:lo + head_dim]                         # (B*S, dh)
            k_h = qkv[:, H + lo:H + lo + head_dim]                 # (B*S, dh)
            v_h = qkv[:, 2 * H + lo:2 * H + lo + head_dim]         # (B*S, dh)
            # contract on last axes directly (no K transpose materialized)
            s = jax.lax.dot_general(
                q_h, k_h, (((1,), (1,)), ((), ())),
                preferred_element_type=jnp.float32) * scale + bias  # (B*S, B*S)
            m = jnp.max(s, axis=-1, keepdims=True)
            p = jnp.exp(s - m)
            p = p * pl.reciprocal(jnp.sum(p, axis=-1, keepdims=True), approx=True)
            heads.append(jnp.dot(p, v_h, preferred_element_type=jnp.float32))
        # merge head outputs back onto the 128-lane hidden axis as one value
        ctx = jnp.concatenate(heads, axis=1)                       # (B*S, H)

        attn = (jnp.dot(ctx, wo, preferred_element_type=jnp.float32)
                + lvec_ref[l, 1:2, 0:H])
        h = layernorm(attn + h, lvec_ref[l, 2:3, 0:H], lvec_ref[l, 3:4, 0:H])

        ff = (jnp.dot(h, w1, preferred_element_type=jnp.float32)
              + lvec_ref[l, 4:5, 0:inter])
        # TODO(synk): HF BERT uses erf-GELU; tanh approximation kept (numerically close).
        ff = 0.5 * ff * (1.0 + jnp.tanh(0.7978845608028654 *
                                        (ff + 0.044715 * ff * ff * ff)))
        ff = (jnp.dot(ff, w2_ref[l], preferred_element_type=jnp.float32)
              + lvec_ref[l, 5:6, 0:H])
        h = layernorm(ff + h, lvec_ref[l, 6:7, 0:H], lvec_ref[l, 7:8, 0:H])

    # --- pooler (tanh on [CLS]) + classifier (sigmoid), batched over B ---
    # gather [CLS] rows (sublane-aligned at multiples of seq) and pad to a full 8-row tile
    cls_rows = [h[b * seq:b * seq + 1, :] for b in range(batch)]
    cls_rows.append(jnp.zeros((out_rows - batch, H), jnp.float32))
    cls8 = jnp.concatenate(cls_rows, axis=0)                       # (out_rows, H)
    pooled = jnp.tanh(
        jnp.dot(cls8, gmat_ref[:, 0:H], preferred_element_type=jnp.float32)
        + gvec_ref[2:3, :])
    logit = (jnp.dot(pooled, gmat_ref[:, H:2 * H], preferred_element_type=jnp.float32)
             + gvec_ref[3:4, :])                                   # (out_rows, 128) padded
    # single full-tile lane-dense store
    prob_ref[...] = 1.0 / (1.0 + jnp.exp(-logit))


# ----------------------------- parameter init --------------------------------
def init_params(key, cfg):
    H, I = cfg["hidden"], cfg["intermediate"]

    def normal(k, shape):
        return (0.02 * jax.random.normal(k, shape)).astype(jnp.float32)

    keys = jax.random.split(key, 8)
    params = {
        "word_emb": normal(keys[0], (cfg["vocab_size"], H)),
        "pos_emb": normal(keys[1], (cfg["max_pos"], H)),
        "type_emb": normal(keys[2], (cfg["type_vocab"], H)),
        "emb_ln_g": jnp.ones((H,), jnp.float32),
        "emb_ln_b": jnp.zeros((H,), jnp.float32),
        "pool_w": normal(keys[3], (H, H)),
        "pool_b": jnp.zeros((H,), jnp.float32),
        "out_w": normal(keys[4], (H, 1)),
        "out_b": jnp.zeros((1,), jnp.float32),
        "layers": [],
    }
    layer_key = keys[5]
    for _ in range(cfg["num_layers"]):
        layer_key, *lk = jax.random.split(layer_key, 8)
        params["layers"].append({
            "wq": normal(lk[0], (H, H)), "bq": jnp.zeros((H,), jnp.float32),
            "wk": normal(lk[1], (H, H)), "bk": jnp.zeros((H,), jnp.float32),
            "wv": normal(lk[2], (H, H)), "bv": jnp.zeros((H,), jnp.float32),
            "wo": normal(lk[3], (H, H)), "bo": jnp.zeros((H,), jnp.float32),
            "ln1_g": jnp.ones((H,), jnp.float32), "ln1_b": jnp.zeros((H,), jnp.float32),
            "w1": normal(lk[4], (H, I)), "b1": jnp.zeros((I,), jnp.float32),
            "w2": normal(lk[5], (I, H)), "b2": jnp.zeros((H,), jnp.float32),
            "ln2_g": jnp.ones((H,), jnp.float32), "ln2_b": jnp.zeros((H,), jnp.float32),
        })
    return params


def pack_params(params, cfg):
    """Consolidate weights into lane-dense slabs: 7 kernel inputs total.

      wbig (L, H, 3H+H+I) = [Wqkv | Wo | W1]
      w2   (L, I, H)
      lvec (L, 8, 3H)     rows: bqkv, bo, ln1_g, ln1_b, b1, b2, ln2_g, ln2_b (zero-padded)
      gmat (H, 2H)        [pool_w | cls_w padded to 128 lanes (col 0 real)]
      gvec (4, H)         rows: emb_ln_g, emb_ln_b, pool_b, cls_b (lane 0 real)
    """
    H = cfg["hidden"]
    W3 = 3 * H
    lyrs = params["layers"]

    def row(vec, width=W3):
        return jnp.zeros((width,), jnp.float32).at[:vec.shape[0]].set(vec)

    lvec, wbig, w2 = [], [], []
    for l in lyrs:
        lvec.append(jnp.stack([
            jnp.concatenate([l["bq"], l["bk"], l["bv"]]),   # row 0: bqkv (3H)
            row(l["bo"]),                                    # row 1
            row(l["ln1_g"]),                                 # row 2
            row(l["ln1_b"]),                                 # row 3
            row(l["b1"]),                                    # row 4 (I, padded)
            row(l["b2"]),                                    # row 5
            row(l["ln2_g"]),                                 # row 6
            row(l["ln2_b"]),                                 # row 7
        ]))
        wqkv = jnp.concatenate([l["wq"], l["wk"], l["wv"]], axis=1)     # (H, 3H)
        wbig.append(jnp.concatenate([wqkv, l["wo"], l["w1"]], axis=1))  # (H, 3H+H+I)
        w2.append(l["w2"])

    cls_w_pad = jnp.zeros((H, H), jnp.float32).at[:, 0:1].set(params["out_w"])
    gmat = jnp.concatenate([params["pool_w"], cls_w_pad], axis=1)       # (H, 2H)
    gvec = jnp.stack([
        params["emb_ln_g"],
        params["emb_ln_b"],
        params["pool_b"],
        jnp.zeros((H,), jnp.float32).at[0].set(params["out_b"][0]),
    ])                                                                  # (4, H)

    return {
        "word_emb": params["word_emb"],
        "pos_emb": params["pos_emb"],
        "type_emb": params["type_emb"],
        "wbig": jnp.stack(wbig),
        "w2": jnp.stack(w2),
        "lvec": jnp.stack(lvec),
        "gmat": gmat,
        "gvec": gvec,
    }


# ----------------------------- forward pass -----------------------------------
def bert_binary_classifier_forward(packed, input_ids, attention_mask, cfg=CFG):
    B, S = input_ids.shape
    H = cfg["hidden"]

    # --- embeddings (gather is glue) ---
    we = jnp.take(packed["word_emb"], input_ids, axis=0)            # (B, S, H)
    pe = packed["pos_emb"][:S][None, :, :]                          # (1, S, H)
    te = packed["type_emb"][0][None, None, :]                       # token_type_ids = 0
    emb = (we + pe + te).reshape(B * S, H).astype(jnp.float32)

    # --- combined additive attention bias over flattened tokens (B*S, B*S) ---
    mask_f = attention_mask.astype(jnp.float32)
    key_bias = (1.0 - mask_f) * -10000.0                            # (B, S), HF-BERT style
    same = jnp.arange(B)[:, None] == jnp.arange(B)[None, :]         # (B, B)
    bias = jnp.where(same[:, None, :, None], key_bias[None, None, :, :], -1e9)
    bias = jnp.broadcast_to(bias, (B, S, B, S)).reshape(B * S, B * S).astype(jnp.float32)

    out_rows = B + (-B) % 8                                         # full 8-sublane tile

    args = (emb, bias, packed["wbig"], packed["w2"], packed["lvec"],
            packed["gmat"], packed["gvec"])

    def full_spec(x):
        nd = x.ndim
        return pl.BlockSpec(x.shape, lambda i, _nd=nd: (0,) * _nd)

    kernel = functools.partial(
        _bert_fused_kernel,
        num_layers=cfg["num_layers"], num_heads=cfg["num_heads"],
        head_dim=cfg["head_dim"], hidden=H, inter=cfg["intermediate"],
        seq=S, batch=B, out_rows=out_rows, eps=cfg["ln_eps"],
        scale=1.0 / math.sqrt(cfg["head_dim"]))

    # TODO(synk): nn.Dropout(p=0.3) is inference-mode identity (no training-time RNG).
    prob_pad = pl.pallas_call(
        kernel,
        out_shape=jax.ShapeDtypeStruct((out_rows, 128), jnp.float32),
        grid=(1,),
        in_specs=[full_spec(a) for a in args],
        out_specs=pl.BlockSpec((out_rows, 128), lambda i: (0, 0)),
        compiler_params=pltpu.CompilerParams(dimension_semantics=("arbitrary",)),
    )(*args)

    return prob_pad[:B, :1]                                          # (B, 1)


# ----------------------------- pure-JAX reference ------------------------------
def _reference_forward(params, input_ids, attention_mask, cfg=CFG):
    B, S = input_ids.shape
    H, nh, dh = cfg["hidden"], cfg["num_heads"], cfg["head_dim"]
    eps = cfg["ln_eps"]

    def ln(x, g, b):
        mu = jnp.mean(x, -1, keepdims=True)
        var = jnp.mean((x - mu) ** 2, -1, keepdims=True)
        return (x - mu) * jax.lax.rsqrt(var + eps) * g + b

    we = jnp.take(params["word_emb"], input_ids, axis=0)
    pe = params["pos_emb"][:S][None]
    te = params["type_emb"][0][None, None]
    h = ln((we + pe + te).astype(jnp.float32),
           params["emb_ln_g"], params["emb_ln_b"])                  # (B, S, H)
    bias = ((1.0 - attention_mask.astype(jnp.float32)) * -10000.0)[:, None, None, :]

    def split(x):
        return x.reshape(B, S, nh, dh).transpose(0, 2, 1, 3)

    for lyr in params["layers"]:
        q = h @ lyr["wq"] + lyr["bq"]
        k = h @ lyr["wk"] + lyr["bk"]
        v = h @ lyr["wv"] + lyr["bv"]
        s = jnp.einsum("bhqd,bhkd->bhqk", split(q), split(k)) / math.sqrt(dh) + bias
        p = jax.nn.softmax(s, axis=-1)
        ctx = jnp.einsum("bhqk,bhkd->bhqd", p, split(v)).transpose(0, 2, 1, 3)
        ctx = ctx.reshape(B, S, H)
        h = ln(ctx @ lyr["wo"] + lyr["bo"] + h, lyr["ln1_g"], lyr["ln1_b"])
        ff = h @ lyr["w1"] + lyr["b1"]
        ff = 0.5 * ff * (1.0 + jnp.tanh(0.7978845608028654 * (ff + 0.044715 * ff ** 3)))
        h = ln(ff @ lyr["w2"] + lyr["b2"] + h, lyr["ln2_g"], lyr["ln2_b"])

    cls = h[:, 0, :]
    pooled = jnp.tanh(cls @ params["pool_w"] + params["pool_b"])
    logit = pooled @ params["out_w"] + params["out_b"]
    return jax.nn.sigmoid(logit)


# ----------------------------- main -------------------------------------------
if __name__ == "__main__":
    key = jax.random.PRNGKey(0)
    k_params, k_ids = jax.random.split(key)

    B, S = 2, 8
    params = init_params(k_params, CFG)
    packed = pack_params(params, CFG)
    input_ids = jax.random.randint(k_ids, (B, S), 0, CFG["vocab_size"], dtype=jnp.int32)
    attention_mask = jnp.array(
        [[1, 1, 1, 1, 1, 1, 1, 1],
         [1, 1, 1, 1, 1, 0, 0, 0]], dtype=jnp.int32)

    prob = bert_binary_classifier_forward(packed, input_ids, attention_mask)
    prob = jax.block_until_ready(prob)

    ref = _reference_forward(params, input_ids, attention_mask)

    assert prob.shape == (B, 1)
    assert bool(jnp.all((prob >= 0.0) & (prob <= 1.0)))
    assert bool(jnp.allclose(prob, ref, atol=5e-3))
    print("KERNEL_OK")
</pallas_src>

<mosaic_0001>
module attributes {stable_mosaic.version = 11 : i64} {
  func.func @_bert_fused_kernel(%arg0: i32, %arg1: memref<16x128xf32, #tpu.memory_space<vmem>>, %arg2: memref<16x16xf32, #tpu.memory_space<vmem>>, %arg3: memref<2x128x768xf32, #tpu.memory_space<vmem>>, %arg4: memref<2x256x128xf32, #tpu.memory_space<vmem>>, %arg5: memref<2x8x384xf32, #tpu.memory_space<vmem>>, %arg6: memref<128x256xf32, #tpu.memory_space<vmem>>, %arg7: memref<4x128xf32, #tpu.memory_space<vmem>>, %arg8: memref<8x128xf32, #tpu.memory_space<vmem>>) attributes {dimension_semantics = [#tpu.dimension_semantics<arbitrary>], iteration_bounds = array<i64: 1>, scalar_prefetch = 0 : i64, scratch_operands = 0 : i64, tpu.core_type = #tpu.core_type<tc>, window_params = [{pipeline_mode = #tpu.pipeline_mode<synchronous>, transform_indices = @transform_0, window_bounds = array<i64: 16, 128>}, {pipeline_mode = #tpu.pipeline_mode<synchronous>, transform_indices = @transform_1, window_bounds = array<i64: 16, 16>}, {pipeline_mode = #tpu.pipeline_mode<synchronous>, transform_indices = @transform_2, window_bounds = array<i64: 2, 128, 768>}, {pipeline_mode = #tpu.pipeline_mode<synchronous>, transform_indices = @transform_3, window_bounds = array<i64: 2, 256, 128>}, {pipeline_mode = #tpu.pipeline_mode<synchronous>, transform_indices = @transform_4, window_bounds = array<i64: 2, 8, 384>}, {pipeline_mode = #tpu.pipeline_mode<synchronous>, transform_indices = @transform_5, window_bounds = array<i64: 128, 256>}, {pipeline_mode = #tpu.pipeline_mode<synchronous>, transform_indices = @transform_6, window_bounds = array<i64: 4, 128>}, {pipeline_mode = #tpu.pipeline_mode<synchronous>, transform_indices = @transform_7, window_bounds = array<i64: 8, 128>}]} {
    %c0 = arith.constant 0 : index
    %c0_0 = arith.constant 0 : index
    %0 = vector.load %arg2[%c0, %c0_0] : memref<16x16xf32, #tpu.memory_space<vmem>>, vector<16x16xf32>
    %c0_1 = arith.constant 0 : index
    %c0_2 = arith.constant 0 : index
    %1 = vector.load %arg1[%c0_1, %c0_2] : memref<16x128xf32, #tpu.memory_space<vmem>>, vector<16x128xf32>
    %c0_3 = arith.constant 0 : index
    %c0_4 = arith.constant 0 : index
    %2 = vector.load %arg7[%c0_3, %c0_4] : memref<4x128xf32, #tpu.memory_space<vmem>>, vector<1x128xf32>
    %c1 = arith.constant 1 : index
    %c0_5 = arith.constant 0 : index
    %3 = vector.load %arg7[%c1, %c0_5] : memref<4x128xf32, #tpu.memory_space<vmem>>, vector<1x128xf32>
    %cst = arith.constant dense<0.000000e+00> : vector<16xf32>
    %4 = vector.multi_reduction <add>, %1, %cst [1] : vector<16x128xf32> to vector<16xf32>
    %5 = vector.shape_cast %4 : vector<16xf32> to vector<16x1xf32>
    %cst_6 = arith.constant 1.280000e+02 : f32
    %6 = vector.broadcast %cst_6 : f32 to vector<16x1xf32>
    %7 = arith.divf %5, %6 : vector<16x1xf32>
    %8 = arith.mulf %1, %1 : vector<16x128xf32>
    %cst_7 = arith.constant dense<0.000000e+00> : vector<16xf32>
    %9 = vector.multi_reduction <add>, %8, %cst_7 [1] : vector<16x128xf32> to vector<16xf32>
    %10 = vector.shape_cast %9 : vector<16xf32> to vector<16x1xf32>
    %cst_8 = arith.constant 1.280000e+02 : f32
    %11 = vector.broadcast %cst_8 : f32 to vector<16x1xf32>
    %12 = arith.divf %10, %11 : vector<16x1xf32>
    %13 = vector.broadcast %7 : vector<16x1xf32> to vector<16x128xf32>
    %14 = arith.subf %1, %13 : vector<16x128xf32>
    %15 = arith.mulf %7, %7 : vector<16x1xf32>
    %16 = arith.subf %12, %15 : vector<16x1xf32>
    %cst_9 = arith.constant 9.99999996E-13 : f32
    %17 = vector.broadcast %cst_9 : f32 to vector<16x1xf32>
    %18 = arith.addf %16, %17 : vector<16x1xf32>
    %19 = math.rsqrt %18 : vector<16x1xf32>
    %20 = vector.broadcast %19 : vector<16x1xf32> to vector<16x128xf32>
    %21 = arith.mulf %14, %20 : vector<16x128xf32>
    %22 = vector.broadcast %2 : vector<1x128xf32> to vector<16x128xf32>
    %23 = arith.mulf %21, %22 : vector<16x128xf32>
    %24 = vector.broadcast %3 : vector<1x128xf32> to vector<16x128xf32>
    %25 = arith.addf %23, %24 : vector<16x128xf32>
    %c0_10 = arith.constant 0 : index
    %c0_11 = arith.constant 0 : index
    %c0_12 = arith.constant 0 : index
    %26 = vector.load %arg3[%c0_10, %c0_11, %c0_12] : memref<2x128x768xf32, #tpu.memory_space<vmem>>, vector<1x128x384xf32>
    %27 = vector.shape_cast %26 : vector<1x128x384xf32> to vector<128x384xf32>
    %c0_13 = arith.constant 0 : index
    %c0_14 = arith.constant 0 : index
    %c384 = arith.constant 384 : index
    %28 = vector.load %arg3[%c0_13, %c0_14, %c384] : memref<2x128x768xf32, #tpu.memory_space<vmem>>, vector<1x128x128xf32>
    %29 = vector.shape_cast %28 : vector<1x128x128xf32> to vector<128x128xf32>
    %c0_15 = arith.constant 0 : index
    %c0_16 = arith.constant 0 : index
    %c512 = arith.constant 512 : index
    %30 = vector.load %arg3[%c0_15, %c0_16, %c512] : memref<2x128x768xf32, #tpu.memory_space<vmem>>, vector<1x128x256xf32>
    %31 = vector.shape_cast %30 : vector<1x128x256xf32> to vector<128x256xf32>
    %cst_17 = arith.constant dense<0.000000e+00> : vector<16x384xf32>
    %32 = tpu.matmul %25, %27, %cst_17 {dimension_numbers = #tpu.dot_dimension_numbers<[1], [0], [0], [1], [0, 0, 1, 1], [], []>} : vector<16x128xf32>, vector<128x384xf32>, vector<16x384xf32> -> vector<16x384xf32>
    %c0_18 = arith.constant 0 : index
    %c0_19 = arith.constant 0 : index
    %c0_20 = arith.constant 0 : index
    %33 = vector.load %arg5[%c0_18, %c0_19, %c0_20] : memref<2x8x384xf32, #tpu.memory_space<vmem>>, vector<1x1x384xf32>
    %34 = vector.shape_cast %33 : vector<1x1x384xf32> to vector<1x384xf32>
    %35 = vector.broadcast %34 : vector<1x384xf32> to vector<16x384xf32>
    %36 = arith.addf %32, %35 : vector<16x384xf32>
    %37 = vector.extract_strided_slice %36 {offsets = [0, 0], sizes = [16, 32], strides = [1, 1]} : vector<16x384xf32> to vector<16x32xf32>
    %38 = vector.extract_strided_slice %36 {offsets = [0, 128], sizes = [16, 32], strides = [1, 1]} : vector<16x384xf32> to vector<16x32xf32>
    %39 = vector.extract_strided_slice %36 {offsets = [0, 256], sizes = [16, 32], strides = [1, 1]} : vector<16x384xf32> to vector<16x32xf32>
    %cst_21 = arith.constant dense<0.000000e+00> : vector<16x16xf32>
    %40 = tpu.matmul %37, %38, %cst_21 {dimension_numbers = #tpu.dot_dimension_numbers<[1], [1], [0], [0], [0, 0, 1, 0], [], []>} : vector<16x32xf32>, vector<16x32xf32>, vector<16x16xf32> -> vector<16x16xf32>
    %cst_22 = arith.constant 0.176776692 : f32
    %41 = vector.broadcast %cst_22 : f32 to vector<16x16xf32>
    %42 = arith.mulf %40, %41 : vector<16x16xf32>
    %43 = arith.addf %42, %0 : vector<16x16xf32>
    %cst_23 = arith.constant dense<0xFF800000> : vector<16xf32>
    %44 = vector.multi_reduction <maximumf>, %43, %cst_23 [1] : vector<16x16xf32> to vector<16xf32>
    %45 = vector.shape_cast %44 : vector<16xf32> to vector<16x1xf32>
    %46 = vector.broadcast %45 : vector<16x1xf32> to vector<16x16xf32>
    %47 = arith.subf %43, %46 : vector<16x16xf32>
    %48 = math.exp %47 : vector<16x16xf32>
    %cst_24 = arith.constant dense<0.000000e+00> : vector<16xf32>
    %49 = vector.multi_reduction <add>, %48, %cst_24 [1] : vector<16x16xf32> to vector<16xf32>
    %50 = vector.shape_cast %49 : vector<16xf32> to vector<16x1xf32>
    %51 = tpu.reciprocal %50 {approx = true} : vector<16x1xf32> -> vector<16x1xf32>
    %52 = vector.broadcast %51 : vector<16x1xf32> to vector<16x16xf32>
    %53 = arith.mulf %48, %52 : vector<16x16xf32>
    %cst_25 = arith.constant dense<0.000000e+00> : vector<16x32xf32>
    %54 = tpu.matmul %53, %39, %cst_25 {dimension_numbers = #tpu.dot_dimension_numbers<[1], [0], [0], [1], [0, 0, 1, 1], [], []>} : vector<16x16xf32>, vector<16x32xf32>, vector<16x32xf32> -> vector<16x32xf32>
    %55 = vector.extract_strided_slice %36 {offsets = [0, 32], sizes = [16, 32], strides = [1, 1]} : vector<16x384xf32> to vector<16x32xf32>
    %56 = vector.extract_strided_slice %36 {offsets = [0, 160], sizes = [16, 32], strides = [1, 1]} : vector<16x384xf32> to vector<16x32xf32>
    %57 = vector.extract_strided_slice %36 {offsets = [0, 288], sizes = [16, 32], strides = [1, 1]} : vector<16x384xf32> to vector<16x32xf32>
    %cst_26 = arith.constant dense<0.000000e+00> : vector<16x16xf32>
    %58 = tpu.matmul %55, %56, %cst_26 {dimension_numbers = #tpu.dot_dimension_numbers<[1], [1], [0], [0], [0, 0, 1, 0], [], []>} : vector<16x32xf32>, vector<16x32xf32>, vector<16x16xf32> -> vector<16x16xf32>
    %cst_27 = arith.constant 0.176776692 : f32
    %59 = vector.broadcast %cst_27 : f32 to vector<16x16xf32>
    %60 = arith.mulf %58, %59 : vector<16x16xf32>
    %61 = arith.addf %60, %0 : vector<16x16xf32>
    %cst_28 = arith.constant dense<0xFF800000> : vector<16xf32>
    %62 = vector.multi_reduction <maximumf>, %61, %cst_28 [1] : vector<16x16xf32> to vector<16xf32>
    %63 = vector.shape_cast %62 : vector<16xf32> to vector<16x1xf32>
    %64 = vector.broadcast %63 : vector<16x1xf32> to vector<16x16xf32>
    %65 = arith.subf %61, %64 : vector<16x16xf32>
    %66 = math.exp %65 : vector<16x16xf32>
    %cst_29 = arith.constant dense<0.000000e+00> : vector<16xf32>
    %67 = vector.multi_reduction <add>, %66, %cst_29 [1] : vector<16x16xf32> to vector<16xf32>
    %68 = vector.shape_cast %67 : vector<16xf32> to vector<16x1xf32>
    %69 = tpu.reciprocal %68 {approx = true} : vector<16x1xf32> -> vector<16x1xf32>
    %70 = vector.broadcast %69 : vector<16x1xf32> to vector<16x16xf32>
    %71 = arith.mulf %66, %70 : vector<16x16xf32>
    %cst_30 = arith.constant dense<0.000000e+00> : vector<16x32xf32>
    %72 = tpu.matmul %71, %57, %cst_30 {dimension_numbers = #tpu.dot_dimension_numbers<[1], [0], [0], [1], [0, 0, 1, 1], [], []>} : vector<16x16xf32>, vector<16x32xf32>, vector<16x32xf32> -> vector<16x32xf32>
    %73 = vector.extract_strided_slice %36 {offsets = [0, 64], sizes = [16, 32], strides = [1, 1]} : vector<16x384xf32> to vector<16x32xf32>
    %74 = vector.extract_strided_slice %36 {offsets = [0, 192], sizes = [16, 32], strides = [1, 1]} : vector<16x384xf32> to vector<16x32xf32>
    %75 = vector.extract_strided_slice %36 {offsets = [0, 320], sizes = [16, 32], strides = [1, 1]} : vector<16x384xf32> to vector<16x32xf32>
    %cst_31 = arith.constant dense<0.000000e+00> : vector<16x16xf32>
    %76 = tpu.matmul %73, %74, %cst_31 {dimension_numbers = #tpu.dot_dimension_numbers<[1], [1], [0], [0], [0, 0, 1, 0], [], []>} : vector<16x32xf32>, vector<16x32xf32>, vector<16x16xf32> -> vector<16x16xf32>
    %cst_32 = arith.constant 0.176776692 : f32
    %77 = vector.broadcast %cst_32 : f32 to vector<16x16xf32>
    %78 = arith.mulf %76, %77 : vector<16x16xf32>
    %79 = arith.addf %78, %0 : vector<16x16xf32>
    %cst_33 = arith.constant dense<0xFF800000> : vector<16xf32>
    %80 = vector.multi_reduction <maximumf>, %79, %cst_33 [1] : vector<16x16xf32> to vector<16xf32>
    %81 = vector.shape_cast %80 : vector<16xf32> to vector<16x1xf32>
    %82 = vector.broadcast %81 : vector<16x1xf32> to vector<16x16xf32>
    %83 = arith.subf %79, %82 : vector<16x16xf32>
    %84 = math.exp %83 : vector<16x16xf32>
    %cst_34 = arith.constant dense<0.000000e+00> : vector<16xf32>
    %85 = vector.multi_reduction <add>, %84, %cst_34 [1] : vector<16x16xf32> to vector<16xf32>
    %86 = vector.shape_cast %85 : vector<16xf32> to vector<16x1xf32>
    %87 = tpu.reciprocal %86 {approx = true} : vector<16x1xf32> -> vector<16x1xf32>
    %88 = vector.broadcast %87 : vector<16x1xf32> to vector<16x16xf32>
    %89 = arith.mulf %84, %88 : vector<16x16xf32>
    %cst_35 = arith.constant dense<0.000000e+00> : vector<16x32xf32>
    %90 = tpu.matmul %89, %75, %cst_35 {dimension_numbers = #tpu.dot_dimension_numbers<[1], [0], [0], [1], [0, 0, 1, 1], [], []>} : vector<16x16xf32>, vector<16x32xf32>, vector<16x32xf32> -> vector<16x32xf32>
    %91 = vector.extract_strided_slice %36 {offsets = [0, 96], sizes = [16, 32], strides = [1, 1]} : vector<16x384xf32> to vector<16x32xf32>
    %92 = vector.extract_strided_slice %36 {offsets = [0, 224], sizes = [16, 32], strides = [1, 1]} : vector<16x384xf32> to vector<16x32xf32>
    %93 = vector.extract_strided_slice %36 {offsets = [0, 352], sizes = [16, 32], strides = [1, 1]} : vector<16x384xf32> to vector<16x32xf32>
    %cst_36 = arith.constant dense<0.000000e+00> : vector<16x16xf32>
    %94 = tpu.matmul %91, %92, %cst_36 {dimension_numbers = #tpu.dot_dimension_numbers<[1], [1], [0], [0], [0, 0, 1, 0], [], []>} : vector<16x32xf32>, vector<16x32xf32>, vector<16x16xf32> -> vector<16x16xf32>
    %cst_37 = arith.constant 0.176776692 : f32
    %95 = vector.broadcast %cst_37 : f32 to vector<16x16xf32>
    %96 = arith.mulf %94, %95 : vector<16x16xf32>
    %97 = arith.addf %96, %0 : vector<16x16xf32>
    %cst_38 = arith.constant dense<0xFF800000> : vector<16xf32>
    %98 = vector.multi_reduction <maximumf>, %97, %cst_38 [1] : vector<16x16xf32> to vector<16xf32>
    %99 = vector.shape_cast %98 : vector<16xf32> to vector<16x1xf32>
    %100 = vector.broadcast %99 : vector<16x1xf32> to vector<16x16xf32>
    %101 = arith.subf %97, %100 : vector<16x16xf32>
    %102 = math.exp %101 : vector<16x16xf32>
    %cst_39 = arith.constant dense<0.000000e+00> : vector<16xf32>
    %103 = vector.multi_reduction <add>, %102, %cst_39 [1] : vector<16x16xf32> to vector<16xf32>
    %104 = vector.shape_cast %103 : vector<16xf32> to vector<16x1xf32>
    %105 = tpu.reciprocal %104 {approx = true} : vector<16x1xf32> -> vector<16x1xf32>
    %106 = vector.broadcast %105 : vector<16x1xf32> to vector<16x16xf32>
    %107 = arith.mulf %102, %106 : vector<16x16xf32>
    %cst_40 = arith.constant dense<0.000000e+00> : vector<16x32xf32>
    %108 = tpu.matmul %107, %93, %cst_40 {dimension_numbers = #tpu.dot_dimension_numbers<[1], [0], [0], [1], [0, 0, 1, 1], [], []>} : vector<16x16xf32>, vector<16x32xf32>, vector<16x32xf32> -> vector<16x32xf32>
    %109 = tpu.concatenate %54, %72, %90, %108 in 1 : vector<16x32xf32>, vector<16x32xf32>, vector<16x32xf32>, vector<16x32xf32> -> vector<16x128xf32>
    %cst_41 = arith.constant dense<0.000000e+00> : vector<16x128xf32>
    %110 = tpu.matmul %109, %29, %cst_41 {dimension_numbers = #tpu.dot_dimension_numbers<[1], [0], [0], [1], [0, 0, 1, 1], [], []>} : vector<16x128xf32>, vector<128x128xf32>, vector<16x128xf32> -> vector<16x128xf32>
    %c0_42 = arith.constant 0 : index
    %c1_43 = arith.constant 1 : index
    %c0_44 = arith.constant 0 : index
    %111 = vector.load %arg5[%c0_42, %c1_43, %c0_44] : memref<2x8x384xf32, #tpu.memory_space<vmem>>, vector<1x1x128xf32>
    %112 = vector.shape_cast %111 : vector<1x1x128xf32> to vector<1x128xf32>
    %113 = vector.broadcast %112 : vector<1x128xf32> to vector<16x128xf32>
    %114 = arith.addf %110, %113 : vector<16x128xf32>
    %115 = arith.addf %114, %25 : vector<16x128xf32>
    %c0_45 = arith.constant 0 : index
    %c2 = arith.constant 2 : index
    %c0_46 = arith.constant 0 : index
    %116 = vector.load %arg5[%c0_45, %c2, %c0_46] : memref<2x8x384xf32, #tpu.memory_space<vmem>>, vector<1x1x128xf32>
    %117 = vector.shape_cast %116 : vector<1x1x128xf32> to vector<1x128xf32>
    %c0_47 = arith.constant 0 : index
    %c3 = arith.constant 3 : index
    %c0_48 = arith.constant 0 : index
    %118 = vector.load %arg5[%c0_47, %c3, %c0_48] : memref<2x8x384xf32, #tpu.memory_space<vmem>>, vector<1x1x128xf32>
    %119 = vector.shape_cast %118 : vector<1x1x128xf32> to vector<1x128xf32>
    %cst_49 = arith.constant dense<0.000000e+00> : vector<16xf32>
    %120 = vector.multi_reduction <add>, %115, %cst_49 [1] : vector<16x128xf32> to vector<16xf32>
    %121 = vector.shape_cast %120 : vector<16xf32> to vector<16x1xf32>
    %cst_50 = arith.constant 1.280000e+02 : f32
    %122 = vector.broadcast %cst_50 : f32 to vector<16x1xf32>
    %123 = arith.divf %121, %122 : vector<16x1xf32>
    %124 = arith.mulf %115, %115 : vector<16x128xf32>
    %cst_51 = arith.constant dense<0.000000e+00> : vector<16xf32>
    %125 = vector.multi_reduction <add>, %124, %cst_51 [1] : vector<16x128xf32> to vector<16xf32>
    %126 = vector.shape_cast %125 : vector<16xf32> to vector<16x1xf32>
    %cst_52 = arith.constant 1.280000e+02 : f32
    %127 = vector.broadcast %cst_52 : f32 to vector<16x1xf32>
    %128 = arith.divf %126, %127 : vector<16x1xf32>
    %129 = vector.broadcast %123 : vector<16x1xf32> to vector<16x128xf32>
    %130 = arith.subf %115, %129 : vector<16x128xf32>
    %131 = arith.mulf %123, %123 : vector<16x1xf32>
    %132 = arith.subf %128, %131 : vector<16x1xf32>
    %cst_53 = arith.constant 9.99999996E-13 : f32
    %133 = vector.broadcast %cst_53 : f32 to vector<16x1xf32>
    %134 = arith.addf %132, %133 : vector<16x1xf32>
    %135 = math.rsqrt %134 : vector<16x1xf32>
    %136 = vector.broadcast %135 : vector<16x1xf32> to vector<16x128xf32>
    %137 = arith.mulf %130, %136 : vector<16x128xf32>
    %138 = vector.broadcast %117 : vector<1x128xf32> to vector<16x128xf32>
    %139 = arith.mulf %137, %138 : vector<16x128xf32>
    %140 = vector.broadcast %119 : vector<1x128xf32> to vector<16x128xf32>
    %141 = arith.addf %139, %140 : vector<16x128xf32>
    %cst_54 = arith.constant dense<0.000000e+00> : vector<16x256xf32>
    %142 = tpu.matmul %141, %31, %cst_54 {dimension_numbers = #tpu.dot_dimension_numbers<[1], [0], [0], [1], [0, 0, 1, 1], [], []>} : vector<16x128xf32>, vector<128x256xf32>, vector<16x256xf32> -> vector<16x256xf32>
    %c0_55 = arith.constant 0 : index
    %c4 = arith.constant 4 : index
    %c0_56 = arith.constant 0 : index
    %143 = vector.load %arg5[%c0_55, %c4, %c0_56] : memref<2x8x384xf32, #tpu.memory_space<vmem>>, vector<1x1x256xf32>
    %144 = vector.shape_cast %143 : vector<1x1x256xf32> to vector<1x256xf32>
    %145 = vector.broadcast %144 : vector<1x256xf32> to vector<16x256xf32>
    %146 = arith.addf %142, %145 : vector<16x256xf32>
    %cst_57 = arith.constant 5.000000e-01 : f32
    %147 = vector.broadcast %cst_57 : f32 to vector<16x256xf32>
    %148 = arith.mulf %147, %146 : vector<16x256xf32>
    %cst_58 = arith.constant 4.471500e-02 : f32
    %149 = vector.broadcast %cst_58 : f32 to vector<16x256xf32>
    %150 = arith.mulf %149, %146 : vector<16x256xf32>
    %151 = arith.mulf %150, %146 : vector<16x256xf32>
    %152 = arith.mulf %151, %146 : vector<16x256xf32>
    %153 = arith.addf %146, %152 : vector<16x256xf32>
    %cst_59 = arith.constant 0.797884583 : f32
    %154 = vector.broadcast %cst_59 : f32 to vector<16x256xf32>
    %155 = arith.mulf %154, %153 : vector<16x256xf32>
    %156 = math.tanh %155 : vector<16x256xf32>
    %cst_60 = arith.constant 1.000000e+00 : f32
    %157 = vector.broadcast %cst_60 : f32 to vector<16x256xf32>
    %158 = arith.addf %157, %156 : vector<16x256xf32>
    %159 = arith.mulf %148, %158 : vector<16x256xf32>
    %c0_61 = arith.constant 0 : index
    %c0_62 = arith.constant 0 : index
    %c0_63 = arith.constant 0 : index
    %160 = vector.load %arg4[%c0_61, %c0_62, %c0_63] : memref<2x256x128xf32, #tpu.memory_space<vmem>>, vector<1x256x128xf32>
    %161 = vector.shape_cast %160 : vector<1x256x128xf32> to vector<256x128xf32>
    %cst_64 = arith.constant dense<0.000000e+00> : vector<16x128xf32>
    %162 = tpu.matmul %159, %161, %cst_64 {dimension_numbers = #tpu.dot_dimension_numbers<[1], [0], [0], [1], [0, 0, 1, 1], [], []>} : vector<16x256xf32>, vector<256x128xf32>, vector<16x128xf32> -> vector<16x128xf32>
    %c0_65 = arith.constant 0 : index
    %c5 = arith.constant 5 : index
    %c0_66 = arith.constant 0 : index
    %163 = vector.load %arg5[%c0_65, %c5, %c0_66] : memref<2x8x384xf32, #tpu.memory_space<vmem>>, vector<1x1x128xf32>
    %164 = vector.shape_cast %163 : vector<1x1x128xf32> to vector<1x128xf32>
    %165 = vector.broadcast %164 : vector<1x128xf32> to vector<16x128xf32>
    %166 = arith.addf %162, %165 : vector<16x128xf32>
    %167 = arith.addf %166, %141 : vector<16x128xf32>
    %c0_67 = arith.constant 0 : index
    %c6 = arith.constant 6 : index
    %c0_68 = arith.constant 0 : index
    %168 = vector.load %arg5[%c0_67, %c6, %c0_68] : memref<2x8x384xf32, #tpu.memory_space<vmem>>, vector<1x1x128xf32>
    %169 = vector.shape_cast %168 : vector<1x1x128xf32> to vector<1x128xf32>
    %c0_69 = arith.constant 0 : index
    %c7 = arith.constant 7 : index
    %c0_70 = arith.constant 0 : index
    %170 = vector.load %arg5[%c0_69, %c7, %c0_70] : memref<2x8x384xf32, #tpu.memory_space<vmem>>, vector<1x1x128xf32>
    %171 = vector.shape_cast %170 : vector<1x1x128xf32> to vector<1x128xf32>
    %cst_71 = arith.constant dense<0.000000e+00> : vector<16xf32>
    %172 = vector.multi_reduction <add>, %167, %cst_71 [1] : vector<16x128xf32> to vector<16xf32>
    %173 = vector.shape_cast %172 : vector<16xf32> to vector<16x1xf32>
    %cst_72 = arith.constant 1.280000e+02 : f32
    %174 = vector.broadcast %cst_72 : f32 to vector<16x1xf32>
    %175 = arith.divf %173, %174 : vector<16x1xf32>
    %176 = arith.mulf %167, %167 : vector<16x128xf32>
    %cst_73 = arith.constant dense<0.000000e+00> : vector<16xf32>
    %177 = vector.multi_reduction <add>, %176, %cst_73 [1] : vector<16x128xf32> to vector<16xf32>
    %178 = vector.shape_cast %177 : vector<16xf32> to vector<16x1xf32>
    %cst_74 = arith.constant 1.280000e+02 : f32
    %179 = vector.broadcast %cst_74 : f32 to vector<16x1xf32>
    %180 = arith.divf %178, %179 : vector<16x1xf32>
    %181 = vector.broadcast %175 : vector<16x1xf32> to vector<16x128xf32>
    %182 = arith.subf %167, %181 : vector<16x128xf32>
    %183 = arith.mulf %175, %175 : vector<16x1xf32>
    %184 = arith.subf %180, %183 : vector<16x1xf32>
    %cst_75 = arith.constant 9.99999996E-13 : f32
    %185 = vector.broadcast %cst_75 : f32 to vector<16x1xf32>
    %186 = arith.addf %184, %185 : vector<16x1xf32>
    %187 = math.rsqrt %186 : vector<16x1xf32>
    %188 = vector.broadcast %187 : vector<16x1xf32> to vector<16x128xf32>
    %189 = arith.mulf %182, %188 : vector<16x128xf32>
    %190 = vector.broadcast %169 : vector<1x128xf32> to vector<16x128xf32>
    %191 = arith.mulf %189, %190 : vector<16x128xf32>
    %192 = vector.broadcast %171 : vector<1x128xf32> to vector<16x128xf32>
    %193 = arith.addf %191, %192 : vector<16x128xf32>
    %c1_76 = arith.constant 1 : index
    %c0_77 = arith.constant 0 : index
    %c0_78 = arith.constant 0 : index
    %194 = vector.load %arg3[%c1_76, %c0_77, %c0_78] : memref<2x128x768xf32, #tpu.memory_space<vmem>>, vector<1x128x384xf32>
    %195 = vector.shape_cast %194 : vector<1x128x384xf32> to vector<128x384xf32>
    %c1_79 = arith.constant 1 : index
    %c0_80 = arith.constant 0 : index
    %c384_81 = arith.constant 384 : index
    %196 = vector.load %arg3[%c1_79, %c0_80, %c384_81] : memref<2x128x768xf32, #tpu.memory_space<vmem>>, vector<1x128x128xf32>
    %197 = vector.shape_cast %196 : vector<1x128x128xf32> to vector<128x128xf32>
    %c1_82 = arith.constant 1 : index
    %c0_83 = arith.constant 0 : index
    %c512_84 = arith.constant 512 : index
    %198 = vector.load %arg3[%c1_82, %c0_83, %c512_84] : memref<2x128x768xf32, #tpu.memory_space<vmem>>, vector<1x128x256xf32>
    %199 = vector.shape_cast %198 : vector<1x128x256xf32> to vector<128x256xf32>
    %cst_85 = arith.constant dense<0.000000e+00> : vector<16x384xf32>
    %200 = tpu.matmul %193, %195, %cst_85 {dimension_numbers = #tpu.dot_dimension_numbers<[1], [0], [0], [1], [0, 0, 1, 1], [], []>} : vector<16x128xf32>, vector<128x384xf32>, vector<16x384xf32> -> vector<16x384xf32>
    %c1_86 = arith.constant 1 : index
    %c0_87 = arith.constant 0 : index
    %c0_88 = arith.constant 0 : index
    %201 = vector.load %arg5[%c1_86, %c0_87, %c0_88] : memref<2x8x384xf32, #tpu.memory_space<vmem>>, vector<1x1x384xf32>
    %202 = vector.shape_cast %201 : vector<1x1x384xf32> to vector<1x384xf32>
    %203 = vector.broadcast %202 : vector<1x384xf32> to vector<16x384xf32>
    %204 = arith.addf %200, %203 : vector<16x384xf32>
    %205 = vector.extract_strided_slice %204 {offsets = [0, 0], sizes = [16, 32], strides = [1, 1]} : vector<16x384xf32> to vector<16x32xf32>
    %206 = vector.extract_strided_slice %204 {offsets = [0, 128], sizes = [16, 32], strides = [1, 1]} : vector<16x384xf32> to vector<16x32xf32>
    %207 = vector.extract_strided_slice %204 {offsets = [0, 256], sizes = [16, 32], strides = [1, 1]} : vector<16x384xf32> to vector<16x32xf32>
    %cst_89 = arith.constant dense<0.000000e+00> : vector<16x16xf32>
    %208 = tpu.matmul %205, %206, %cst_89 {dimension_numbers = #tpu.dot_dimension_numbers<[1], [1], [0], [0], [0, 0, 1, 0], [], []>} : vector<16x32xf32>, vector<16x32xf32>, vector<16x16xf32> -> vector<16x16xf32>
    %cst_90 = arith.constant 0.176776692 : f32
    %209 = vector.broadcast %cst_90 : f32 to vector<16x16xf32>
    %210 = arith.mulf %208, %209 : vector<16x16xf32>
    %211 = arith.addf %210, %0 : vector<16x16xf32>
    %cst_91 = arith.constant dense<0xFF800000> : vector<16xf32>
    %212 = vector.multi_reduction <maximumf>, %211, %cst_91 [1] : vector<16x16xf32> to vector<16xf32>
    %213 = vector.shape_cast %212 : vector<16xf32> to vector<16x1xf32>
    %214 = vector.broadcast %213 : vector<16x1xf32> to vector<16x16xf32>
    %215 = arith.subf %211, %214 : vector<16x16xf32>
    %216 = math.exp %215 : vector<16x16xf32>
    %cst_92 = arith.constant dense<0.000000e+00> : vector<16xf32>
    %217 = vector.multi_reduction <add>, %216, %cst_92 [1] : vector<16x16xf32> to vector<16xf32>
    %218 = vector.shape_cast %217 : vector<16xf32> to vector<16x1xf32>
    %219 = tpu.reciprocal %218 {approx = true} : vector<16x1xf32> -> vector<16x1xf32>
    %220 = vector.broadcast %219 : vector<16x1xf32> to vector<16x16xf32>
    %221 = arith.mulf %216, %220 : vector<16x16xf32>
    %cst_93 = arith.constant dense<0.000000e+00> : vector<16x32xf32>
    %222 = tpu.matmul %221, %207, %cst_93 {dimension_numbers = #tpu.dot_dimension_numbers<[1], [0], [0], [1], [0, 0, 1, 1], [], []>} : vector<16x16xf32>, vector<16x32xf32>, vector<16x32xf32> -> vector<16x32xf32>
    %223 = vector.extract_strided_slice %204 {offsets = [0, 32], sizes = [16, 32], strides = [1, 1]} : vector<16x384xf32> to vector<16x32xf32>
    %224 = vector.extract_strided_slice %204 {offsets = [0, 160], sizes = [16, 32], strides = [1, 1]} : vector<16x384xf32> to vector<16x32xf32>
    %225 = vector.extract_strided_slice %204 {offsets = [0, 288], sizes = [16, 32], strides = [1, 1]} : vector<16x384xf32> to vector<16x32xf32>
    %cst_94 = arith.constant dense<0.000000e+00> : vector<16x16xf32>
    %226 = tpu.matmul %223, %224, %cst_94 {dimension_numbers = #tpu.dot_dimension_numbers<[1], [1], [0], [0], [0, 0, 1, 0], [], []>} : vector<16x32xf32>, vector<16x32xf32>, vector<16x16xf32> -> vector<16x16xf32>
    %cst_95 = arith.constant 0.176776692 : f32
    %227 = vector.broadcast %cst_95 : f32 to vector<16x16xf32>
    %228 = arith.mulf %226, %227 : vector<16x16xf32>
    %229 = arith.addf %228, %0 : vector<16x16xf32>
    %cst_96 = arith.constant dense<0xFF800000> : vector<16xf32>
    %230 = vector.multi_reduction <maximumf>, %229, %cst_96 [1] : vector<16x16xf32> to vector<16xf32>
    %231 = vector.shape_cast %230 : vector<16xf32> to vector<16x1xf32>
    %232 = vector.broadcast %231 : vector<16x1xf32> to vector<16x16xf32>
    %233 = arith.subf %229, %232 : vector<16x16xf32>
    %234 = math.exp %233 : vector<16x16xf32>
    %cst_97 = arith.constant dense<0.000000e+00> : vector<16xf32>
    %235 = vector.multi_reduction <add>, %234, %cst_97 [1] : vector<16x16xf32> to vector<16xf32>
    %236 = vector.shape_cast %235 : vector<16xf32> to vector<16x1xf32>
    %237 = tpu.reciprocal %236 {approx = true} : vector<16x1xf32> -> vector<16x1xf32>
    %238 = vector.broadcast %237 : vector<16x1xf32> to vector<16x16xf32>
    %239 = arith.mulf %234, %238 : vector<16x16xf32>
    %cst_98 = arith.constant dense<0.000000e+00> : vector<16x32xf32>
    %240 = tpu.matmul %239, %225, %cst_98 {dimension_numbers = #tpu.dot_dimension_numbers<[1], [0], [0], [1], [0, 0, 1, 1], [], []>} : vector<16x16xf32>, vector<16x32xf32>, vector<16x32xf32> -> vector<16x32xf32>
    %241 = vector.extract_strided_slice %204 {offsets = [0, 64], sizes = [16, 32], strides = [1, 1]} : vector<16x384xf32> to vector<16x32xf32>
    %242 = vector.extract_strided_slice %204 {offsets = [0, 192], sizes = [16, 32], strides = [1, 1]} : vector<16x384xf32> to vector<16x32xf32>
    %243 = vector.extract_strided_slice %204 {offsets = [0, 320], sizes = [16, 32], strides = [1, 1]} : vector<16x384xf32> to vector<16x32xf32>
    %cst_99 = arith.constant dense<0.000000e+00> : vector<16x16xf32>
    %244 = tpu.matmul %241, %242, %cst_99 {dimension_numbers = #tpu.dot_dimension_numbers<[1], [1], [0], [0], [0, 0, 1, 0], [], []>} : vector<16x32xf32>, vector<16x32xf32>, vector<16x16xf32> -> vector<16x16xf32>
    %cst_100 = arith.constant 0.176776692 : f32
    %245 = vector.broadcast %cst_100 : f32 to vector<16x16xf32>
    %246 = arith.mulf %244, %245 : vector<16x16xf32>
    %247 = arith.addf %246, %0 : vector<16x16xf32>
    %cst_101 = arith.constant dense<0xFF800000> : vector<16xf32>
    %248 = vector.multi_reduction <maximumf>, %247, %cst_101 [1] : vector<16x16xf32> to vector<16xf32>
    %249 = vector.shape_cast %248 : vector<16xf32> to vector<16x1xf32>
    %250 = vector.broadcast %249 : vector<16x1xf32> to vector<16x16xf32>
    %251 = arith.subf %247, %250 : vector<16x16xf32>
    %252 = math.exp %251 : vector<16x16xf32>
    %cst_102 = arith.constant dense<0.000000e+00> : vector<16xf32>
    %253 = vector.multi_reduction <add>, %252, %cst_102 [1] : vector<16x16xf32> to vector<16xf32>
    %254 = vector.shape_cast %253 : vector<16xf32> to vector<16x1xf32>
    %255 = tpu.reciprocal %254 {approx = true} : vector<16x1xf32> -> vector<16x1xf32>
    %256 = vector.broadcast %255 : vector<16x1xf32> to vector<16x16xf32>
    %257 = arith.mulf %252, %256 : vector<16x16xf32>
    %cst_103 = arith.constant dense<0.000000e+00> : vector<16x32xf32>
    %258 = tpu.matmul %257, %243, %cst_103 {dimension_numbers = #tpu.dot_dimension_numbers<[1], [0], [0], [1], [0, 0, 1, 1], [], []>} : vector<16x16xf32>, vector<16x32xf32>, vector<16x32xf32> -> vector<16x32xf32>
    %259 = vector.extract_strided_slice %204 {offsets = [0, 96], sizes = [16, 32], strides = [1, 1]} : vector<16x384xf32> to vector<16x32xf32>
    %260 = vector.extract_strided_slice %204 {offsets = [0, 224], sizes = [16, 32], strides = [1, 1]} : vector<16x384xf32> to vector<16x32xf32>
    %261 = vector.extract_strided_slice %204 {offsets = [0, 352], sizes = [16, 32], strides = [1, 1]} : vector<16x384xf32> to vector<16x32xf32>
    %cst_104 = arith.constant dense<0.000000e+00> : vector<16x16xf32>
    %262 = tpu.matmul %259, %260, %cst_104 {dimension_numbers = #tpu.dot_dimension_numbers<[1], [1], [0], [0], [0, 0, 1, 0], [], []>} : vector<16x32xf32>, vector<16x32xf32>, vector<16x16xf32> -> vector<16x16xf32>
    %cst_105 = arith.constant 0.176776692 : f32
    %263 = vector.broadcast %cst_105 : f32 to vector<16x16xf32>
    %264 = arith.mulf %262, %263 : vector<16x16xf32>
    %265 = arith.addf %264, %0 : vector<16x16xf32>
    %cst_106 = arith.constant dense<0xFF800000> : vector<16xf32>
    %266 = vector.multi_reduction <maximumf>, %265, %cst_106 [1] : vector<16x16xf32> to vector<16xf32>
    %267 = vector.shape_cast %266 : vector<16xf32> to vector<16x1xf32>
    %268 = vector.broadcast %267 : vector<16x1xf32> to vector<16x16xf32>
    %269 = arith.subf %265, %268 : vector<16x16xf32>
    %270 = math.exp %269 : vector<16x16xf32>
    %cst_107 = arith.constant dense<0.000000e+00> : vector<16xf32>
    %271 = vector.multi_reduction <add>, %270, %cst_107 [1] : vector<16x16xf32> to vector<16xf32>
    %272 = vector.shape_cast %271 : vector<16xf32> to vector<16x1xf32>
    %273 = tpu.reciprocal %272 {approx = true} : vector<16x1xf32> -> vector<16x1xf32>
    %274 = vector.broadcast %273 : vector<16x1xf32> to vector<16x16xf32>
    %275 = arith.mulf %270, %274 : vector<16x16xf32>
    %cst_108 = arith.constant dense<0.000000e+00> : vector<16x32xf32>
    %276 = tpu.matmul %275, %261, %cst_108 {dimension_numbers = #tpu.dot_dimension_numbers<[1], [0], [0], [1], [0, 0, 1, 1], [], []>} : vector<16x16xf32>, vector<16x32xf32>, vector<16x32xf32> -> vector<16x32xf32>
    %277 = tpu.concatenate %222, %240, %258, %276 in 1 : vector<16x32xf32>, vector<16x32xf32>, vector<16x32xf32>, vector<16x32xf32> -> vector<16x128xf32>
    %cst_109 = arith.constant dense<0.000000e+00> : vector<16x128xf32>
    %278 = tpu.matmul %277, %197, %cst_109 {dimension_numbers = #tpu.dot_dimension_numbers<[1], [0], [0], [1], [0, 0, 1, 1], [], []>} : vector<16x128xf32>, vector<128x128xf32>, vector<16x128xf32> -> vector<16x128xf32>
    %c1_110 = arith.constant 1 : index
    %c1_111 = arith.constant 1 : index
    %c0_112 = arith.constant 0 : index
    %279 = vector.load %arg5[%c1_110, %c1_111, %c0_112] : memref<2x8x384xf32, #tpu.memory_space<vmem>>, vector<1x1x128xf32>
    %280 = vector.shape_cast %279 : vector<1x1x128xf32> to vector<1x128xf32>
    %281 = vector.broadcast %280 : vector<1x128xf32> to vector<16x128xf32>
    %282 = arith.addf %278, %281 : vector<16x128xf32>
    %283 = arith.addf %282, %193 : vector<16x128xf32>
    %c1_113 = arith.constant 1 : index
    %c2_114 = arith.constant 2 : index
    %c0_115 = arith.constant 0 : index
    %284 = vector.load %arg5[%c1_113, %c2_114, %c0_115] : memref<2x8x384xf32, #tpu.memory_space<vmem>>, vector<1x1x128xf32>
    %285 = vector.shape_cast %284 : vector<1x1x128xf32> to vector<1x128xf32>
    %c1_116 = arith.constant 1 : index
    %c3_117 = arith.constant 3 : index
    %c0_118 = arith.constant 0 : index
    %286 = vector.load %arg5[%c1_116, %c3_117, %c0_118] : memref<2x8x384xf32, #tpu.memory_space<vmem>>, vector<1x1x128xf32>
    %287 = vector.shape_cast %286 : vector<1x1x128xf32> to vector<1x128xf32>
    %cst_119 = arith.constant dense<0.000000e+00> : vector<16xf32>
    %288 = vector.multi_reduction <add>, %283, %cst_119 [1] : vector<16x128xf32> to vector<16xf32>
    %289 = vector.shape_cast %288 : vector<16xf32> to vector<16x1xf32>
    %cst_120 = arith.constant 1.280000e+02 : f32
    %290 = vector.broadcast %cst_120 : f32 to vector<16x1xf32>
    %291 = arith.divf %289, %290 : vector<16x1xf32>
    %292 = arith.mulf %283, %283 : vector<16x128xf32>
    %cst_121 = arith.constant dense<0.000000e+00> : vector<16xf32>
    %293 = vector.multi_reduction <add>, %292, %cst_121 [1] : vector<16x128xf32> to vector<16xf32>
    %294 = vector.shape_cast %293 : vector<16xf32> to vector<16x1xf32>
    %cst_122 = arith.constant 1.280000e+02 : f32
    %295 = vector.broadcast %cst_122 : f32 to vector<16x1xf32>
    %296 = arith.divf %294, %295 : vector<16x1xf32>
    %297 = vector.broadcast %291 : vector<16x1xf32> to vector<16x128xf32>
    %298 = arith.subf %283, %297 : vector<16x128xf32>
    %299 = arith.mulf %291, %291 : vector<16x1xf32>
    %300 = arith.subf %296, %299 : vector<16x1xf32>
    %cst_123 = arith.constant 9.99999996E-13 : f32
    %301 = vector.broadcast %cst_123 : f32 to vector<16x1xf32>
    %302 = arith.addf %300, %301 : vector<16x1xf32>
    %303 = math.rsqrt %302 : vector<16x1xf32>
    %304 = vector.broadcast %303 : vector<16x1xf32> to vector<16x128xf32>
    %305 = arith.mulf %298, %304 : vector<16x128xf32>
    %306 = vector.broadcast %285 : vector<1x128xf32> to vector<16x128xf32>
    %307 = arith.mulf %305, %306 : vector<16x128xf32>
    %308 = vector.broadcast %287 : vector<1x128xf32> to vector<16x128xf32>
    %309 = arith.addf %307, %308 : vector<16x128xf32>
    %cst_124 = arith.constant dense<0.000000e+00> : vector<16x256xf32>
    %310 = tpu.matmul %309, %199, %cst_124 {dimension_numbers = #tpu.dot_dimension_numbers<[1], [0], [0], [1], [0, 0, 1, 1], [], []>} : vector<16x128xf32>, vector<128x256xf32>, vector<16x256xf32> -> vector<16x256xf32>
    %c1_125 = arith.constant 1 : index
    %c4_126 = arith.constant 4 : index
    %c0_127 = arith.constant 0 : index
    %311 = vector.load %arg5[%c1_125, %c4_126, %c0_127] : memref<2x8x384xf32, #tpu.memory_space<vmem>>, vector<1x1x256xf32>
    %312 = vector.shape_cast %311 : vector<1x1x256xf32> to vector<1x256xf32>
    %313 = vector.broadcast %312 : vector<1x256xf32> to vector<16x256xf32>
    %314 = arith.addf %310, %313 : vector<16x256xf32>
    %cst_128 = arith.constant 5.000000e-01 : f32
    %315 = vector.broadcast %cst_128 : f32 to vector<16x256xf32>
    %316 = arith.mulf %315, %314 : vector<16x256xf32>
    %cst_129 = arith.constant 4.471500e-02 : f32
    %317 = vector.broadcast %cst_129 : f32 to vector<16x256xf32>
    %318 = arith.mulf %317, %314 : vector<16x256xf32>
    %319 = arith.mulf %318, %314 : vector<16x256xf32>
    %320 = arith.mulf %319, %314 : vector<16x256xf32>
    %321 = arith.addf %314, %320 : vector<16x256xf32>
    %cst_130 = arith.constant 0.797884583 : f32
    %322 = vector.broadcast %cst_130 : f32 to vector<16x256xf32>
    %323 = arith.mulf %322, %321 : vector<16x256xf32>
    %324 = math.tanh %323 : vector<16x256xf32>
    %cst_131 = arith.constant 1.000000e+00 : f32
    %325 = vector.broadcast %cst_131 : f32 to vector<16x256xf32>
    %326 = arith.addf %325, %324 : vector<16x256xf32>
    %327 = arith.mulf %316, %326 : vector<16x256xf32>
    %c1_132 = arith.constant 1 : index
    %c0_133 = arith.constant 0 : index
    %c0_134 = arith.constant 0 : index
    %328 = vector.load %arg4[%c1_132, %c0_133, %c0_134] : memref<2x256x128xf32, #tpu.memory_space<vmem>>, vector<1x256x128xf32>
    %329 = vector.shape_cast %328 : vector<1x256x128xf32> to vector<256x128xf32>
    %cst_135 = arith.constant dense<0.000000e+00> : vector<16x128xf32>
    %330 = tpu.matmul %327, %329, %cst_135 {dimension_numbers = #tpu.dot_dimension_numbers<[1], [0], [0], [1], [0, 0, 1, 1], [], []>} : vector<16x256xf32>, vector<256x128xf32>, vector<16x128xf32> -> vector<16x128xf32>
    %c1_136 = arith.constant 1 : index
    %c5_137 = arith.constant 5 : index
    %c0_138 = arith.constant 0 : index
    %331 = vector.load %arg5[%c1_136, %c5_137, %c0_138] : memref<2x8x384xf32, #tpu.memory_space<vmem>>, vector<1x1x128xf32>
    %332 = vector.shape_cast %331 : vector<1x1x128xf32> to vector<1x128xf32>
    %333 = vector.broadcast %332 : vector<1x128xf32> to vector<16x128xf32>
    %334 = arith.addf %330, %333 : vector<16x128xf32>
    %335 = arith.addf %334, %309 : vector<16x128xf32>
    %c1_139 = arith.constant 1 : index
    %c6_140 = arith.constant 6 : index
    %c0_141 = arith.constant 0 : index
    %336 = vector.load %arg5[%c1_139, %c6_140, %c0_141] : memref<2x8x384xf32, #tpu.memory_space<vmem>>, vector<1x1x128xf32>
    %337 = vector.shape_cast %336 : vector<1x1x128xf32> to vector<1x128xf32>
    %c1_142 = arith.constant 1 : index
    %c7_143 = arith.constant 7 : index
    %c0_144 = arith.constant 0 : index
    %338 = vector.load %arg5[%c1_142, %c7_143, %c0_144] : memref<2x8x384xf32, #tpu.memory_space<vmem>>, vector<1x1x128xf32>
    %339 = vector.shape_cast %338 : vector<1x1x128xf32> to vector<1x128xf32>
    %cst_145 = arith.constant dense<0.000000e+00> : vector<16xf32>
    %340 = vector.multi_reduction <add>, %335, %cst_145 [1] : vector<16x128xf32> to vector<16xf32>
    %341 = vector.shape_cast %340 : vector<16xf32> to vector<16x1xf32>
    %cst_146 = arith.constant 1.280000e+02 : f32
    %342 = vector.broadcast %cst_146 : f32 to vector<16x1xf32>
    %343 = arith.divf %341, %342 : vector<16x1xf32>
    %344 = arith.mulf %335, %335 : vector<16x128xf32>
    %cst_147 = arith.constant dense<0.000000e+00> : vector<16xf32>
    %345 = vector.multi_reduction <add>, %344, %cst_147 [1] : vector<16x128xf32> to vector<16xf32>
    %346 = vector.shape_cast %345 : vector<16xf32> to vector<16x1xf32>
    %cst_148 = arith.constant 1.280000e+02 : f32
    %347 = vector.broadcast %cst_148 : f32 to vector<16x1xf32>
    %348 = arith.divf %346, %347 : vector<16x1xf32>
    %349 = vector.broadcast %343 : vector<16x1xf32> to vector<16x128xf32>
    %350 = arith.subf %335, %349 : vector<16x128xf32>
    %351 = arith.mulf %343, %343 : vector<16x1xf32>
    %352 = arith.subf %348, %351 : vector<16x1xf32>
    %cst_149 = arith.constant 9.99999996E-13 : f32
    %353 = vector.broadcast %cst_149 : f32 to vector<16x1xf32>
    %354 = arith.addf %352, %353 : vector<16x1xf32>
    %355 = math.rsqrt %354 : vector<16x1xf32>
    %356 = vector.broadcast %355 : vector<16x1xf32> to vector<16x128xf32>
    %357 = arith.mulf %350, %356 : vector<16x128xf32>
    %358 = vector.broadcast %337 : vector<1x128xf32> to vector<16x128xf32>
    %359 = arith.mulf %357, %358 : vector<16x128xf32>
    %360 = vector.broadcast %339 : vector<1x128xf32> to vector<16x128xf32>
    %361 = arith.addf %359, %360 : vector<16x128xf32>
    %362 = vector.extract_strided_slice %361 {offsets = [0, 0], sizes = [1, 128], strides = [1, 1]} : vector<16x128xf32> to vector<1x128xf32>
    %363 = vector.extract_strided_slice %361 {offsets = [8, 0], sizes = [1, 128], strides = [1, 1]} : vector<16x128xf32> to vector<1x128xf32>
    %cst_150 = arith.constant 0.000000e+00 : f32
    %364 = vector.broadcast %cst_150 : f32 to vector<6x128xf32>
    %365 = tpu.concatenate %362, %363, %364 in 0 : vector<1x128xf32>, vector<1x128xf32>, vector<6x128xf32> -> vector<8x128xf32>
    %c0_151 = arith.constant 0 : index
    %c0_152 = arith.constant 0 : index
    %366 = vector.load %arg6[%c0_151, %c0_152] : memref<128x256xf32, #tpu.memory_space<vmem>>, vector<128x128xf32>
    %cst_153 = arith.constant dense<0.000000e+00> : vector<8x128xf32>
    %367 = tpu.matmul %365, %366, %cst_153 {dimension_numbers = #tpu.dot_dimension_numbers<[1], [0], [0], [1], [0, 0, 1, 1], [], []>} : vector<8x128xf32>, vector<128x128xf32>, vector<8x128xf32> -> vector<8x128xf32>
    %c2_154 = arith.constant 2 : index
    %c0_155 = arith.constant 0 : index
    %368 = vector.load %arg7[%c2_154, %c0_155] : memref<4x128xf32, #tpu.memory_space<vmem>>, vector<1x128xf32>
    %369 = vector.broadcast %368 : vector<1x128xf32> to vector<8x128xf32>
    %370 = arith.addf %367, %369 : vector<8x128xf32>
    %371 = math.tanh %370 : vector<8x128xf32>
    %c0_156 = arith.constant 0 : index
    %c128 = arith.constant 128 : index
    %372 = vector.load %arg6[%c0_156, %c128] : memref<128x256xf32, #tpu.memory_space<vmem>>, vector<128x128xf32>
    %cst_157 = arith.constant dense<0.000000e+00> : vector<8x128xf32>
    %373 = tpu.matmul %371, %372, %cst_157 {dimension_numbers = #tpu.dot_dimension_numbers<[1], [0], [0], [1], [0, 0, 1, 1], [], []>} : vector<8x128xf32>, vector<128x128xf32>, vector<8x128xf32> -> vector<8x128xf32>
    %c3_158 = arith.constant 3 : index
    %c0_159 = arith.constant 0 : index
    %374 = vector.load %arg7[%c3_158, %c0_159] : memref<4x128xf32, #tpu.memory_space<vmem>>, vector<1x128xf32>
    %375 = vector.broadcast %374 : vector<1x128xf32> to vector<8x128xf32>
    %376 = arith.addf %373, %375 : vector<8x128xf32>
    %cst_160 = arith.constant 0.000000e+00 : f32
    %377 = vector.broadcast %cst_160 : f32 to vector<8x128xf32>
    %378 = arith.subf %377, %376 : vector<8x128xf32>
    %379 = math.exp %378 : vector<8x128xf32>
    %cst_161 = arith.constant 1.000000e+00 : f32
    %380 = vector.broadcast %cst_161 : f32 to vector<8x128xf32>
    %381 = arith.addf %380, %379 : vector<8x128xf32>
    %cst_162 = arith.constant 1.000000e+00 : f32
    %382 = vector.broadcast %cst_162 : f32 to vector<8x128xf32>
    %383 = arith.divf %382, %381 : vector<8x128xf32>
    %c0_163 = arith.constant 0 : index
    %c0_164 = arith.constant 0 : index
    %384 = vector.load %arg8[%c0_163, %c0_164] : memref<8x128xf32, #tpu.memory_space<vmem>>, vector<8x128xf32>
    tpu.vector_store %arg8[%c0_163, %c0_164], %383 {strides = array<i32>} : memref<8x128xf32, #tpu.memory_space<vmem>>, vector<8x128xf32>,
    return
  }
  func.func @transform_0(%arg0: i32) -> (i32, i32) {
    %c0_i32 = arith.constant 0 : i32
    %c0_i32_0 = arith.constant 0 : i32
    %c0_i32_1 = arith.constant 0 : i32
    return %c0_i32, %c0_i32_0 : i32, i32
  }
  func.func @transform_1(%arg0: i32) -> (i32, i32) {
    %c0_i32 = arith.constant 0 : i32
    %c0_i32_0 = arith.constant 0 : i32
    %c0_i32_1 = arith.constant 0 : i32
    return %c0_i32, %c0_i32_0 : i32, i32
  }
  func.func @transform_2(%arg0: i32) -> (i32, i32, i32) {
    %c0_i32 = arith.constant 0 : i32
    %c0_i32_0 = arith.constant 0 : i32
    %c0_i32_1 = arith.constant 0 : i32
    %c0_i32_2 = arith.constant 0 : i32
    return %c0_i32, %c0_i32_0, %c0_i32_1 : i32, i32, i32
  }
  func.func @transform_3(%arg0: i32) -> (i32, i32, i32) {
    %c0_i32 = arith.constant 0 : i32
    %c0_i32_0 = arith.constant 0 : i32
    %c0_i32_1 = arith.constant 0 : i32
    %c0_i32_2 = arith.constant 0 : i32
    return %c0_i32, %c0_i32_0, %c0_i32_1 : i32, i32, i32
  }
  func.func @transform_4(%arg0: i32) -> (i32, i32, i32) {
    %c0_i32 = arith.constant 0 : i32
    %c0_i32_0 = arith.constant 0 : i32
    %c0_i32_1 = arith.constant 0 : i32
    %c0_i32_2 = arith.constant 0 : i32
    return %c0_i32, %c0_i32_0, %c0_i32_1 : i32, i32, i32
  }
  func.func @transform_5(%arg0: i32) -> (i32, i32) {
    %c0_i32 = arith.constant 0 : i32
    %c0_i32_0 = arith.constant 0 : i32
    %c0_i32_1 = arith.constant 0 : i32
    return %c0_i32, %c0_i32_0 : i32, i32
  }
  func.func @transform_6(%arg0: i32) -> (i32, i32) {
    %c0_i32 = arith.constant 0 : i32
    %c0_i32_0 = arith.constant 0 : i32
    %c0_i32_1 = arith.constant 0 : i32
    return %c0_i32, %c0_i32_0 : i32, i32
  }
  func.func @transform_7(%arg0: i32) -> (i32, i32) {
    %c0_i32 = arith.constant 0 : i32
    %c0_i32_0 = arith.constant 0 : i32
    %c0_i32_1 = arith.constant 0 : i32
    return %c0_i32, %c0_i32_0 : i32, i32
  }
}

</mosaic_0001>

<bundles_post_ra>
// kernel: tpu_custom_call.1
= control target key start
LH: loop header
LB: loop body
LE: loop exit
PB: predicated region body
PF: predicated region fallthrough
CT: control target
= control target key end

     0   :  { %12 = vsyncpa [#allocation3], 0  ;;  %s5351_s0 = inlined_call_operand.hbm [shape: f32[16,128], index: 0, kind: input, shape index: {}]   ;;  %s5352_s1 = inlined_call_operand.hbm [shape: f32[16,16], index: 1, kind: input, shape index: {}]   ;;  %s5353_s2 = inlined_call_operand.hbm [shape: f32[2,128,768], index: 2, kind: input, shape index: {}]   ;;  %s5354_s3 = inlined_call_operand.hbm [shape: f32[2,256,128], index: 3, kind: input, shape index: {}]   ;;  %s5355_s4 = inlined_call_operand.hbm [shape: f32[2,8,384], index: 4, kind: input, shape index: {}]   ;;  %s5356_s5 = inlined_call_operand.hbm [shape: f32[128,256], index: 5, kind: input, shape index: {}]   ;;  %s5357_s6 = inlined_call_operand.vmem [shape: f32[4,128], index: 6, kind: input, shape index: {}]   ;;  %s5358_s7 = inlined_call_operand.hbm [shape: f32[8,128], index: 7, kind: output, shape index: {}]  }
   0x1   :  { %13 = vsyncpa [#allocation6], 0 }
   0x2   :  { %14 = vsyncpa [#allocation9], 0 }
   0x3   :  { %15 = vsyncpa [#allocation12], 0 }
   0x4   :  { %16 = vsyncpa [#allocation4], 0  ;;  %s4791_s24 = smov [#allocation5]   ;;  %s4792_s26 = smov [#allocation8]  }
   0x5   :  { %s34_s25 = sshll.u32 %s4791_s24, 4  ;;  %s58_s27 = sshll.u32 %s4792_s26, 4  ;;  %s35_s25 = int_to_ptr.vmem [resolvable:$true] %s34_s25  ;;  %s4852_s27 = int_to_ptr.vmem [resolvable:$true] %s58_s27 }
   0x6   :  { %s4627_s30 = scalar_lea.hbm %s5352_s1, 256 }
   0x7   :  { %p4628_p0 = scmp.ne.s32.totalorder %s5352_s1, %s4627_s30  ;;  %p4631_p1 = scmp.lt.u32.totalorder %s4627_s30, %s5352_s1 }
   0x9   :  { %p4633_p2 = pnand %p4631_p1, %p4628_p0 }
   0xb   :  { %4636 = shalt.err (!%p4633_p2)
}
   0xc   :  { %s4637_s12 = scalar_lea.vmem %s35_s25, 256  ;;  %p4642_p4 = scmp.lt.s32.totalorder %s35_s25, %s35_s25 }
   0xd   :  { %p4638_p3 = scmp.ne.s32.totalorder %s35_s25, %s4637_s12  ;;  %p4643_p5 = scmp.lt.s32.totalorder %s4637_s12, %s4637_s12 }
   0xf   :  { %p4644_p6 = por %p4643_p5, %p4642_p4 }
  0x11   :  { %p4645_p7 = pnand %p4644_p6, %p4638_p3 }
  0x13   :  { %4648 = shalt.err (!%p4645_p7)
}
  0x14   :  { %s4793_s13 = smov 128   ;;  %s4794_s14 = smov 8  }
  0x15   :  { %40 = dma.hbm_to_vmem [thread:$0]  %s5352_s1, 256, %s35_s25, [#allocation6], %s4793_s13, %s4793_s13, %s4794_s14  }
  0x16   :  { %s4649_s19 = scalar_lea.hbm %s5354_s3, 8192 }
  0x17   :  { %p4650_p8 = scmp.ne.s32.totalorder %s5354_s3, %s4649_s19  ;;  %p4653_p9 = scmp.lt.u32.totalorder %s4649_s19, %s5354_s3 }
  0x19   :  { %p4655_p10 = pnand %p4653_p9, %p4650_p8 }
  0x1b   :  { %4658 = shalt.err (!%p4655_p10)
}
  0x1c   :  { %s4659_s24 = scalar_lea.vmem %s4852_s27, 8192  ;;  %p4664_p12 = scmp.lt.s32.totalorder %s4852_s27, %s4852_s27 }
  0x1d   :  { %p4660_p11 = scmp.ne.s32.totalorder %s4852_s27, %s4659_s24  ;;  %p4665_p13 = scmp.lt.s32.totalorder %s4659_s24, %s4659_s24 }
  0x1f   :  { %p4666_p0 = por %p4665_p13, %p4664_p12 }
  0x21   :  { %p4667_p1 = pnand %p4666_p0, %p4660_p11 }
  0x23   :  { %4670 = shalt.err (!%p4667_p1)
}
  0x24   :  { %64 = dma.hbm_to_vmem [thread:$0]  %s5354_s3, 8192, %s4852_s27, [#allocation9], %s4793_s13, %s4793_s13, %s4794_s14  }
  0x25   :  { %s4795_s26 = smov [#allocation2]   ;;  %s4796_s29 = smov [#allocation7]  }
  0x26   :  { %s22_s28 = sshll.u32 %s4795_s26, 4  ;;  %s46_s30 = sshll.u32 %s4796_s29, 4  ;;  %s23_s28 = int_to_ptr.vmem [resolvable:$true] %s22_s28  ;;  %s4889_s30 = int_to_ptr.vmem [resolvable:$true] %s46_s30 }
  0x27   :  { %s4671_s10 = scalar_lea.hbm %s5351_s0, 256 }
  0x28   :  { %p4672_p2 = scmp.ne.s32.totalorder %s5351_s0, %s4671_s10  ;;  %p4675_p3 = scmp.lt.u32.totalorder %s4671_s10, %s5351_s0 }
  0x2a   :  { %p4677_p4 = pnand %p4675_p3, %p4672_p2 }
  0x2c   :  { %4680 = shalt.err (!%p4677_p4)
}
  0x2d   :  { %s4681_s3 = scalar_lea.vmem %s23_s28, 256  ;;  %p4686_p6 = scmp.lt.s32.totalorder %s23_s28, %s23_s28 }
  0x2e   :  { %p4682_p5 = scmp.ne.s32.totalorder %s23_s28, %s4681_s3  ;;  %p4687_p7 = scmp.lt.s32.totalorder %s4681_s3, %s4681_s3 }
  0x30   :  { %p4688_p8 = por %p4687_p7, %p4686_p6 }
  0x32   :  { %p4689_p9 = pnand %p4688_p8, %p4682_p5 }
  0x34   :  { %4692 = shalt.err (!%p4689_p9)
}
  0x35   :  { %28 = dma.hbm_to_vmem [thread:$0]  %s5351_s0, 256, %s23_s28, [#allocation3], %s4793_s13, %s4793_s13, %s4794_s14  }
  0x36   :  { %s4693_s20 = scalar_lea.hbm %s5353_s2, 24576 }
  0x37   :  { %p4694_p10 = scmp.ne.s32.totalorder %s5353_s2, %s4693_s20  ;;  %p4697_p11 = scmp.lt.u32.totalorder %s4693_s20, %s5353_s2 }
  0x39   :  { %p4699_p12 = pnand %p4697_p11, %p4694_p10 }
  0x3b   :  { %4702 = shalt.err (!%p4699_p12)
}
  0x3c   :  { %s4703_s1 = scalar_lea.vmem %s4889_s30, 24576  ;;  %p4708_p0 = scmp.lt.s32.totalorder %s4889_s30, %s4889_s30 }
  0x3d   :  { %p4704_p13 = scmp.ne.s32.totalorder %s4889_s30, %s4703_s1  ;;  %p4709_p1 = scmp.lt.s32.totalorder %s4703_s1, %s4703_s1 }
  0x3f   :  { %p4710_p2 = por %p4709_p1, %p4708_p0 }
  0x41   :  { %p4711_p3 = pnand %p4710_p2, %p4704_p13 }
  0x43   :  { %4714 = shalt.err (!%p4711_p3)
}
  0x44   :  { %s4797_s0 = smov 768   ;;  %s4798_s13 = smov 48  }
  0x45   :  { %52 = dma.hbm_to_vmem [thread:$0]  %s5353_s2, 24576, %s4889_s30, [#allocation6], %s4797_s0, %s4797_s0, %s4798_s13  }
  0x46   :  { %s4799_s26 = smov [#allocation10]   ;;  %s4715_s9 = scalar_lea.hbm %s5355_s4, 768 }
  0x47   :  { %s70_s28 = sshll.u32 %s4799_s26, 4  ;;  %p4716_p4 = scmp.ne.s32.totalorder %s5355_s4, %s4715_s9  ;;  %s71_s28 = int_to_ptr.vmem [resolvable:$true] %s70_s28 }
  0x48   :  { %p4719_p5 = scmp.lt.u32.totalorder %s4715_s9, %s5355_s4 }
  0x4a   :  { %p4721_p6 = pnand %p4719_p5, %p4716_p4 }
  0x4c   :  { %4724 = shalt.err (!%p4721_p6)
}
  0x4d   :  { %s4725_s16 = scalar_lea.vmem %s71_s28, 768  ;;  %p4730_p8 = scmp.lt.s32.totalorder %s71_s28, %s71_s28 }
  0x4e   :  { %p4726_p7 = scmp.ne.s32.totalorder %s71_s28, %s4725_s16  ;;  %p4731_p9 = scmp.lt.s32.totalorder %s4725_s16, %s4725_s16 }
  0x50   :  { %p4732_p10 = por %p4731_p9, %p4730_p8 }
  0x52   :  { %p4733_p11 = pnand %p4732_p10, %p4726_p7 }
  0x54   :  { %4736 = shalt.err (!%p4733_p11)
}
  0x55   :  { %s4800_s2 = smov 384   ;;  %s4801_s30 = smov 24  }
  0x56   :  { %76 = dma.hbm_to_vmem [thread:$0]  %s5355_s4, 768, %s71_s28, [#allocation9], %s4800_s2, %s4800_s2, %s4801_s30  }
  0x57   :  { %s4802_s17 = smov [#allocation11]   ;;  %s4737_s21 = scalar_lea.hbm %s5356_s5, 4096 }
  0x58   :  { %s82_s18 = sshll.u32 %s4802_s17, 4  ;;  %p4738_p12 = scmp.ne.s32.totalorder %s5356_s5, %s4737_s21  ;;  %s83_s18 = int_to_ptr.vmem [resolvable:$true] %s82_s18 }
  0x59   :  { %p4741_p13 = scmp.lt.u32.totalorder %s4737_s21, %s5356_s5 }
  0x5b   :  { %p4743_p0 = pnand %p4741_p13, %p4738_p12 }
  0x5d   :  { %4746 = shalt.err (!%p4743_p0)
}
  0x5e   :  { %s4747_s0 = scalar_lea.vmem %s83_s18, 4096  ;;  %p4752_p2 = scmp.lt.s32.totalorder %s83_s18, %s83_s18 }
  0x5f   :  { %p4748_p1 = scmp.ne.s32.totalorder %s83_s18, %s4747_s0  ;;  %p4753_p3 = scmp.lt.s32.totalorder %s4747_s0, %s4747_s0 }
  0x61   :  { %p4754_p4 = por %p4753_p3, %p4752_p2 }
  0x63   :  { %p4755_p5 = pnand %p4754_p4, %p4748_p1 }
  0x65   :  { %4758 = shalt.err (!%p4755_p5)
}
  0x66   :  { %s4803_s4 = smov 256   ;;  %s4804_s13 = smov 16  }
  0x67   :  { %88 = dma.hbm_to_vmem [thread:$0]  %s5356_s5, 4096, %s83_s18, [#allocation12], %s4803_s4, %s4803_s4, %s4804_s13  }
  0x68   :  { %4781 = dma.done.wait [#allocation3], 256  }
  0x69   :  { %4782 = vsyncadd [#allocation3], 4294967040 }
  0x6a   :  { %4783 = dma.done.wait [#allocation6], 24832  }
  0x6b   :  { %4784 = vsyncadd [#allocation6], 4294942464 }
  0x6c   :  { %4785 = dma.done.wait [#allocation9], 8960  }
  0x6d   :  { %4786 = vsyncadd [#allocation9], 4294958336 }
  0x6e   :  { %4787 = dma.done.wait [#allocation12], 4096  }
  0x6f   :  { %4788 = vsyncadd [#allocation12], 4294963200  ;;  %v4947_v0 = vld [vmem:[#allocation2 + $0x8] sm:$0xff]  ;;  %v4949_v1 = vld [vmem:[#allocation2] sm:$0xff]  ;;  %v4805_v55 = vmov 0.0   ;;  %vm419_vm0 = vcmask 261120  }
  0x70   :  { %v155_v2 = vld [vmem:[#allocation7 + $0x8] sm:$0xff]  ;;  %117 = vadd.xlane.f32.xlu1 %v4947_v0  ;;  %115 = vadd.xlane.f32.xlu0 %v4949_v1  ;;  %v123_v3 = vmul.f32 %v4947_v0, %v4947_v0  ;;  %v122_v4 = vmul.f32 %v4949_v1, %v4949_v1  ;;  %v158_v5 = vld [vmem:[#allocation7 + $0x38] sm:$0xff]  ;;  %v154_v6 = vld [vmem:[#allocation7] sm:$0xff]  ;;  %vm511_vm2 = vcmask 130048   ;;  %s4806_s8 = smov 64   ;;  %s4807_s9 = smov 96  }
  0x71   :  { %v157_v7 = vld [vmem:[#allocation7 + $0x30] sm:$0xff]  ;;  %v3960_v8 = vpack.c.bf16 %v158_v5, %v155_v2  ;;  %v159_v11 = vld [vmem:[#allocation7 + $0x40] sm:$0xff]  ;;  %v161_v12 = vld [vmem:[#allocation7 + $0x68] sm:$0xff]  ;;  %331 = vmatprep.mubr.f32.mxu0 %v4805_v55  ;;  %s4808_s10 = smov 32   ;;  %vm1255_vm3 = vcmask 523264   ;;  %vm1258_vm4 = vcmask 785408  }
  0x72   :  { %v3962_v9 = vpack.c.bf16 %v157_v7, %v154_v6  ;;  %v156_v10 = vld [vmem:[#allocation7 + $0x10] sm:$0xff]  ;;  %v164_v14 = vld [vmem:[#allocation7 + $0x98] sm:$0xff]  ;;  %v160_v16 = vld [vmem:[#allocation7 + $0x60] sm:$0xff]  ;;  %vm4810_vm5 = vmmov 0   ;;  %vm3126_vm6 = vcmask 1040384   ;;  %vm3128_vm7 = vcmask 1041408  }
  0x73   :  { %v3992_v13 = vpack.c.bf16 %v159_v11, %v156_v10  ;;  %3961 = vmatprep.subr.bf16.mxu0 %v3960_v8  ;;  %v3964_v15 = vpack.c.bf16 %v164_v14, %v161_v12  ;;  %v163_v17 = vld [vmem:[#allocation7 + $0x90] sm:$0xff]  ;;  %v165_v20 = vld [vmem:[#allocation7 + $0xa0] sm:$0xff]  ;;  %v167_v22 = vld [vmem:[#allocation7 + $0xc8] sm:$0xff]  ;;  %s4811_s2 = smov [#allocation13]  }
  0x74   :  { %126 = vadd.xlane.f32.xlu1 %v123_v3  ;;  %124 = vadd.xlane.f32.xlu0 %v122_v4  ;;  %v162_v18 = vld [vmem:[#allocation7 + $0x70] sm:$0xff]  ;;  %v3966_v19 = vpack.c.bf16 %v163_v17, %v160_v16  ;;  %v170_v23 = vld [vmem:[#allocation7 + $0xf8] sm:$0xff]  ;;  %v166_v25 = vld [vmem:[#allocation7 + $0xc0] sm:$0xff]  ;;  %s3326_s30 = sshll.u32 %s4811_s2, 4  ;;  %s3327_s30 = int_to_ptr.vmem [resolvable:$true] %s3326_s30 }
  0x75   :  { %3963 = vmatpush1.bf16.msra.mxu0 %v3962_v9  ;;  %3993 = vmatprep.subr.bf16.mxu1 %v3992_v13  ;;  %v3996_v21 = vpack.c.bf16 %v165_v20, %v162_v18  ;;  %v3968_v24 = vpack.c.bf16 %v170_v23, %v167_v22  ;;  %v169_v26 = vld [vmem:[#allocation7 + $0xf0] sm:$0xff]  ;;  %v171_v29 = vld [vmem:[#allocation7 + $0x100] sm:$0xff]  ;;  %v173_v31 = vld [vmem:[#allocation7 + $0x128] sm:$0xff]  ;;  %s4759_s3 = scalar_lea.vmem %s3327_s30, 128  ;;  %p4764_p7 = scmp.lt.s32.totalorder %s3327_s30, %s3327_s30 }
  0x76   :  { %3995 = vmatpush3.bf16.msra.mxu1 %v3992_v13  ;;  %3965 = vmatprep.subr.bf16.mxu0 %v3964_v15  ;;  %v168_v27 = vld [vmem:[#allocation7 + $0xd0] sm:$0xff]  ;;  %v3970_v28 = vpack.c.bf16 %v169_v26, %v166_v25  ;;  %v176_v32 = vld [vmem:[#allocation7 + $0x158] sm:$0xff]  ;;  %v172_v34 = vld [vmem:[#allocation7 + $0x120] sm:$0xff]  ;;  %p4760_p6 = scmp.ne.s32.totalorder %s3327_s30, %s4759_s3  ;;  %p4765_p8 = scmp.lt.s32.totalorder %s4759_s3, %s4759_s3 }
  0x77   :  { %3997 = vmatprep.subr.bf16.mxu1 %v3996_v21  ;;  %v4000_v30 = vpack.c.bf16 %v171_v29, %v168_v27  ;;  %v3972_v33 = vpack.c.bf16 %v176_v32, %v173_v31  ;;  %v175_v35 = vld [vmem:[#allocation7 + $0x150] sm:$0xff]  ;;  %v177_v38 = vld [vmem:[#allocation7 + $0x160] sm:$0xff]  ;;  %v179_v40 = vld [vmem:[#allocation7 + $0x188] sm:$0xff] }
  0x78   :  { %v174_v36 = vld [vmem:[#allocation7 + $0x130] sm:$0xff]  ;;  %v3974_v37 = vpack.c.bf16 %v175_v35, %v172_v34  ;;  %v182_v41 = vld [vmem:[#allocation7 + $0x1b8] sm:$0xff]  ;;  %v178_v43 = vld [vmem:[#allocation7 + $0x180] sm:$0xff]  ;;  %p4766_p9 = por %p4765_p8, %p4764_p7 }
  0x79   :  { %3967 = vmatpush1.bf16.msra.mxu0 %v3966_v19  ;;  %v4004_v39 = vpack.c.bf16 %v177_v38, %v174_v36  ;;  %v3976_v42 = vpack.c.bf16 %v182_v41, %v179_v40  ;;  %v181_v44 = vld [vmem:[#allocation7 + $0x1b0] sm:$0xff]  ;;  %v183_v47 = vld [vmem:[#allocation7 + $0x1c0] sm:$0xff]  ;;  %v185_v48 = vld [vmem:[#allocation7 + $0x1e8] sm:$0xff] }
  0x7a   :  { %3999 = vmatpush3.bf16.msra.mxu1 %v3996_v21  ;;  %3969 = vmatprep.subr.bf16.mxu0 %v3968_v24  ;;  %v180_v45 = vld [vmem:[#allocation7 + $0x190] sm:$0xff]  ;;  %v3978_v46 = vpack.c.bf16 %v181_v44, %v178_v43  ;;  %v188_v49 = vld [vmem:[#allocation7 + $0x218] sm:$0xff]  ;;  %v184_v52 = vld [vmem:[#allocation7 + $0x1e0] sm:$0xff]  ;;  %p4767_p10 = pnand %p4766_p9, %p4760_p6 }
  0x7b   :  { %4001 = vmatprep.subr.bf16.mxu1 %v4000_v30  ;;  %v4008_v50 = vpack.c.bf16 %v183_v47, %v180_v45  ;;  %v3980_v51 = vpack.c.bf16 %v188_v49, %v185_v48  ;;  %v187_v53 = vld [vmem:[#allocation7 + $0x210] sm:$0xff]  ;;  %v189_v57 = vld [vmem:[#allocation7 + $0x220] sm:$0xff]  ;;  %v191_v58 = vld [vmem:[#allocation7 + $0x248] sm:$0xff] }
  0x7c   :  { %v186_v54 = vld [vmem:[#allocation7 + $0x1f0] sm:$0xff]  ;;  %v3982_v56 = vpack.c.bf16 %v187_v53, %v184_v52  ;;  %v194_v59 = vld [vmem:[#allocation7 + $0x278] sm:$0xff]  ;;  %v190_v62 = vld [vmem:[#allocation7 + $0x240] sm:$0xff] }
  0x7d   :  { %3971 = vmatpush1.bf16.msra.mxu0 %v3970_v28  ;;  %v4012_v60 = vpack.c.bf16 %v189_v57, %v186_v54  ;;  %v3984_v61 = vpack.c.bf16 %v194_v59, %v191_v58  ;;  %v193_v63 = vld [vmem:[#allocation7 + $0x270] sm:$0xff]  ;;  %v195_v3 = vld [vmem:[#allocation7 + $0x280] sm:$0xff]  ;;  %v197_v4 = vld [vmem:[#allocation7 + $0x2a8] sm:$0xff] }
  0x7e   :  { %4003 = vmatpush3.bf16.msra.mxu1 %v4000_v30  ;;  %3973 = vmatprep.subr.bf16.mxu0 %v3972_v33  ;;  %v192_v2 = vld [vmem:[#allocation7 + $0x250] sm:$0xff]  ;;  %v200_v5 = vld [vmem:[#allocation7 + $0x2d8] sm:$0xff]  ;;  %v3986_v7 = vpack.c.bf16 %v193_v63, %v190_v62  ;;  %v201_v9 = vld [vmem:[#allocation7 + $0x2e0] sm:$0xff] }
  0x7f   :  { %4005 = vmatprep.subr.bf16.mxu1 %v4004_v39  ;;  %v4016_v6 = vpack.c.bf16 %v195_v3, %v192_v2  ;;  %v198_v8 = vld [vmem:[#allocation7 + $0x2b0] sm:$0xff]  ;;  %v3988_v10 = vpack.c.bf16 %v200_v5, %v197_v4  ;;  %v196_v11 = vld [vmem:[#allocation7 + $0x2a0] sm:$0xff]  ;;  %vm4996_vm1 = vmpackc.low %vm419_vm0, %vm419_vm0 }
  0x80   :  { %v199_v12 = vld [vmem:[#allocation7 + $0x2d0] sm:$0xff]  ;;  %v4020_v13 = vpack.c.bf16 %v201_v9, %v198_v8  ;;  %v3339_v32 = vld [vmem:[%s5357_s6] ss:$0 sm:$0xff]  ;;  %v3340_v35 = vld [vmem:[%s5357_s6 + $0x1] ss:$0 sm:$0xff] }
  0x81   :  { %3975 = vmatpush1.bf16.msra.mxu0 %v3974_v37  ;;  %v3990_v14 = vpack.c.bf16 %v199_v12, %v196_v11  ;;  %v5010_v5 = vld [vmem:[#allocation5 + $0x8] sm:$0xff]  ;;  %v5012_v8 = vld [vmem:[#allocation5] sm:$0xff] }
  0x82   :  { %4007 = vmatpush3.bf16.msra.mxu1 %v4004_v39  ;;  %3977 = vmatprep.subr.bf16.mxu0 %v3976_v42  ;;  %v250_v42 = vld [vmem:[#allocation10] ss:$8 sm:$0x7] }
  0x83   :  { %4009 = vmatprep.subr.bf16.mxu1 %v4008_v50 }
  0x85   :  { %3979 = vmatpush1.bf16.msra.mxu0 %v3978_v46 }
  0x86   :  { %3981 = vmatprep.subr.bf16.mxu0 %v3980_v51  ;;  %4011 = vmatpush3.bf16.msra.mxu1 %v4008_v50 }
  0x87   :  { %4013 = vmatprep.subr.bf16.mxu1 %v4012_v60 }
  0x89   :  { %3983 = vmatpush1.bf16.msra.mxu0 %v3982_v56 }
  0x8a   :  { %3985 = vmatprep.subr.bf16.mxu0 %v3984_v61  ;;  %4015 = vmatpush3.bf16.msra.mxu1 %v4012_v60 }
  0x8b   :  { %4017 = vmatprep.subr.bf16.mxu1 %v4016_v6 }
  0x8d   :  { %3987 = vmatpush1.bf16.msra.mxu0 %v3986_v7 }
  0x8e   :  { %3989 = vmatprep.subr.bf16.mxu0 %v3988_v10  ;;  %4019 = vmatpush3.bf16.msra.mxu1 %v4016_v6 }
  0x8f   :  { %4021 = vmatprep.subr.bf16.mxu1 %v4020_v13 }
  0x91   :  { %3991 = vmatpush1.bf16.msra.mxu0 %v3990_v14 }
  0x92   :  { %4023 = vmatpush3.bf16.msra.mxu1 %v4020_v13 }
  0xfd   :  { %v118_v15 = vpop.xlane.xlu1 %117  ;;  %v116_v16 = vpop.xlane.xlu0 %115 }
  0xfe   :  { %v121_v17 = vmul.f32 0.0078125, %v118_v15  ;;  %v120_v18 = vmul.f32 0.0078125, %v116_v16 }
 0x100   :  { %v133_v19 = vmul.f32 %v121_v17, %v121_v17  ;;  %v132_v22 = vmul.f32 %v120_v18, %v120_v18  ;;  %v131_v29 = vsub.f32 %v4947_v0, %v121_v17  ;;  %v130_v31 = vsub.f32 %v4949_v1, %v120_v18 }
 0x101   :  { %v127_v20 = vpop.xlane.xlu1 %126  ;;  %v125_v21 = vpop.xlane.xlu0 %124  ;;  %v252_v0 = vlaneseq }
 0x102   :  { %v129_v23 = vmul.f32 0.0078125, %v127_v20  ;;  %v128_v24 = vmul.f32 0.0078125, %v125_v21 }
 0x103   :  { %v4975_v1 = vshrl.u32 %v252_v0, 7 }
 0x104   :  { %v135_v25 = vsub.f32 %v129_v23, %v133_v19  ;;  %v134_v26 = vsub.f32 %v128_v24, %v132_v22 }
 0x105   :  { %v4978_v41 = vsub.s32 0, %v4975_v1  ;;  %v262_v43 = vsub.s32 2, %v4975_v1  ;;  %v4983_v45 = vsub.s32 1, %v4975_v1 }
 0x106   :  { %v137_v27 = vadd.f32 1e-12, %v135_v25  ;;  %v136_v28 = vadd.f32 1e-12, %v134_v26 }
 0x107   :  { %v255_v44 = vrot.slane %v250_v42, %v4978_v41  ;;  %v263_v46 = vrot.slane %v250_v42, %v262_v43  ;;  %v259_v51 = vrot.slane %v250_v42, %v4983_v45 }
 0x108   :  { %4519 = vrsqrt.f32 %v137_v27 }
 0x109   :  { %4521 = vrsqrt.f32 %v136_v28 }
 0x112   :  { %v4520_v30 = vpop.eup %4519 }
 0x113   :  { %v4522_v33 = vpop.eup %4521  ;;  %v141_v34 = vmul.f32 %v4520_v30, %v131_v29 }
 0x114   :  { %v140_v36 = vmul.f32 %v4522_v33, %v130_v31 }
 0x115   :  { %v147_v37 = vmul.f32 %v3339_v32, %v141_v34 }
 0x116   :  { %v146_v38 = vmul.f32 %v3339_v32, %v140_v36 }
 0x117   :  { %v4966_v39 = vadd.f32 %v3340_v35, %v147_v37 }
 0x118   :  { %v4968_v40 = vadd.f32 %v3340_v35, %v146_v38 }
 0x11a   :  { %332 = vmatmul.mubr.f32.vlgmr.msra.gmra.mrb[0].mxu0 %v4968_v40  ;;  %3670 = vmatprep.mubr.f32.mxu1 %v4968_v40 }
 0x11b   :  { %3671 = vmatmul.mubr.f32.vlgmr.msra.gmra.mrb[0].mxu1 %v4966_v39  ;;  %337 = vmatprep.mubr.f32.mxu0 %v4805_v55 }
 0x11e   :  { %338 = vmatmul.mubr.f32.gmra.mrb[2].mxu0 %v4966_v39 }
 0x1ed   :  { %v333_v47 = vpop.f32.mrb[0].mxu0 }
 0x1ee   :  { %v4987_v48 = vadd.f32 %v333_v47, %v255_v44  ;;  %v335_v49 = vpop.f32.mrb[1].mxu0  ;;  %v3672_v50 = vpop.f32.mrb[0].mxu1 }
 0x1ef   :  { %v416_v52 = vadd.f32 %v3672_v50, %v263_v46  ;;  %v410_v53 = vpop.f32.mrb[1].mxu1  ;;  %v336_v60 = vadd.f32 %v335_v49, %v259_v51 }
 0x1f0   :  { %v411_v54 = vadd.f32 %v410_v53, %v263_v46  ;;  %3677 = vmatprep.mubr.msk.f32.mxu1 %vm419_vm0, %v4987_v48 }
 0x1f1   :  { %v339_v56 = vpop.f32.mrb[2].mxu0 }
 0x1f2   :  { %v341_v57 = vpop.f32.mrb[3].mxu0  ;;  %v4030_v58 = vpack.c.bf16 %v416_v52, %v411_v54  ;;  %v4992_v59 = vpack.i.bf16 %v416_v52, %v411_v54  ;;  %v5006_v3 = vadd.f32 %v339_v56, %v255_v44 }
 0x1f3   :  { %v342_v61 = vadd.f32 %v341_v57, %v259_v51 }
 0x1f5   :  { %v4024_v63 = vpack.c.bf16 %v342_v61, %v336_v60  ;;  %v5000_v2 = vpack.i.bf16 %v342_v61, %v336_v60 }
 0x1f7   :  { %4026 = vmatprep.subr.msk.bf16.mxu1 %vm4996_vm1, %v4024_v63 }
 0x1f8   :  { %4029 = vmatpush3.bf16.xpose.msk.msra.mxu1 %vm4996_vm1, %v4024_v63 }
 0x1f9   :  { %4031 = vmatprep.subr.bf16.mxu1 %v4030_v58 }
 0x1ff   :  { %3678 = vmatmul.mubr.msk.f32.vlgmr.msra.gmra.mrb[2].mxu1 %vm419_vm0, %v5006_v3 }
 0x200   :  { %4033 = vmatpush3.bf16.msra.mxu1 %v4030_v58 }
 0x2d2   :  { %v3679_v4 = vpop.f32.mrb[2].mxu1 }
 0x2d3   :  { %v508_v6 = vmul.f32 0.17677669, %v3679_v4  ;;  %v498_v7 = vpop.f32.mrb[3].mxu1 }
 0x2d4   :  { %v507_v9 = vmul.f32 0.17677669, %v498_v7 }
 0x2d5   :  { %v510_v10 = vadd.f32 %v508_v6, %v5010_v5 }
 0x2d6   :  { %v509_v11 = vadd.f32 %v507_v9, %v5012_v8 }
 0x2d7   :  { %v515_v12 = vsel %vm511_vm2, %v510_v10, -inf }
 0x2d8   :  { %516 = vmax.xlane.f32.xlu1 %v515_v12  ;;  %v512_v13 = vsel %vm511_vm2, %v509_v11, -inf }
 0x2d9   :  { %513 = vmax.xlane.f32.xlu0 %v512_v13 }
 0x365   :  { %v517_v14 = vpop.xlane.xlu1 %516 }
 0x366   :  { %v519_v15 = vsub.f32 %v510_v10, %v517_v14  ;;  %v514_v16 = vpop.xlane.xlu0 %513 }
 0x367   :  { %v518_v17 = vsub.f32 %v509_v11, %v514_v16 }
 0x368   :  { %v522_v18 = vmul.f32 1.442695, %v519_v15 }
 0x369   :  { %v520_v19 = vmul.f32 1.442695, %v518_v17 }
 0x36a   :  { %4523 = vpow2.f32 %v522_v18 }
 0x36b   :  { %4525 = vpow2.f32 %v520_v19 }
 0x374   :  { %v4524_v20 = vpop.eup %4523 }
 0x375   :  { %v4526_v21 = vpop.eup %4525  ;;  %v527_v22 = vsel %vm511_vm2, %v4524_v20, 0.0 }
 0x376   :  { %528 = vadd.xlane.f32.xlu1 %v527_v22  ;;  %v524_v23 = vsel %vm511_vm2, %v4526_v21, 0.0 }
 0x377   :  { %525 = vadd.xlane.f32.xlu0 %v524_v23 }
 0x387   :  { %4435 = vrot.lane.b32.xlu1 %v5000_v2, %s4806_s8 }
 0x38b   :  { %615 = vrot.lane.b32.xlu1 %v4987_v48, %s4807_s9 }
 0x38d   :  { %4430 = vrot.lane.b32.xlu0 %v5000_v2, %s4807_s9 }
 0x38f   :  { %617 = vrot.lane.b32.xlu1 %v5006_v3, %s4807_s9 }
 0x391   :  { %821 = vrot.lane.b32.xlu0 %v4987_v48, %s4806_s8 }
 0x393   :  { %823 = vrot.lane.b32.xlu1 %v5006_v3, %s4806_s8 }
 0x403   :  { %v529_v24 = vpop.xlane.xlu1 %528 }
 0x404   :  { %4527 = vrcp.f32 %v529_v24  ;;  %v526_v25 = vpop.xlane.xlu0 %525 }
 0x405   :  { %4529 = vrcp.f32 %v526_v25 }
 0x407   :  { %v4436_v30 = vpop.permute.xlu1 %4435 }
 0x408   :  { %v4431_v26 = vpop.permute.xlu0 %4430  ;;  %v4438_v33 = vunpack.i.h.bf16 %v4436_v30  ;;  %v4437_v34 = vunpack.i.l.bf16 %v4436_v30 }
 0x409   :  { %v4433_v27 = vunpack.i.h.bf16 %v4431_v26  ;;  %v4432_v28 = vunpack.i.l.bf16 %v4431_v26 }
 0x40a   :  { %v4044_v37 = vpack.c.bf16 %v4438_v33, %v4437_v34 }
 0x40b   :  { %v4034_v29 = vpack.c.bf16 %v4433_v27, %v4432_v28  ;;  %v616_v38 = vpop.permute.xlu1 %615 }
 0x40c   :  { %v822_v42 = vpop.permute.xlu0 %821 }
 0x40d   :  { %4036 = vmatprep.subr.msk.bf16.mxu1 %vm4996_vm1, %v4034_v29 }
 0x40e   :  { %v4528_v31 = vpop.eup %4527 }
 0x40f   :  { %v4530_v32 = vpop.eup %4529  ;;  %v533_v36 = vmul.f32 %v4528_v31, %v4524_v20  ;;  %v618_v0 = vpop.permute.xlu1 %617 }
 0x410   :  { %v532_v35 = vmul.f32 %v4530_v32, %v4526_v21 }
 0x412   :  { %3684 = vmatprep.mubr.msk.f32.mxu1 %vm511_vm2, %v532_v35 }
 0x413   :  { %3685 = vmatmul.mubr.msk.f32.vlgmr.msra.gmra.mrb[4].mxu1 %vm511_vm2, %v533_v36  ;;  %v824_v44 = vpop.permute.xlu1 %823 }
 0x414   :  { %4039 = vmatpush3.bf16.xpose.msk.msra.mxu1 %vm4996_vm1, %v4034_v29  ;;  %3691 = vmatprep.mubr.msk.f32.mxu1 %vm419_vm0, %v616_v38 }
 0x415   :  { %4046 = vmatprep.subr.msk.bf16.mxu1 %vm4996_vm1, %v4044_v37 }
 0x41b   :  { %3692 = vmatmul.mubr.msk.f32.vlgmr.msra.gmra.mrb[6].mxu1 %vm419_vm0, %v618_v0 }
 0x41c   :  { %4049 = vmatpush3.bf16.xpose.msk.msra.mxu1 %vm4996_vm1, %v4044_v37  ;;  %3705 = vmatprep.mubr.msk.f32.mxu1 %vm419_vm0, %v822_v42 }
 0x423   :  { %3706 = vmatmul.mubr.msk.f32.vlgmr.msra.gmra.mrb[8].mxu1 %vm419_vm0, %v824_v44 }
 0x4e6   :  { %v5046_v46 = vpop.f32.mrb[4].mxu1 }
 0x4e7   :  { %v5048_v47 = vpop.f32.mrb[5].mxu1 }
 0x4ee   :  { %v3693_v49 = vpop.f32.mrb[6].mxu1 }
 0x4ef   :  { %v697_v50 = vpop.f32.mrb[7].mxu1  ;;  %v707_v61 = vmul.f32 0.17677669, %v3693_v49 }
 0x4f0   :  { %v706_v20 = vmul.f32 0.17677669, %v697_v50 }
 0x4f1   :  { %v709_v63 = vadd.f32 %v707_v61, %v5010_v5 }
 0x4f2   :  { %v708_v21 = vadd.f32 %v706_v20, %v5012_v8 }
 0x4f3   :  { %v713_v4 = vsel %vm511_vm2, %v709_v63, -inf }
 0x4f4   :  { %v710_v22 = vsel %vm511_vm2, %v708_v21, -inf }
 0x4f6   :  { %v3707_v51 = vpop.f32.mrb[8].mxu1 }
 0x4f7   :  { %v913_v52 = vmul.f32 0.17677669, %v3707_v51  ;;  %v903_v53 = vpop.f32.mrb[9].mxu1 }
 0x4f8   :  { %v912_v54 = vmul.f32 0.17677669, %v903_v53 }
 0x4f9   :  { %v915_v56 = vadd.f32 %v913_v52, %v5010_v5 }
 0x4fa   :  { %v914_v57 = vadd.f32 %v912_v54, %v5012_v8 }
 0x4fb   :  { %v919_v58 = vsel %vm511_vm2, %v915_v56, -inf }
 0x4fc   :  { %920 = vmax.xlane.f32.xlu1 %v919_v58  ;;  %v916_v60 = vsel %vm511_vm2, %v914_v57, -inf }
 0x4fd   :  { %917 = vmax.xlane.f32.xlu0 %v916_v60 }
 0x50d   :  { %4445 = vrot.lane.b32.xlu1 %v5000_v2, %s4808_s10 }
 0x511   :  { %1025 = vrot.lane.b32.xlu1 %v4987_v48, %s4808_s10 }
 0x515   :  { %1027 = vrot.lane.b32.xlu1 %v5006_v3, %s4808_s10 }
 0x539   :  { %714 = vmax.xlane.f32.xlu1 %v713_v4 }
 0x589   :  { %v921_v6 = vpop.xlane.xlu1 %920 }
 0x58a   :  { %v923_v7 = vsub.f32 %v915_v56, %v921_v6  ;;  %v918_v9 = vpop.xlane.xlu0 %917 }
 0x58b   :  { %v922_v10 = vsub.f32 %v914_v57, %v918_v9 }
 0x58c   :  { %v926_v11 = vmul.f32 1.442695, %v923_v7 }
 0x58d   :  { %v924_v12 = vmul.f32 1.442695, %v922_v10  ;;  %v4446_v14 = vpop.permute.xlu1 %4445 }
 0x58e   :  { %4531 = vpow2.f32 %v926_v11  ;;  %v4448_v28 = vunpack.i.h.bf16 %v4446_v14  ;;  %v4447_v29 = vunpack.i.l.bf16 %v4446_v14 }
 0x58f   :  { %4533 = vpow2.f32 %v924_v12 }
 0x590   :  { %v4054_v33 = vpack.c.bf16 %v4448_v28, %v4447_v29 }
 0x591   :  { %v1026_v15 = vpop.permute.xlu1 %1025 }
 0x595   :  { %v1028_v16 = vpop.permute.xlu1 %1027 }
 0x598   :  { %v4532_v2 = vpop.eup %4531 }
 0x599   :  { %v931_v48 = vsel %vm511_vm2, %v4532_v2, 0.0  ;;  %v4534_v13 = vpop.eup %4533 }
 0x59a   :  { %932 = vadd.xlane.f32.xlu0 %v931_v48  ;;  %v928_v3 = vsel %vm511_vm2, %v4534_v13, 0.0 }
 0x59e   :  { %929 = vadd.xlane.f32.xlu0 %v928_v3 }
 0x5b4   :  { %4440 = vrot.lane.b32.xlu0 %v4992_v59, %s4806_s8 }
 0x5c6   :  { %v715_v17 = vpop.xlane.xlu1 %714 }
 0x5c7   :  { %v717_v18 = vsub.f32 %v709_v63, %v715_v17 }
 0x5c9   :  { %v720_v19 = vmul.f32 1.442695, %v717_v18 }
 0x5cb   :  { %4535 = vpow2.f32 %v720_v19 }
 0x5d3   :  { %711 = vmax.xlane.f32.xlu0 %v710_v22 }
 0x5d5   :  { %v5068_v23 = vpop.eup %4535 }
 0x5d6   :  { %v725_v24 = vsel %vm511_vm2, %v5068_v23, 0.0 }
 0x5d7   :  { %726 = vadd.xlane.f32.xlu1 %v725_v24 }
 0x627   :  { %v933_v25 = vpop.xlane.xlu0 %932 }
 0x628   :  { %4537 = vrcp.f32 %v933_v25 }
 0x62b   :  { %v930_v26 = vpop.xlane.xlu0 %929 }
 0x62c   :  { %4539 = vrcp.f32 %v930_v26 }
 0x62f   :  { %v4441_v27 = vpop.permute.xlu0 %4440 }
 0x630   :  { %v4443_v30 = vunpack.i.h.bf16 %v4441_v27  ;;  %v4442_v31 = vunpack.i.l.bf16 %v4441_v27 }
 0x632   :  { %v4050_v32 = vpack.c.bf16 %v4443_v30, %v4442_v31  ;;  %v4538_v34 = vpop.eup %4537  ;;  %v202_v31 = vld [vmem:[#allocation7 + $0x18] sm:$0xff] }
 0x633   :  { %v937_v37 = vmul.f32 %v4538_v34, %v4532_v2 }
 0x634   :  { %4051 = vmatprep.subr.bf16.mxu1 %v4050_v32 }
 0x635   :  { %4053 = vmatpush3.bf16.msra.mxu1 %v4050_v32  ;;  %v203_v32 = vld [vmem:[#allocation7 + $0x48] sm:$0xff] }
 0x636   :  { %v4540_v35 = vpop.eup %4539  ;;  %4056 = vmatprep.subr.msk.bf16.mxu1 %vm4996_vm1, %v4054_v33  ;;  %v4064_v34 = vpack.c.bf16 %v203_v32, %v202_v31 }
 0x637   :  { %v936_v36 = vmul.f32 %v4540_v35, %v4534_v13  ;;  %v205_v35 = vld [vmem:[#allocation7 + $0xa8] sm:$0xff] }
 0x639   :  { %3712 = vmatprep.mubr.msk.f32.mxu1 %vm511_vm2, %v936_v36 }
 0x63a   :  { %3713 = vmatmul.mubr.msk.f32.vlgmr.msra.gmra.mrb[10].mxu1 %vm511_vm2, %v937_v37  ;;  %v206_v37 = vld [vmem:[#allocation7 + $0xd8] sm:$0xff] }
 0x63b   :  { %3719 = vmatprep.mubr.msk.f32.mxu1 %vm419_vm0, %v1026_v15 }
 0x63e   :  { %4059 = vmatpush3.bf16.xpose.msk.msra.mxu1 %vm4996_vm1, %v4054_v33  ;;  %v204_v33 = vld [vmem:[#allocation7 + $0x78] sm:$0xff] }
 0x63f   :  { %v4068_v36 = vpack.c.bf16 %v205_v35, %v204_v33 }
 0x645   :  { %3720 = vmatmul.mubr.msk.f32.vlgmr.msra.gmra.mrb[12].mxu1 %vm419_vm0, %v1028_v16 }
 0x646   :  { %1448 = vmatprep.mubr.f32.mxu1 %v4805_v55 }
 0x660   :  { %v712_v0 = vpop.xlane.xlu0 %711 }
 0x661   :  { %v716_v49 = vsub.f32 %v708_v21, %v712_v0 }
 0x663   :  { %v718_v50 = vmul.f32 1.442695, %v716_v49  ;;  %v208_v49 = vld [vmem:[#allocation7 + $0x138] sm:$0xff] }
 0x664   :  { %v727_v14 = vpop.xlane.xlu1 %726 }
 0x665   :  { %4541 = vpow2.f32 %v718_v50  ;;  %v209_v50 = vld [vmem:[#allocation7 + $0x168] sm:$0xff] }
 0x66f   :  { %v4542_v61 = vpop.eup %4541 }
 0x670   :  { %v722_v63 = vsel %vm511_vm2, %v4542_v61, 0.0 }
 0x70d   :  { %v5081_v38 = vpop.f32.mrb[10].mxu1 }
 0x70e   :  { %v5083_v42 = vpop.f32.mrb[11].mxu1 }
 0x70f   :  { %v4464_v44 = vpack.i.bf16 %v5081_v38, %v5083_v42 }
 0x718   :  { %v3721_v51 = vpop.f32.mrb[12].mxu1 }
 0x719   :  { %v1107_v52 = vpop.f32.mrb[13].mxu1  ;;  %v1117_v53 = vmul.f32 0.17677669, %v3721_v51  ;;  %v4076_v51 = vpack.c.bf16 %v209_v50, %v208_v49  ;;  %v229_v50 = vld [vmem:[#allocation7 + $0x118] sm:$0xff] }
 0x71a   :  { %v1116_v54 = vmul.f32 0.17677669, %v1107_v52  ;;  %v210_v52 = vld [vmem:[#allocation7 + $0x198] sm:$0xff] }
 0x71b   :  { %v1119_v58 = vadd.f32 %v1117_v53, %v5010_v5  ;;  %v211_v53 = vld [vmem:[#allocation7 + $0x1c8] sm:$0xff] }
 0x71c   :  { %v1118_v56 = vadd.f32 %v1116_v54, %v5012_v8  ;;  %v4080_v54 = vpack.c.bf16 %v211_v53, %v210_v52  ;;  %v228_v52 = vld [vmem:[#allocation7 + $0x110] sm:$0xff] }
 0x71d   :  { %v1123_v60 = vsel %vm511_vm2, %v1119_v58, -inf }
 0x71e   :  { %v1120_v57 = vsel %vm511_vm2, %v1118_v56, -inf }
 0x71f   :  { %1121 = vmax.xlane.f32.xlu0 %v1120_v57  ;;  %v213_v57 = vld [vmem:[#allocation7 + $0x228] sm:$0xff] }
 0x723   :  { %1124 = vmax.xlane.f32.xlu0 %v1123_v60  ;;  %v214_v60 = vld [vmem:[#allocation7 + $0x258] sm:$0xff] }
 0x727   :  { %723 = vadd.xlane.f32.xlu0 %v722_v63 }
 0x7ac   :  { %v1122_v4 = vpop.xlane.xlu0 %1121 }
 0x7ad   :  { %v1126_v6 = vsub.f32 %v1118_v56, %v1122_v4  ;;  %v212_v56 = vld [vmem:[#allocation7 + $0x1f8] sm:$0xff] }
 0x7ae   :  { %v216_v4 = vld [vmem:[#allocation7 + $0x2b8] sm:$0xff] }
 0x7af   :  { %v1128_v7 = vmul.f32 1.442695, %v1126_v6  ;;  %v217_v6 = vld [vmem:[#allocation7 + $0x2e8] sm:$0xff] }
 0x7b0   :  { %v1125_v9 = vpop.xlane.xlu0 %1124 }
 0x7b1   :  { %4543 = vpow2.f32 %v1128_v7  ;;  %v1127_v10 = vsub.f32 %v1119_v58, %v1125_v9  ;;  %v4084_v58 = vpack.c.bf16 %v213_v57, %v212_v56  ;;  %v4092_v7 = vpack.c.bf16 %v217_v6, %v216_v4  ;;  %v233_v56 = vld [vmem:[#allocation7 + $0x178] sm:$0xff] }
 0x7b2   :  { %v237_v4 = vld [vmem:[#allocation7 + $0x1d8] sm:$0xff] }
 0x7b3   :  { %v1130_v11 = vmul.f32 1.442695, %v1127_v10 }
 0x7b4   :  { %v724_v8 = vpop.xlane.xlu0 %723 }
 0x7b5   :  { %4545 = vpow2.f32 %v1130_v11 }
 0x7b6   :  { %4547 = vrcp.f32 %v724_v8 }
 0x7b7   :  { %4549 = vrcp.f32 %v727_v14 }
 0x7bb   :  { %v4544_v12 = vpop.eup %4543 }
 0x7bc   :  { %v1132_v5 = vsel %vm511_vm2, %v4544_v12, 0.0 }
 0x7bd   :  { %1133 = vadd.xlane.f32.xlu0 %v1132_v5 }
 0x7bf   :  { %v4546_v2 = vpop.eup %4545 }
 0x7c0   :  { %v4548_v48 = vpop.eup %4547  ;;  %v1135_v13 = vsel %vm511_vm2, %v4546_v2, 0.0 }
 0x7c1   :  { %1136 = vadd.xlane.f32.xlu1 %v1135_v13  ;;  %v730_v3 = vmul.f32 %v4548_v48, %v4542_v61  ;;  %v4550_v21 = vpop.eup %4549  ;;  %v215_v61 = vld [vmem:[#allocation7 + $0x288] sm:$0xff] }
 0x7c2   :  { %v731_v27 = vmul.f32 %v4550_v21, %v5068_v23  ;;  %v207_v23 = vld [vmem:[#allocation7 + $0x108] sm:$0xff]  ;;  %v4088_v63 = vpack.c.bf16 %v215_v61, %v214_v60  ;;  %v232_v60 = vld [vmem:[#allocation7 + $0x170] sm:$0xff] }
 0x7c3   :  { %3698 = vmatprep.mubr.msk.f32.mxu0 %vm511_vm2, %v730_v3  ;;  %v4072_v0 = vpack.c.bf16 %v207_v23, %v206_v37  ;;  %v222_v23 = vld [vmem:[#allocation7 + $0x80] sm:$0xff] }
 0x7d2   :  { %4455 = vrot.lane.b32.xlu1 %v4992_v59, %s4808_s10 }
 0x7d3   :  { %4450 = vrot.lane.b32.xlu0 %v4992_v59, %s4807_s9 }
 0x84a   :  { %v1134_v15 = vpop.xlane.xlu0 %1133 }
 0x84b   :  { %4551 = vrcp.f32 %v1134_v15 }
 0x84e   :  { %v1137_v16 = vpop.xlane.xlu1 %1136  ;;  %v4451_v17 = vpop.permute.xlu0 %4450 }
 0x84f   :  { %4553 = vrcp.f32 %v1137_v16  ;;  %v4453_v18 = vunpack.i.h.bf16 %v4451_v17  ;;  %v4452_v19 = vunpack.i.l.bf16 %v4451_v17 }
 0x851   :  { %v4040_v20 = vpack.c.bf16 %v4453_v18, %v4452_v19 }
 0x852   :  { %v4456_v22 = vpop.permute.xlu1 %4455 }
 0x853   :  { %v4458_v24 = vunpack.i.h.bf16 %v4456_v22  ;;  %v4457_v25 = vunpack.i.l.bf16 %v4456_v22  ;;  %4041 = vmatprep.subr.bf16.mxu0 %v4040_v20  ;;  %v219_v22 = vld [vmem:[#allocation7 + $0x28] sm:$0xff] }
 0x854   :  { %4043 = vmatpush3.bf16.msra.mxu0 %v4040_v20 }
 0x855   :  { %v4552_v26 = vpop.eup %4551  ;;  %v4060_v59 = vpack.c.bf16 %v4458_v24, %v4457_v25  ;;  %v221_v24 = vld [vmem:[#allocation7 + $0x58] sm:$0xff]  ;;  %v218_v25 = vld [vmem:[#allocation7 + $0x20] sm:$0xff] }
 0x856   :  { %v1140_v28 = vmul.f32 %v4552_v26, %v4544_v12  ;;  %v4096_v26 = vpack.c.bf16 %v221_v24, %v219_v22  ;;  %v1514_v22 = vld [vmem:[#allocation8 + $0x88] sm:$0xff]  ;;  %v1497_v24 = vld [vmem:[#allocation8] sm:$0xff] }
 0x857   :  { %3699 = vmatmul.mubr.msk.f32.vlgmr.msra.gmra.mrb[4].mxu0 %vm511_vm2, %v731_v27  ;;  %4061 = vmatprep.subr.bf16.mxu0 %v4060_v59  ;;  %v223_v27 = vld [vmem:[#allocation7 + $0x88] sm:$0xff] }
 0x858   :  { %4063 = vmatpush3.bf16.msra.mxu0 %v4060_v59  ;;  %3726 = vmatprep.mubr.msk.f32.mxu0 %vm511_vm2, %v1140_v28  ;;  %v225_v59 = vld [vmem:[#allocation7 + $0xb8] sm:$0xff] }
 0x859   :  { %v4554_v29 = vpop.eup %4553  ;;  %4065 = vmatprep.subr.bf16.mxu0 %v4064_v34  ;;  %4097 = vmatprep.subr.bf16.mxu1 %v4096_v26  ;;  %v1498_v26 = vld [vmem:[#allocation8 + $0x8] sm:$0xff] }
 0x85a   :  { %v1141_v30 = vmul.f32 %v4554_v29, %v4546_v2  ;;  %v4100_v29 = vpack.c.bf16 %v225_v59, %v223_v27 }
 0x85c   :  { %3727 = vmatmul.mubr.msk.f32.vlgmr.msra.gmra.mrb[6].mxu0 %vm511_vm2, %v1141_v30 }
 0x85d   :  { %4067 = vmatpush3.bf16.msra.mxu0 %v4064_v34 }
 0x85e   :  { %4069 = vmatprep.subr.bf16.mxu0 %v4068_v36 }
 0x861   :  { %4071 = vmatpush3.bf16.msra.mxu0 %v4068_v36 }
 0x862   :  { %4073 = vmatprep.subr.bf16.mxu0 %v4072_v0 }
 0x865   :  { %4075 = vmatpush3.bf16.msra.mxu0 %v4072_v0  ;;  %v224_v0 = vld [vmem:[#allocation7 + $0xb0] sm:$0xff] }
 0x866   :  { %4077 = vmatprep.subr.bf16.mxu0 %v4076_v51  ;;  %v4102_v49 = vpack.c.bf16 %v224_v0, %v222_v23 }
 0x869   :  { %4079 = vmatpush3.bf16.msra.mxu0 %v4076_v51  ;;  %v226_v51 = vld [vmem:[#allocation7 + $0xe0] sm:$0xff] }
 0x86a   :  { %4081 = vmatprep.subr.bf16.mxu0 %v4080_v54  ;;  %v4106_v53 = vpack.c.bf16 %v228_v52, %v226_v51  ;;  %v1340_v52 = vld [vmem:[#allocation10 + $0x3] ss:$0 sm:$0xff] }
 0x86d   :  { %4083 = vmatpush3.bf16.msra.mxu0 %v4080_v54  ;;  %v231_v54 = vld [vmem:[#allocation7 + $0x148] sm:$0xff] }
 0x86e   :  { %4085 = vmatprep.subr.bf16.mxu0 %v4084_v58  ;;  %v4108_v57 = vpack.c.bf16 %v233_v56, %v231_v54 }
 0x871   :  { %4087 = vmatpush3.bf16.msra.mxu0 %v4084_v58  ;;  %v230_v58 = vld [vmem:[#allocation7 + $0x140] sm:$0xff] }
 0x872   :  { %4089 = vmatprep.subr.bf16.mxu0 %v4088_v63  ;;  %v4110_v61 = vpack.c.bf16 %v232_v60, %v230_v58 }
 0x875   :  { %4091 = vmatpush3.bf16.msra.mxu0 %v4088_v63  ;;  %v235_v63 = vld [vmem:[#allocation7 + $0x1a8] sm:$0xff] }
 0x876   :  { %4093 = vmatprep.subr.bf16.mxu0 %v4092_v7  ;;  %v4112_v6 = vpack.c.bf16 %v237_v4, %v235_v63  ;;  %v1516_v63 = vld [vmem:[#allocation8 + $0x98] sm:$0xff] }
 0x879   :  { %4095 = vmatpush3.bf16.msra.mxu0 %v4092_v7  ;;  %v234_v7 = vld [vmem:[#allocation7 + $0x1a0] sm:$0xff] }
 0x92a   :  { %v3700_v9 = vpop.f32.mrb[4].mxu0 }
 0x92b   :  { %v812_v10 = vpop.f32.mrb[5].mxu0 }
 0x92c   :  { %v4459_v11 = vpack.i.bf16 %v3700_v9, %v812_v10  ;;  %v236_v9 = vld [vmem:[#allocation7 + $0x1d0] sm:$0xff] }
 0x92d   :  { %v4114_v10 = vpack.c.bf16 %v236_v9, %v234_v7  ;;  %v1517_v9 = vld [vmem:[#allocation8 + $0xa0] sm:$0xff] }
 0x92e   :  { %4460 = vrot.lane.b32.xlu1 %v4459_v11, %s4808_s10  ;;  %v239_v11 = vld [vmem:[#allocation7 + $0x208] sm:$0xff] }
 0x92f   :  { %v3728_v8 = vpop.f32.mrb[6].mxu0 }
 0x930   :  { %v1220_v12 = vpop.f32.mrb[7].mxu0 }
 0x931   :  { %v4469_v5 = vpack.i.bf16 %v3728_v8, %v1220_v12  ;;  %v241_v8 = vld [vmem:[#allocation7 + $0x238] sm:$0xff] }
 0x932   :  { %4465 = vrot.lane.b32.xlu1 %v4464_v44, %s4806_s8  ;;  %v4116_v12 = vpack.c.bf16 %v241_v8, %v239_v11  ;;  %v1501_v8 = vld [vmem:[#allocation8 + $0x20] sm:$0xff] }
 0x933   :  { %4470 = vrot.lane.b32.xlu0 %v4469_v5, %s4807_s9  ;;  %v238_v5 = vld [vmem:[#allocation7 + $0x200] sm:$0xff] }
 0x9a0   :  { %v4461_v2 = vpop.permute.xlu1 %4460 }
 0x9a1   :  { %v4463_v48 = vunpack.i.h.bf16 %v4461_v2  ;;  %v4462_v13 = vunpack.i.l.bf16 %v4461_v2  ;;  %v240_v2 = vld [vmem:[#allocation7 + $0x230] sm:$0xff] }
 0x9a3   :  { %v1254_v17 = vsel %vm419_vm0, %v5046_v46, %v4463_v48  ;;  %v1253_v38 = vsel %vm419_vm0, %v5048_v47, %v4462_v13  ;;  %v220_v46 = vld [vmem:[#allocation7 + $0x50] sm:$0xff]  ;;  %v1261_v47 = vld [vmem:[#allocation10 + $0x1] ss:$0 sm:$0xff]  ;;  %v243_v48 = vld [vmem:[#allocation7 + $0x268] sm:$0xff]  ;;  %v4118_v13 = vpack.c.bf16 %v240_v2, %v238_v5 }
 0x9a4   :  { %v4466_v3 = vpop.permute.xlu1 %4465  ;;  %v4098_v28 = vpack.c.bf16 %v220_v46, %v218_v25  ;;  %v4130_v46 = vpack.c.bf16 %v1498_v26, %v1497_v24  ;;  %v1519_v2 = vld [vmem:[#allocation8 + $0xb0] sm:$0xff]  ;;  %v1508_v24 = vld [vmem:[#allocation8 + $0x58] sm:$0xff]  ;;  %v1526_v26 = vld [vmem:[#allocation8 + $0xe8] sm:$0xff] }
 0x9a5   :  { %v4468_v14 = vunpack.i.h.bf16 %v4466_v3  ;;  %v4467_v15 = vunpack.i.l.bf16 %v4466_v3  ;;  %v4471_v16 = vpop.permute.xlu0 %4470  ;;  %v245_v3 = vld [vmem:[#allocation7 + $0x298] sm:$0xff] }
 0x9a6   :  { %v4473_v18 = vunpack.i.h.bf16 %v4471_v16  ;;  %v4472_v19 = vunpack.i.l.bf16 %v4471_v16  ;;  %4099 = vmatpush1.bf16.msra.mxu1 %v4098_v28  ;;  %v4120_v16 = vpack.c.bf16 %v245_v3, %v243_v48  ;;  %v1520_v48 = vld [vmem:[#allocation8 + $0xb8] sm:$0xff]  ;;  %v1503_v3 = vld [vmem:[#allocation8 + $0x30] sm:$0xff] }
 0x9a7   :  { %v1256_v42 = vsel %vm1255_vm3, %v1253_v38, %v4467_v15  ;;  %v1257_v44 = vsel %vm1255_vm3, %v1254_v17, %v4468_v14  ;;  %4101 = vmatprep.subr.bf16.mxu1 %v4100_v29  ;;  %v242_v14 = vld [vmem:[#allocation7 + $0x260] sm:$0xff]  ;;  %v244_v15 = vld [vmem:[#allocation7 + $0x290] sm:$0xff]  ;;  %v247_v17 = vld [vmem:[#allocation7 + $0x2c8] sm:$0xff] }
 0x9a8   :  { %v1259_v20 = vsel %vm1258_vm4, %v1256_v42, %v4472_v19  ;;  %v1260_v21 = vsel %vm1258_vm4, %v1257_v44, %v4473_v18  ;;  %v249_v18 = vld [vmem:[#allocation7 + $0x2f8] sm:$0xff]  ;;  %v4122_v19 = vpack.c.bf16 %v244_v15, %v242_v14  ;;  %v246_v42 = vld [vmem:[#allocation7 + $0x2c0] sm:$0xff]  ;;  %v248_v44 = vld [vmem:[#allocation7 + $0x2f0] sm:$0xff] }
 0x9a9   :  { %3761 = vmatprep.mubr.f32.mxu0 %v1259_v20  ;;  %v4124_v38 = vpack.c.bf16 %v249_v18, %v247_v17  ;;  %v4126_v20 = vpack.c.bf16 %v248_v44, %v246_v42  ;;  %v1504_v14 = vld [vmem:[#allocation8 + $0x38] sm:$0xff]  ;;  %v1522_v17 = vld [vmem:[#allocation8 + $0xc8] sm:$0xff]  ;;  %v1505_v18 = vld [vmem:[#allocation8 + $0x40] sm:$0xff] }
 0x9aa   :  { %3762 = vmatmul.mubr.f32.vlgmr.msra.gmra.mrb[8].mxu0 %v1260_v21  ;;  %4103 = vmatpush1.bf16.msra.mxu1 %v4102_v49  ;;  %v1513_v21 = vld [vmem:[#allocation8 + $0x80] sm:$0xff]  ;;  %v4142_v15 = vpack.c.bf16 %v1504_v14, %v1503_v3  ;;  %v1523_v42 = vld [vmem:[#allocation8 + $0xd0] sm:$0xff]  ;;  %v1524_v44 = vld [vmem:[#allocation8 + $0xd8] sm:$0xff] }
 0x9ab   :  { %v4128_v25 = vpack.c.bf16 %v1514_v22, %v1513_v21  ;;  %v4148_v21 = vpack.c.bf16 %v1524_v44, %v1523_v42  ;;  %v1507_v22 = vld [vmem:[#allocation8 + $0x50] sm:$0xff] }
 0x9ad   :  { %4129 = vmatprep.subr.bf16.mxu0 %v4128_v25  ;;  %v1525_v25 = vld [vmem:[#allocation8 + $0xe0] sm:$0xff] }
 0x9ae   :  { %4131 = vmatpush3.bf16.msra.mxu0 %v4130_v46  ;;  %v4150_v46 = vpack.c.bf16 %v1508_v24, %v1507_v22 }
 0xa7d   :  { %v3763_v30 = vpop.f32.mrb[8].mxu0 }
 0xa7e   :  { %v1334_v31 = vadd.f32 %v3763_v30, %v1261_v47  ;;  %v1328_v32 = vpop.f32.mrb[9].mxu0 }
 0xa7f   :  { %v1329_v33 = vadd.f32 %v1328_v32, %v1261_v47 }
 0xa80   :  { %v5118_v34 = vadd.f32 %v1334_v31, %v4966_v39  ;;  %v227_v39 = vld [vmem:[#allocation7 + $0xe8] sm:$0xff] }
 0xa81   :  { %v5121_v35 = vadd.f32 %v1329_v33, %v4968_v40  ;;  %v4104_v40 = vpack.c.bf16 %v229_v50, %v227_v39 }
 0xa82   :  { %1343 = vadd.xlane.f32.xlu0 %v5118_v34  ;;  %v1348_v37 = vmul.f32 %v5118_v34, %v5118_v34 }
 0xa83   :  { %1341 = vadd.xlane.f32.xlu1 %v5121_v35  ;;  %v1347_v36 = vmul.f32 %v5121_v35, %v5121_v35  ;;  %4105 = vmatprep.subr.bf16.mxu1 %v4104_v40  ;;  %v1339_v40 = vld [vmem:[#allocation10 + $0x2] ss:$0 sm:$0xff] }
 0xa84   :  { %4107 = vmatpush1.bf16.msra.mxu1 %v4106_v53 }
 0xa85   :  { %4109 = vmatprep.subr.bf16.mxu1 %v4108_v57 }
 0xa86   :  { %1349 = vadd.xlane.f32.xlu0 %v1347_v36 }
 0xa88   :  { %4111 = vmatpush1.bf16.msra.mxu1 %v4110_v61 }
 0xa89   :  { %4113 = vmatprep.subr.bf16.mxu1 %v4112_v6  ;;  %v1500_v6 = vld [vmem:[#allocation8 + $0x18] sm:$0xff] }
 0xa8a   :  { %1351 = vadd.xlane.f32.xlu0 %v1348_v37 }
 0xa8c   :  { %4115 = vmatpush1.bf16.msra.mxu1 %v4114_v10  ;;  %v1518_v10 = vld [vmem:[#allocation8 + $0xa8] sm:$0xff] }
 0xa8d   :  { %4117 = vmatprep.subr.bf16.mxu1 %v4116_v12  ;;  %v4136_v11 = vpack.c.bf16 %v1518_v10, %v1517_v9  ;;  %v1502_v12 = vld [vmem:[#allocation8 + $0x28] sm:$0xff] }
 0xa8e   :  { %v4138_v5 = vpack.c.bf16 %v1502_v12, %v1501_v8 }
 0xa90   :  { %4119 = vmatpush1.bf16.msra.mxu1 %v4118_v13  ;;  %v4140_v13 = vpack.c.bf16 %v1520_v48, %v1519_v2 }
 0xa91   :  { %4121 = vmatprep.subr.bf16.mxu1 %v4120_v16  ;;  %v1521_v16 = vld [vmem:[#allocation8 + $0xc0] sm:$0xff] }
 0xa94   :  { %4123 = vmatpush1.bf16.msra.mxu1 %v4122_v19  ;;  %v4144_v19 = vpack.c.bf16 %v1522_v17, %v1521_v16 }
 0xa95   :  { %4125 = vmatprep.subr.bf16.mxu1 %v4124_v38  ;;  %v1506_v38 = vld [vmem:[#allocation8 + $0x48] sm:$0xff] }
 0xa98   :  { %4127 = vmatpush1.bf16.msra.mxu1 %v4126_v20  ;;  %v4146_v20 = vpack.c.bf16 %v1506_v38, %v1505_v18 }
 0xb0f   :  { %v1344_v27 = vpop.xlane.xlu0 %1343 }
 0xb10   :  { %v1342_v59 = vpop.xlane.xlu1 %1341  ;;  %v1346_v30 = vmul.f32 0.0078125, %v1344_v27  ;;  %v4152_v27 = vpack.c.bf16 %v1526_v26, %v1525_v25 }
 0xb11   :  { %v1345_v28 = vmul.f32 0.0078125, %v1342_v59  ;;  %v1509_v59 = vld [vmem:[#allocation8 + $0x60] sm:$0xff] }
 0xb12   :  { %v1358_v36 = vmul.f32 %v1346_v30, %v1346_v30  ;;  %v1356_v53 = vsub.f32 %v5118_v34, %v1346_v30  ;;  %v1499_v34 = vld [vmem:[#allocation8 + $0x10] sm:$0xff] }
 0xb13   :  { %v1357_v29 = vmul.f32 %v1345_v28, %v1345_v28  ;;  %v1350_v47 = vpop.xlane.xlu0 %1349  ;;  %v1355_v39 = vsub.f32 %v5121_v35, %v1345_v28  ;;  %v1515_v35 = vld [vmem:[#allocation8 + $0x90] sm:$0xff]  ;;  %v4134_v7 = vpack.c.bf16 %v1500_v6, %v1499_v34  ;;  %v1510_v28 = vld [vmem:[#allocation8 + $0x68] sm:$0xff] }
 0xb14   :  { %v1353_v31 = vmul.f32 0.0078125, %v1350_v47  ;;  %v4132_v4 = vpack.c.bf16 %v1516_v63, %v1515_v35  ;;  %v1528_v47 = vld [vmem:[#allocation8 + $0xf8] sm:$0xff]  ;;  %v4154_v30 = vpack.c.bf16 %v1510_v28, %v1509_v59  ;;  %v1641_v59 = vld [vmem:[#allocation7 + $0x308] sm:$0xff] }
 0xb15   :  { %v1644_v28 = vld [vmem:[#allocation7 + $0x338] sm:$0xff] }
 0xb16   :  { %v1359_v32 = vsub.f32 %v1353_v31, %v1357_v29  ;;  %4133 = vmatprep.subr.bf16.mxu0 %v4132_v4  ;;  %v1527_v29 = vld [vmem:[#allocation8 + $0xf0] sm:$0xff] }
 0xb17   :  { %v1352_v33 = vpop.xlane.xlu0 %1351  ;;  %4135 = vmatpush3.bf16.msra.mxu0 %v4134_v7  ;;  %v4156_v31 = vpack.c.bf16 %v1528_v47, %v1527_v29  ;;  %v1640_v29 = vld [vmem:[#allocation7 + $0x300] sm:$0xff]  ;;  %v4160_v47 = vpack.c.bf16 %v1644_v28, %v1641_v59 }
 0xb18   :  { %v1361_v37 = vadd.f32 1e-12, %v1359_v32  ;;  %v1354_v23 = vmul.f32 0.0078125, %v1352_v33  ;;  %4137 = vmatprep.subr.bf16.mxu0 %v4136_v11  ;;  %v1511_v32 = vld [vmem:[#allocation8 + $0x70] sm:$0xff]  ;;  %v1512_v33 = vld [vmem:[#allocation8 + $0x78] sm:$0xff]  ;;  %v1669_v28 = vld [vmem:[#allocation7 + $0x4c0] sm:$0xff] }
 0xb19   :  { %4161 = vmatprep.subr.bf16.mxu1 %v4160_v47  ;;  %v1673_v47 = vld [vmem:[#allocation7 + $0x510] sm:$0xff] }
 0xb1a   :  { %4555 = vrsqrt.f32 %v1361_v37  ;;  %v1360_v0 = vsub.f32 %v1354_v23, %v1358_v36  ;;  %v4158_v36 = vpack.c.bf16 %v1512_v33, %v1511_v32  ;;  %v1372_v37 = vld [vmem:[#allocation10 + $0x4] ss:$8 sm:$0x3]  ;;  %v1650_v32 = vld [vmem:[#allocation7 + $0x398] sm:$0xff] }
 0xb1b   :  { %4139 = vmatpush3.bf16.msra.mxu0 %v4138_v5  ;;  %v1377_v23 = vrot.slane %v1372_v37, %v4978_v41 }
 0xb1c   :  { %v1362_v49 = vadd.f32 1e-12, %v1360_v0  ;;  %4141 = vmatprep.subr.bf16.mxu0 %v4140_v13  ;;  %v1381_v0 = vrot.slane %v1372_v37, %v4983_v45  ;;  %v1642_v37 = vld [vmem:[#allocation7 + $0x310] sm:$0xff] }
 0xb1e   :  { %4557 = vrsqrt.f32 %v1362_v49 }
 0xb1f   :  { %4143 = vmatpush3.bf16.msra.mxu0 %v4142_v15 }
 0xb20   :  { %4145 = vmatprep.subr.bf16.mxu0 %v4144_v19 }
 0xb23   :  { %4147 = vmatpush3.bf16.msra.mxu0 %v4146_v20 }
 0xb24   :  { %v4556_v50 = vpop.eup %4555  ;;  %4149 = vmatprep.subr.bf16.mxu0 %v4148_v21 }
 0xb25   :  { %v1365_v51 = vmul.f32 %v4556_v50, %v1355_v39 }
 0xb27   :  { %v1367_v54 = vmul.f32 %v1365_v51, %v1339_v40  ;;  %4151 = vmatpush3.bf16.msra.mxu0 %v4150_v46 }
 0xb28   :  { %v4558_v56 = vpop.eup %4557  ;;  %4153 = vmatprep.subr.bf16.mxu0 %v4152_v27 }
 0xb29   :  { %v5131_v57 = vadd.f32 %v1367_v54, %v1340_v52  ;;  %v1366_v58 = vmul.f32 %v4558_v56, %v1356_v53 }
 0xb2b   :  { %1449 = vmatmul.mubr.f32.vlgmr.msra.gmra.mrb[14].mxu1 %v5131_v57  ;;  %v1368_v60 = vmul.f32 %v1366_v58, %v1339_v40  ;;  %4155 = vmatpush3.bf16.msra.mxu0 %v4154_v30  ;;  %v1643_v30 = vld [vmem:[#allocation7 + $0x330] sm:$0xff] }
 0xb2c   :  { %1454 = vmatprep.mubr.f32.mxu1 %v4805_v55  ;;  %4157 = vmatprep.subr.bf16.mxu0 %v4156_v31  ;;  %v1647_v31 = vld [vmem:[#allocation7 + $0x368] sm:$0xff]  ;;  %v4162_v33 = vpack.c.bf16 %v1643_v30, %v1640_v29  ;;  %v1670_v29 = vld [vmem:[#allocation7 + $0x4e0] sm:$0xff] }
 0xb2d   :  { %v5135_v61 = vadd.f32 %v1368_v60, %v1340_v52 }
 0xb2e   :  { %4163 = vmatpush1.bf16.msra.mxu1 %v4162_v33  ;;  %v1680_v33 = vld [vmem:[#allocation7 + $0x578] sm:$0xff] }
 0xb2f   :  { %1455 = vmatmul.mubr.f32.gmra.mrb[16].mxu1 %v5135_v61  ;;  %4159 = vmatpush3.bf16.msra.mxu0 %v4158_v36  ;;  %v4164_v36 = vpack.c.bf16 %v1650_v32, %v1647_v31  ;;  %v4182_v31 = vpack.c.bf16 %v1673_v47, %v1670_v29  ;;  %v1677_v32 = vld [vmem:[#allocation7 + $0x548] sm:$0xff] }
 0xb30   :  { %1818 = vmatprep.mubr.f32.mxu1 %v4805_v55 }
 0xb31   :  { %4165 = vmatprep.subr.bf16.mxu1 %v4164_v36  ;;  %v1672_v36 = vld [vmem:[#allocation7 + $0x4f0] sm:$0xff] }
 0xbfe   :  { %v1450_v49 = vpop.f32.mrb[14].mxu1 }
 0xbff   :  { %v1451_v39 = vadd.f32 %v1450_v49, %v1377_v23  ;;  %v1452_v50 = vpop.f32.mrb[15].mxu1 }
 0xc00   :  { %v1453_v40 = vadd.f32 %v1452_v50, %v1381_v0 }
 0xc01   :  { %v1465_v51 = vmul.f32 0.044715, %v1451_v39  ;;  %v1461_v38 = vmul.f32 0.5, %v1451_v39 }
 0xc02   :  { %v1466_v52 = vmul.f32 0.044715, %v1453_v40  ;;  %v1456_v53 = vpop.f32.mrb[16].mxu1  ;;  %v1462_v18 = vmul.f32 0.5, %v1453_v40 }
 0xc03   :  { %v1469_v54 = vmul.f32 %v1465_v51, %v1451_v39  ;;  %v1457_v56 = vadd.f32 %v1456_v53, %v1377_v23  ;;  %v1458_v58 = vpop.f32.mrb[17].mxu1  ;;  %v1645_v23 = vld [vmem:[#allocation7 + $0x340] sm:$0xff] }
 0xc04   :  { %v1470_v60 = vmul.f32 %v1466_v52, %v1453_v40  ;;  %v1459_v35 = vadd.f32 %v1458_v58, %v1381_v0  ;;  %v1646_v0 = vld [vmem:[#allocation7 + $0x360] sm:$0xff]  ;;  %v4192_v49 = vpack.c.bf16 %v1645_v23, %v1642_v37  ;;  %v4184_v37 = vpack.c.bf16 %v1680_v33, %v1677_v32 }
 0xc05   :  { %v1473_v63 = vmul.f32 %v1469_v54, %v1451_v39  ;;  %v1467_v4 = vmul.f32 0.044715, %v1457_v56  ;;  %v1463_v26 = vmul.f32 0.5, %v1457_v56  ;;  %v1529_v51 = vld [vmem:[#allocation10 + $0x5] ss:$0 sm:$0xff] }
 0xc06   :  { %v1468_v34 = vmul.f32 0.044715, %v1459_v35  ;;  %v1474_v6 = vmul.f32 %v1470_v60, %v1453_v40  ;;  %v1464_v24 = vmul.f32 0.5, %v1459_v35  ;;  %4193 = vmatprep.subr.bf16.mxu0 %v4192_v49  ;;  %v1675_v23 = vld [vmem:[#allocation7 + $0x520] sm:$0xff] }
 0xc07   :  { %v1477_v7 = vadd.f32 %v1473_v63, %v1451_v39  ;;  %v1471_v9 = vmul.f32 %v1467_v4, %v1457_v56  ;;  %v1649_v39 = vld [vmem:[#allocation7 + $0x390] sm:$0xff] }
 0xc08   :  { %v1472_v10 = vmul.f32 %v1468_v34, %v1459_v35  ;;  %v1478_v11 = vadd.f32 %v1474_v6, %v1453_v40  ;;  %v4166_v50 = vpack.c.bf16 %v1649_v39, %v1646_v0  ;;  %v1676_v0 = vld [vmem:[#allocation7 + $0x540] sm:$0xff]  ;;  %v4212_v39 = vpack.c.bf16 %v1675_v23, %v1672_v36 }
 0xc09   :  { %v1481_v8 = vmul.f32 0.7978846, %v1477_v7  ;;  %v1475_v12 = vmul.f32 %v1471_v9, %v1457_v56  ;;  %v1653_v7 = vld [vmem:[#allocation7 + $0x3c8] sm:$0xff]  ;;  %v1656_v9 = vld [vmem:[#allocation7 + $0x3f8] sm:$0xff] }
 0xc0a   :  { %v1482_v5 = vmul.f32 0.7978846, %v1478_v11  ;;  %v1476_v2 = vmul.f32 %v1472_v10, %v1459_v35  ;;  %4167 = vmatpush1.bf16.msra.mxu1 %v4166_v50  ;;  %v4168_v10 = vpack.c.bf16 %v1656_v9, %v1653_v7  ;;  %v1651_v11 = vld [vmem:[#allocation7 + $0x3a0] sm:$0xff] }
 0xc0b   :  { %4559 = vtanh.f32 %v1481_v8  ;;  %v1479_v48 = vadd.f32 %v1475_v12, %v1457_v56  ;;  %v1652_v8 = vld [vmem:[#allocation7 + $0x3c0] sm:$0xff]  ;;  %v1655_v12 = vld [vmem:[#allocation7 + $0x3f0] sm:$0xff] }
 0xc0c   :  { %4561 = vtanh.f32 %v1482_v5  ;;  %v1480_v13 = vadd.f32 %v1476_v2, %v1459_v35  ;;  %v4170_v2 = vpack.c.bf16 %v1655_v12, %v1652_v8  ;;  %4169 = vmatprep.subr.bf16.mxu1 %v4168_v10 }
 0xc0d   :  { %v1483_v3 = vmul.f32 0.7978846, %v1479_v48  ;;  %v1662_v48 = vld [vmem:[#allocation7 + $0x458] sm:$0xff] }
 0xc0e   :  { %v1484_v14 = vmul.f32 0.7978846, %v1480_v13  ;;  %4171 = vmatpush1.bf16.msra.mxu1 %v4170_v2  ;;  %v1654_v13 = vld [vmem:[#allocation7 + $0x3d0] sm:$0xff] }
 0xc0f   :  { %4563 = vtanh.f32 %v1483_v3 }
 0xc10   :  { %4565 = vtanh.f32 %v1484_v14  ;;  %v1657_v14 = vld [vmem:[#allocation7 + $0x400] sm:$0xff] }
 0xc15   :  { %v4560_v15 = vpop.eup %4559 }
 0xc16   :  { %v4562_v16 = vpop.eup %4561  ;;  %v1489_v17 = vadd.f32 1.0, %v4560_v15  ;;  %v1658_v15 = vld [vmem:[#allocation7 + $0x420] sm:$0xff] }
 0xc17   :  { %v1490_v19 = vadd.f32 1.0, %v4562_v16  ;;  %v1661_v16 = vld [vmem:[#allocation7 + $0x450] sm:$0xff] }
 0xc18   :  { %v1493_v21 = vmul.f32 %v1489_v17, %v1461_v38  ;;  %v4200_v17 = vpack.c.bf16 %v1657_v14, %v1654_v13  ;;  %v1668_v38 = vld [vmem:[#allocation7 + $0x4b8] sm:$0xff] }
 0xc19   :  { %v4564_v42 = vpop.eup %4563  ;;  %v1494_v44 = vmul.f32 %v1490_v19, %v1462_v18  ;;  %v4174_v18 = vpack.c.bf16 %v1661_v16, %v1658_v15  ;;  %v1665_v19 = vld [vmem:[#allocation7 + $0x488] sm:$0xff] }
 0xc1a   :  { %v4566_v20 = vpop.eup %4565  ;;  %v1491_v22 = vadd.f32 1.0, %v4564_v42  ;;  %v1660_v42 = vld [vmem:[#allocation7 + $0x430] sm:$0xff] }
 0xc1b   :  { %1594 = vmatprep.mubr.f32.mxu0 %v1494_v44  ;;  %v1492_v25 = vadd.f32 1.0, %v4566_v20  ;;  %v4176_v44 = vpack.c.bf16 %v1668_v38, %v1665_v19  ;;  %v1663_v20 = vld [vmem:[#allocation7 + $0x460] sm:$0xff] }
 0xc1c   :  { %1595 = vmatmul.mubr.f32.vlgmr.msra.gmra.mrb[10].mxu0 %v1493_v21  ;;  %v1495_v27 = vmul.f32 %v1491_v22, %v1463_v26  ;;  %v1664_v21 = vld [vmem:[#allocation7 + $0x480] sm:$0xff]  ;;  %v1667_v22 = vld [vmem:[#allocation7 + $0x4b0] sm:$0xff]  ;;  %v1671_v26 = vld [vmem:[#allocation7 + $0x4e8] sm:$0xff] }
 0xc1d   :  { %v1496_v46 = vmul.f32 %v1492_v25, %v1464_v24  ;;  %4195 = vmatpush3.bf16.msra.mxu0 %v4192_v49  ;;  %v4204_v24 = vpack.c.bf16 %v1663_v20, %v1660_v42  ;;  %v4178_v25 = vpack.c.bf16 %v1667_v22, %v1664_v21  ;;  %v1679_v49 = vld [vmem:[#allocation7 + $0x570] sm:$0xff]  ;;  %v1608_v38 = vld [vmem:[#allocation10 + $0x7] ss:$0 sm:$0xff] }
 0xc1e   :  { %v4186_v50 = vpack.c.bf16 %v1679_v49, %v1676_v0 }
 0xc1f   :  { %1599 = vmatprep.mubr.f32.mxu0 %v1496_v46  ;;  %v1674_v46 = vld [vmem:[#allocation7 + $0x518] sm:$0xff] }
 0xc20   :  { %1600 = vmatmul.mubr.f32.gmra.mrb[12].mxu0 %v1495_v27  ;;  %v1666_v27 = vld [vmem:[#allocation7 + $0x490] sm:$0xff]  ;;  %v4180_v59 = vpack.c.bf16 %v1674_v46, %v1671_v26 }
 0xc21   :  { %v4208_v30 = vpack.c.bf16 %v1669_v28, %v1666_v27 }
 0xcef   :  { %v3492_v40 = vpop.f32.mrb[10].mxu0 }
 0xcf0   :  { %v3493_v52 = vpop.f32.mrb[11].mxu0 }
 0xcf1   :  { %v3494_v53 = vadd.f32 %v3493_v52, %v3492_v40  ;;  %v1683_v40 = vld [vmem:[#allocation7 + $0x5a8] sm:$0xff]  ;;  %v1678_v52 = vld [vmem:[#allocation7 + $0x550] sm:$0xff] }
 0xcf3   :  { %v1597_v54 = vadd.f32 %v3494_v53, %v1529_v51  ;;  %v3495_v56 = vpop.f32.mrb[12].mxu0 }
 0xcf4   :  { %v3496_v58 = vpop.f32.mrb[13].mxu0 }
 0xcf5   :  { %v3497_v60 = vadd.f32 %v3496_v58, %v3495_v56  ;;  %v5142_v35 = vadd.f32 %v1597_v54, %v5131_v57  ;;  %v1648_v57 = vld [vmem:[#allocation7 + $0x370] sm:$0xff]  ;;  %v1681_v54 = vld [vmem:[#allocation7 + $0x580] sm:$0xff] }
 0xcf6   :  { %v4196_v5 = vpack.c.bf16 %v1651_v11, %v1648_v57  ;;  %v1682_v56 = vld [vmem:[#allocation7 + $0x5a0] sm:$0xff]  ;;  %v1685_v58 = vld [vmem:[#allocation7 + $0x5d0] sm:$0xff] }
 0xcf7   :  { %v1602_v63 = vadd.f32 %v3497_v60, %v1529_v51  ;;  %1609 = vadd.xlane.f32.xlu1 %v5142_v35  ;;  %v1615_v4 = vmul.f32 %v5142_v35, %v5142_v35  ;;  %v1686_v51 = vld [vmem:[#allocation7 + $0x5d8] sm:$0xff]  ;;  %v4216_v60 = vpack.c.bf16 %v1681_v54, %v1678_v52  ;;  %v5187_v54 = vld [vmem:[#allocation5] sm:$0xff] }
 0xcf8   :  { %4197 = vmatprep.subr.bf16.mxu0 %v4196_v5  ;;  %v4188_v53 = vpack.c.bf16 %v1686_v51, %v1683_v40  ;;  %v5184_v52 = vld [vmem:[#allocation5 + $0x8] sm:$0xff] }
 0xcf9   :  { %1617 = vadd.xlane.f32.xlu0 %v1615_v4  ;;  %v5148_v34 = vadd.f32 %v1602_v63, %v5135_v61  ;;  %v1659_v61 = vld [vmem:[#allocation7 + $0x428] sm:$0xff]  ;;  %4199 = vmatpush3.bf16.msra.mxu0 %v4196_v5  ;;  %v4190_v63 = vpack.c.bf16 %v1685_v58, %v1682_v56  ;;  %v1684_v4 = vld [vmem:[#allocation7 + $0x5b0] sm:$0xff] }
 0xcfa   :  { %v4172_v3 = vpack.c.bf16 %v1662_v48, %v1659_v61  ;;  %4201 = vmatprep.subr.bf16.mxu0 %v4200_v17 }
 0xcfb   :  { %1611 = vadd.xlane.f32.xlu1 %v5148_v34  ;;  %v1616_v6 = vmul.f32 %v5148_v34, %v5148_v34 }
 0xcfc   :  { %4173 = vmatprep.subr.bf16.mxu1 %v4172_v3 }
 0xcfd   :  { %1619 = vadd.xlane.f32.xlu0 %v1616_v6  ;;  %4175 = vmatpush1.bf16.msra.mxu1 %v4174_v18  ;;  %v1687_v6 = vld [vmem:[#allocation7 + $0x5e0] sm:$0xff] }
 0xcfe   :  { %4203 = vmatpush3.bf16.msra.mxu0 %v4200_v17  ;;  %4177 = vmatprep.subr.bf16.mxu1 %v4176_v44  ;;  %v4220_v7 = vpack.c.bf16 %v1687_v6, %v1684_v4  ;;  %v1607_v18 = vld [vmem:[#allocation10 + $0x6] ss:$0 sm:$0xff] }
 0xcff   :  { %4205 = vmatprep.subr.bf16.mxu0 %v4204_v24 }
 0xd01   :  { %4179 = vmatpush1.bf16.msra.mxu1 %v4178_v25 }
 0xd02   :  { %4207 = vmatpush3.bf16.msra.mxu0 %v4204_v24  ;;  %4181 = vmatprep.subr.bf16.mxu1 %v4180_v59 }
 0xd03   :  { %4209 = vmatprep.subr.bf16.mxu0 %v4208_v30 }
 0xd05   :  { %4183 = vmatpush1.bf16.msra.mxu1 %v4182_v31 }
 0xd06   :  { %4211 = vmatpush3.bf16.msra.mxu0 %v4208_v30  ;;  %4185 = vmatprep.subr.bf16.mxu1 %v4184_v37 }
 0xd07   :  { %4213 = vmatprep.subr.bf16.mxu0 %v4212_v39 }
 0xd09   :  { %4187 = vmatpush1.bf16.msra.mxu1 %v4186_v50 }
 0xd0a   :  { %4215 = vmatpush3.bf16.msra.mxu0 %v4212_v39  ;;  %4189 = vmatprep.subr.bf16.mxu1 %v4188_v53 }
 0xd0b   :  { %4217 = vmatprep.subr.bf16.mxu0 %v4216_v60 }
 0xd0d   :  { %4191 = vmatpush1.bf16.msra.mxu1 %v4190_v63 }
 0xd0e   :  { %4219 = vmatpush3.bf16.msra.mxu0 %v4216_v60 }
 0xd0f   :  { %4221 = vmatprep.subr.bf16.mxu0 %v4220_v7 }
 0xd12   :  { %4223 = vmatpush3.bf16.msra.mxu0 %v4220_v7 }
 0xd84   :  { %v1610_v9 = vpop.xlane.xlu1 %1609 }
 0xd85   :  { %v1613_v57 = vmul.f32 0.0078125, %v1610_v9 }
 0xd86   :  { %v1618_v10 = vpop.xlane.xlu0 %1617 }
 0xd87   :  { %v1625_v11 = vmul.f32 %v1613_v57, %v1613_v57  ;;  %v1621_v8 = vmul.f32 0.0078125, %v1618_v10  ;;  %v1623_v16 = vsub.f32 %v5142_v35, %v1613_v57  ;;  %v1737_v35 = vld [vmem:[#allocation10 + $0x18] ss:$8 sm:$0x7] }
 0xd88   :  { %v1612_v12 = vpop.xlane.xlu1 %1611  ;;  %v1750_v59 = vrot.slane %v1737_v35, %v262_v43  ;;  %v1746_v28 = vrot.slane %v1737_v35, %v4983_v45 }
 0xd89   :  { %v1627_v5 = vsub.f32 %v1621_v8, %v1625_v11  ;;  %v1614_v2 = vmul.f32 0.0078125, %v1612_v12 }
 0xd8a   :  { %v1620_v61 = vpop.xlane.xlu0 %1619 }
 0xd8b   :  { %v1629_v48 = vadd.f32 1e-12, %v1627_v5  ;;  %v1626_v13 = vmul.f32 %v1614_v2, %v1614_v2  ;;  %v1622_v3 = vmul.f32 0.0078125, %v1620_v61  ;;  %v1624_v42 = vsub.f32 %v5148_v34, %v1614_v2 }
 0xd8c   :  { %v1742_v34 = vrot.slane %v1737_v35, %v4978_v41 }
 0xd8d   :  { %4567 = vrsqrt.f32 %v1629_v48  ;;  %v1628_v14 = vsub.f32 %v1622_v3, %v1626_v13 }
 0xd8f   :  { %v1630_v15 = vadd.f32 1e-12, %v1628_v14 }
 0xd91   :  { %4569 = vrsqrt.f32 %v1630_v15 }
 0xd97   :  { %v4568_v17 = vpop.eup %4567 }
 0xd98   :  { %v1633_v19 = vmul.f32 %v4568_v17, %v1623_v16 }
 0xd9a   :  { %v1635_v44 = vmul.f32 %v1633_v19, %v1607_v18 }
 0xd9b   :  { %v4570_v20 = vpop.eup %4569 }
 0xd9c   :  { %v5155_v21 = vadd.f32 %v1635_v44, %v1608_v38  ;;  %v1634_v22 = vmul.f32 %v4570_v20, %v1624_v42 }
 0xd9e   :  { %1819 = vmatmul.mubr.f32.vlgmr.msra.gmra.mrb[18].mxu1 %v5155_v21  ;;  %3796 = vmatprep.mubr.f32.mxu0 %v5155_v21  ;;  %v1636_v24 = vmul.f32 %v1634_v22, %v1607_v18 }
 0xd9f   :  { %1824 = vmatprep.mubr.f32.mxu1 %v4805_v55 }
 0xda0   :  { %v5160_v25 = vadd.f32 %v1636_v24, %v1608_v38 }
 0xda2   :  { %1825 = vmatmul.mubr.f32.gmra.mrb[20].mxu1 %v5160_v25  ;;  %3797 = vmatmul.mubr.f32.vlgmr.msra.gmra.mrb[14].mxu0 %v5160_v25 }
 0xe71   :  { %v1820_v26 = vpop.f32.mrb[18].mxu1 }
 0xe72   :  { %v5165_v46 = vadd.f32 %v1820_v26, %v1742_v34  ;;  %v1822_v27 = vpop.f32.mrb[19].mxu1 }
 0xe73   :  { %v1823_v33 = vadd.f32 %v1822_v27, %v1746_v28 }
 0xe74   :  { %3803 = vmatprep.mubr.msk.f32.mxu1 %vm419_vm0, %v5165_v46 }
 0xe75   :  { %v1826_v29 = vpop.f32.mrb[20].mxu1  ;;  %v3798_v47 = vpop.f32.mrb[14].mxu0 }
 0xe76   :  { %v1903_v30 = vadd.f32 %v3798_v47, %v1750_v59  ;;  %v1828_v31 = vpop.f32.mrb[21].mxu1  ;;  %v1897_v32 = vpop.f32.mrb[15].mxu0  ;;  %v5180_v1 = vadd.f32 %v1826_v29, %v1742_v34 }
 0xe77   :  { %v1829_v36 = vadd.f32 %v1828_v31, %v1746_v28  ;;  %v1898_v37 = vadd.f32 %v1897_v32, %v1750_v59 }
 0xe79   :  { %v4224_v23 = vpack.c.bf16 %v1829_v36, %v1823_v33  ;;  %v4230_v0 = vpack.c.bf16 %v1903_v30, %v1898_v37  ;;  %v5172_v49 = vpack.i.bf16 %v1829_v36, %v1823_v33  ;;  %v5174_v39 = vpack.i.bf16 %v1903_v30, %v1898_v37 }
 0xe7b   :  { %4226 = vmatprep.subr.msk.bf16.mxu1 %vm4996_vm1, %v4224_v23 }
 0xe7c   :  { %4229 = vmatpush3.bf16.xpose.msk.msra.mxu1 %vm4996_vm1, %v4224_v23 }
 0xe7d   :  { %4231 = vmatprep.subr.bf16.mxu1 %v4230_v0 }
 0xe83   :  { %3804 = vmatmul.mubr.msk.f32.vlgmr.msra.gmra.mrb[22].mxu1 %vm419_vm0, %v5180_v1 }
 0xe84   :  { %4233 = vmatpush3.bf16.msra.mxu1 %v4230_v0 }
 0xf56   :  { %v3805_v43 = vpop.f32.mrb[22].mxu1 }
 0xf57   :  { %v1994_v50 = vmul.f32 0.17677669, %v3805_v43  ;;  %v1984_v40 = vpop.f32.mrb[23].mxu1 }
 0xf58   :  { %v1993_v51 = vmul.f32 0.17677669, %v1984_v40 }
 0xf59   :  { %v1996_v53 = vadd.f32 %v5184_v52, %v1994_v50 }
 0xf5a   :  { %v1995_v56 = vadd.f32 %v5187_v54, %v1993_v51 }
 0xf5b   :  { %v2000_v58 = vsel %vm511_vm2, %v1996_v53, -inf }
 0xf5c   :  { %2001 = vmax.xlane.f32.xlu0 %v2000_v58  ;;  %v1997_v60 = vsel %vm511_vm2, %v1995_v56, -inf }
 0xf5d   :  { %1998 = vmax.xlane.f32.xlu1 %v1997_v60 }
 0xf6e   :  { %4475 = vrot.lane.b32.xlu1 %v5172_v49, %s4807_s9 }
 0xfe9   :  { %v2002_v63 = vpop.xlane.xlu0 %2001 }
 0xfea   :  { %v2004_v4 = vsub.f32 %v1996_v53, %v2002_v63  ;;  %v1999_v6 = vpop.xlane.xlu1 %1998 }
 0xfeb   :  { %v2003_v7 = vsub.f32 %v1995_v56, %v1999_v6 }
 0xfec   :  { %v2007_v9 = vmul.f32 1.442695, %v2004_v4 }
 0xfed   :  { %v2005_v57 = vmul.f32 1.442695, %v2003_v7 }
 0xfee   :  { %4571 = vpow2.f32 %v2007_v9  ;;  %v4476_v10 = vpop.permute.xlu1 %4475 }
 0xfef   :  { %4573 = vpow2.f32 %v2005_v57  ;;  %v4478_v11 = vunpack.i.h.bf16 %v4476_v10  ;;  %v4477_v8 = vunpack.i.l.bf16 %v4476_v10 }
 0xff1   :  { %v4234_v12 = vpack.c.bf16 %v4478_v11, %v4477_v8 }
 0xff3   :  { %4236 = vmatprep.subr.msk.bf16.mxu1 %vm4996_vm1, %v4234_v12 }
 0xff8   :  { %v4572_v5 = vpop.eup %4571 }
 0xff9   :  { %v4574_v2 = vpop.eup %4573  ;;  %v2012_v61 = vsel %vm511_vm2, %v4572_v5, 0.0 }
 0xffa   :  { %2013 = vadd.xlane.f32.xlu0 %v2012_v61  ;;  %v2009_v48 = vsel %vm511_vm2, %v4574_v2, 0.0 }
 0xffb   :  { %2010 = vadd.xlane.f32.xlu1 %v2009_v48 }
0x100c   :  { %2102 = vrot.lane.b32.xlu1 %v5180_v1, %s4807_s9 }
0x1010   :  { %2100 = vrot.lane.b32.xlu0 %v5165_v46, %s4807_s9 }
0x1087   :  { %v2014_v13 = vpop.xlane.xlu0 %2013 }
0x1088   :  { %4575 = vrcp.f32 %v2014_v13  ;;  %v2011_v3 = vpop.xlane.xlu1 %2010 }
0x1089   :  { %4577 = vrcp.f32 %v2011_v3 }
0x108b   :  { %v2101_v18 = vpop.permute.xlu0 %2100 }
0x108c   :  { %v2103_v19 = vpop.permute.xlu1 %2102 }
0x1092   :  { %v4576_v14 = vpop.eup %4575 }
0x1093   :  { %v4578_v15 = vpop.eup %4577  ;;  %v2018_v17 = vmul.f32 %v4576_v14, %v4572_v5 }
0x1094   :  { %v2017_v16 = vmul.f32 %v4578_v15, %v4574_v2 }
0x1096   :  { %3810 = vmatprep.mubr.msk.f32.mxu1 %vm511_vm2, %v2017_v16 }
0x1097   :  { %3811 = vmatmul.mubr.msk.f32.vlgmr.msra.gmra.mrb[24].mxu1 %vm511_vm2, %v2018_v17 }
0x1098   :  { %4239 = vmatpush3.bf16.xpose.msk.msra.mxu1 %vm4996_vm1, %v4234_v12  ;;  %3817 = vmatprep.mubr.msk.f32.mxu1 %vm419_vm0, %v2101_v18 }
0x109f   :  { %3818 = vmatmul.mubr.msk.f32.vlgmr.msra.gmra.mrb[26].mxu1 %vm419_vm0, %v2103_v19 }
0x116a   :  { %v5208_v38 = vpop.f32.mrb[24].mxu1 }
0x116b   :  { %v5210_v42 = vpop.f32.mrb[25].mxu1 }
0x1172   :  { %v3819_v44 = vpop.f32.mrb[26].mxu1 }
0x1173   :  { %v2192_v20 = vmul.f32 0.17677669, %v3819_v44  ;;  %v2182_v22 = vpop.f32.mrb[27].mxu1 }
0x1174   :  { %v2191_v24 = vmul.f32 0.17677669, %v2182_v22 }
0x1175   :  { %v2194_v35 = vadd.f32 %v5184_v52, %v2192_v20 }
0x1176   :  { %v2193_v34 = vadd.f32 %v5187_v54, %v2191_v24 }
0x1177   :  { %v2198_v26 = vsel %vm511_vm2, %v2194_v35, -inf }
0x1178   :  { %2199 = vmax.xlane.f32.xlu0 %v2198_v26  ;;  %v2195_v27 = vsel %vm511_vm2, %v2193_v34, -inf }
0x1179   :  { %2196 = vmax.xlane.f32.xlu1 %v2195_v27 }
0x1205   :  { %v2200_v59 = vpop.xlane.xlu0 %2199 }
0x1206   :  { %v2202_v28 = vsub.f32 %v2194_v35, %v2200_v59  ;;  %v2197_v29 = vpop.xlane.xlu1 %2196 }
0x1207   :  { %v2201_v47 = vsub.f32 %v2193_v34, %v2197_v29 }
0x1208   :  { %v2205_v30 = vmul.f32 1.442695, %v2202_v28 }
0x1209   :  { %v2203_v31 = vmul.f32 1.442695, %v2201_v47 }
0x120a   :  { %4579 = vpow2.f32 %v2205_v30 }
0x120b   :  { %4581 = vpow2.f32 %v2203_v31 }
0x1214   :  { %v4580_v32 = vpop.eup %4579 }
0x1215   :  { %v4582_v33 = vpop.eup %4581  ;;  %v2210_v36 = vsel %vm511_vm2, %v4580_v32, 0.0 }
0x1216   :  { %2211 = vadd.xlane.f32.xlu1 %v2210_v36  ;;  %v2207_v37 = vsel %vm511_vm2, %v4582_v33, 0.0 }
0x1217   :  { %2208 = vadd.xlane.f32.xlu0 %v2207_v37 }
0x1227   :  { %4485 = vrot.lane.b32.xlu1 %v5172_v49, %s4806_s8 }
0x122b   :  { %4490 = vrot.lane.b32.xlu1 %v5172_v49, %s4808_s10 }
0x122d   :  { %4480 = vrot.lane.b32.xlu0 %v5174_v39, %s4807_s9 }
0x122f   :  { %2306 = vrot.lane.b32.xlu1 %v5165_v46, %s4806_s8 }
0x1231   :  { %2308 = vrot.lane.b32.xlu0 %v5180_v1, %s4806_s8 }
0x1233   :  { %2510 = vrot.lane.b32.xlu1 %v5165_v46, %s4808_s10 }
0x1235   :  { %2512 = vrot.lane.b32.xlu0 %v5180_v1, %s4808_s10 }
0x12a3   :  { %v2212_v23 = vpop.xlane.xlu1 %2211 }
0x12a4   :  { %4583 = vrcp.f32 %v2212_v23  ;;  %v2209_v0 = vpop.xlane.xlu0 %2208 }
0x12a5   :  { %4585 = vrcp.f32 %v2209_v0 }
0x12a7   :  { %v4486_v49 = vpop.permute.xlu1 %4485 }
0x12a8   :  { %v4481_v43 = vpop.permute.xlu0 %4480  ;;  %v4488_v50 = vunpack.i.h.bf16 %v4486_v49  ;;  %v4487_v40 = vunpack.i.l.bf16 %v4486_v49 }
0x12a9   :  { %v4483_v51 = vunpack.i.h.bf16 %v4481_v43  ;;  %v4482_v53 = vunpack.i.l.bf16 %v4481_v43 }
0x12aa   :  { %v4244_v58 = vpack.c.bf16 %v4488_v50, %v4487_v40 }
0x12ab   :  { %v4240_v56 = vpack.c.bf16 %v4483_v51, %v4482_v53  ;;  %v4491_v60 = vpop.permute.xlu1 %4490 }
0x12ac   :  { %v4493_v6 = vunpack.i.h.bf16 %v4491_v60  ;;  %v4492_v7 = vunpack.i.l.bf16 %v4491_v60  ;;  %v2309_v10 = vpop.permute.xlu0 %2308 }
0x12ad   :  { %4241 = vmatprep.subr.bf16.mxu1 %v4240_v56 }
0x12ae   :  { %v4584_v63 = vpop.eup %4583  ;;  %4243 = vmatpush3.bf16.msra.mxu1 %v4240_v56  ;;  %v4254_v57 = vpack.c.bf16 %v4493_v6, %v4492_v7 }
0x12af   :  { %v4586_v46 = vpop.eup %4585  ;;  %4246 = vmatprep.subr.msk.bf16.mxu1 %vm4996_vm1, %v4244_v58  ;;  %v2216_v4 = vmul.f32 %v4584_v63, %v4580_v32  ;;  %v2307_v9 = vpop.permute.xlu1 %2306 }
0x12b0   :  { %v2215_v1 = vmul.f32 %v4586_v46, %v4582_v33  ;;  %v2513_v8 = vpop.permute.xlu0 %2512 }
0x12b2   :  { %3824 = vmatprep.mubr.msk.f32.mxu1 %vm511_vm2, %v2215_v1 }
0x12b3   :  { %3825 = vmatmul.mubr.msk.f32.vlgmr.msra.gmra.mrb[28].mxu1 %vm511_vm2, %v2216_v4  ;;  %v2511_v11 = vpop.permute.xlu1 %2510 }
0x12b4   :  { %3831 = vmatprep.mubr.msk.f32.mxu1 %vm419_vm0, %v2307_v9 }
0x12b7   :  { %4249 = vmatpush3.bf16.xpose.msk.msra.mxu1 %vm4996_vm1, %v4244_v58 }
0x12b8   :  { %4256 = vmatprep.subr.msk.bf16.mxu1 %vm4996_vm1, %v4254_v57 }
0x12be   :  { %3832 = vmatmul.mubr.msk.f32.vlgmr.msra.gmra.mrb[30].mxu1 %vm419_vm0, %v2309_v10 }
0x12bf   :  { %4259 = vmatpush3.bf16.xpose.msk.msra.mxu1 %vm4996_vm1, %v4254_v57  ;;  %3845 = vmatprep.mubr.msk.f32.mxu1 %vm419_vm0, %v2511_v11 }
0x12c6   :  { %3846 = vmatmul.mubr.msk.f32.vlgmr.msra.gmra.mrb[32].mxu1 %vm419_vm0, %v2513_v8 }
0x12c7   :  { %2931 = vmatprep.mubr.f32.mxu1 %v4805_v55 }
0x1386   :  { %v3826_v12 = vpop.f32.mrb[28].mxu1 }
0x1387   :  { %v2297_v5 = vpop.f32.mrb[29].mxu1 }
0x1388   :  { %v4504_v2 = vpack.i.bf16 %v3826_v12, %v2297_v5 }
0x1391   :  { %v3833_v61 = vpop.f32.mrb[30].mxu1 }
0x1392   :  { %v2398_v48 = vmul.f32 0.17677669, %v3833_v61  ;;  %v2388_v13 = vpop.f32.mrb[31].mxu1  ;;  %v1689_v61 = vld [vmem:[#allocation7 + $0x348] sm:$0xff] }
0x1393   :  { %v2397_v3 = vmul.f32 0.17677669, %v2388_v13 }
0x1394   :  { %v2400_v14 = vadd.f32 %v5184_v52, %v2398_v48  ;;  %v1690_v48 = vld [vmem:[#allocation7 + $0x378] sm:$0xff] }
0x1395   :  { %v2399_v15 = vadd.f32 %v5187_v54, %v2397_v3  ;;  %v1691_v3 = vld [vmem:[#allocation7 + $0x3a8] sm:$0xff] }
0x1396   :  { %v2404_v62 = vsel %vm511_vm2, %v2400_v14, -inf }
0x1397   :  { %2405 = vmax.xlane.f32.xlu0 %v2404_v62  ;;  %v2401_v16 = vsel %vm511_vm2, %v2399_v15, -inf  ;;  %v1693_v62 = vld [vmem:[#allocation7 + $0x408] sm:$0xff] }
0x1398   :  { %2402 = vmax.xlane.f32.xlu1 %v2401_v16 }
0x1399   :  { %v3847_v17 = vpop.f32.mrb[32].mxu1 }
0x139a   :  { %v2592_v18 = vpop.f32.mrb[33].mxu1  ;;  %v2602_v19 = vmul.f32 0.17677669, %v3847_v17  ;;  %v1694_v17 = vld [vmem:[#allocation7 + $0x438] sm:$0xff] }
0x139b   :  { %v2601_v44 = vmul.f32 0.17677669, %v2592_v18  ;;  %v1695_v18 = vld [vmem:[#allocation7 + $0x468] sm:$0xff] }
0x139c   :  { %v2604_v24 = vadd.f32 %v5184_v52, %v2602_v19  ;;  %v4276_v19 = vpack.c.bf16 %v1695_v18, %v1694_v17  ;;  %v1714_v18 = vld [vmem:[#allocation7 + $0x410] sm:$0xff] }
0x139d   :  { %v2603_v20 = vadd.f32 %v5187_v54, %v2601_v44  ;;  %v1696_v44 = vld [vmem:[#allocation7 + $0x498] sm:$0xff] }
0x139e   :  { %v2608_v35 = vsel %vm511_vm2, %v2604_v24, -inf }
0x139f   :  { %v2605_v22 = vsel %vm511_vm2, %v2603_v20, -inf }
0x13a0   :  { %2606 = vmax.xlane.f32.xlu0 %v2605_v22 }
0x13a4   :  { %2609 = vmax.xlane.f32.xlu0 %v2608_v35  ;;  %v1699_v35 = vld [vmem:[#allocation7 + $0x528] sm:$0xff] }
0x1424   :  { %v2406_v34 = vpop.xlane.xlu0 %2405 }
0x1425   :  { %v2408_v26 = vsub.f32 %v2400_v14, %v2406_v34  ;;  %v2403_v27 = vpop.xlane.xlu1 %2402  ;;  %v4268_v14 = vpack.c.bf16 %v1691_v3, %v1690_v48 }
0x1426   :  { %v2407_v59 = vsub.f32 %v2399_v15, %v2403_v27  ;;  %v1692_v15 = vld [vmem:[#allocation7 + $0x3d8] sm:$0xff]  ;;  %v1701_v27 = vld [vmem:[#allocation7 + $0x588] sm:$0xff] }
0x1427   :  { %v2411_v28 = vmul.f32 1.442695, %v2408_v26  ;;  %v4272_v16 = vpack.c.bf16 %v1693_v62, %v1692_v15  ;;  %v1700_v26 = vld [vmem:[#allocation7 + $0x558] sm:$0xff]  ;;  %v1713_v62 = vld [vmem:[#allocation7 + $0x3e8] sm:$0xff] }
0x1428   :  { %v2409_v29 = vmul.f32 1.442695, %v2407_v59  ;;  %v4288_v59 = vpack.c.bf16 %v1701_v27, %v1700_v26  ;;  %v1723_v26 = vld [vmem:[#allocation7 + $0x4d8] sm:$0xff] }
0x1429   :  { %4587 = vpow2.f32 %v2411_v28  ;;  %v1702_v28 = vld [vmem:[#allocation7 + $0x5b8] sm:$0xff] }
0x142a   :  { %4589 = vpow2.f32 %v2409_v29  ;;  %v1703_v29 = vld [vmem:[#allocation7 + $0x5e8] sm:$0xff] }
0x142d   :  { %v2607_v47 = vpop.xlane.xlu0 %2606 }
0x142e   :  { %v2611_v30 = vsub.f32 %v2603_v20, %v2607_v47  ;;  %v1697_v20 = vld [vmem:[#allocation7 + $0x4c8] sm:$0xff]  ;;  %v4292_v47 = vpack.c.bf16 %v1703_v29, %v1702_v28  ;;  %v1722_v28 = vld [vmem:[#allocation7 + $0x4d0] sm:$0xff] }
0x142f   :  { %v4280_v22 = vpack.c.bf16 %v1697_v20, %v1696_v44  ;;  %v1717_v44 = vld [vmem:[#allocation7 + $0x448] sm:$0xff]  ;;  %v1719_v20 = vld [vmem:[#allocation7 + $0x478] sm:$0xff] }
0x1430   :  { %v2613_v31 = vmul.f32 1.442695, %v2611_v30 }
0x1431   :  { %v2610_v54 = vpop.xlane.xlu0 %2609 }
0x1432   :  { %4591 = vpow2.f32 %v2613_v31  ;;  %v2612_v32 = vsub.f32 %v2604_v24, %v2610_v54  ;;  %v1698_v24 = vld [vmem:[#allocation7 + $0x4f8] sm:$0xff] }
0x1433   :  { %v4588_v33 = vpop.eup %4587  ;;  %v4284_v34 = vpack.c.bf16 %v1699_v35, %v1698_v24  ;;  %v1718_v24 = vld [vmem:[#allocation7 + $0x470] sm:$0xff] }
0x1434   :  { %v4590_v52 = vpop.eup %4589  ;;  %v2615_v36 = vmul.f32 1.442695, %v2612_v32  ;;  %v2416_v37 = vsel %vm511_vm2, %v4588_v33, 0.0 }
0x1435   :  { %2417 = vadd.xlane.f32.xlu0 %v2416_v37  ;;  %v2413_v23 = vsel %vm511_vm2, %v4590_v52, 0.0 }
0x1436   :  { %4593 = vpow2.f32 %v2615_v36  ;;  %2414 = vadd.xlane.f32.xlu1 %v2413_v23 }
0x143c   :  { %v4592_v0 = vpop.eup %4591 }
0x143d   :  { %v2617_v49 = vsel %vm511_vm2, %v4592_v0, 0.0 }
0x143e   :  { %2618 = vadd.xlane.f32.xlu1 %v2617_v49 }
0x1440   :  { %v4594_v43 = vpop.eup %4593 }
0x1441   :  { %v2620_v50 = vsel %vm511_vm2, %v4594_v43, 0.0 }
0x1442   :  { %2621 = vadd.xlane.f32.xlu0 %v2620_v50 }
0x144f   :  { %4495 = vrot.lane.b32.xlu1 %v5174_v39, %s4806_s8 }
0x1453   :  { %4505 = vrot.lane.b32.xlu1 %v4504_v2, %s4808_s10  ;;  %v1688_v2 = vld [vmem:[#allocation7 + $0x318] sm:$0xff] }
0x1454   :  { %v4264_v13 = vpack.c.bf16 %v1689_v61, %v1688_v2 }
0x1458   :  { %4500 = vrot.lane.b32.xlu0 %v5174_v39, %s4808_s10 }
0x14c2   :  { %v2418_v51 = vpop.xlane.xlu0 %2417 }
0x14c3   :  { %v2415_v40 = vpop.xlane.xlu1 %2414 }
0x14c4   :  { %4595 = vrcp.f32 %v2415_v40 }
0x14c5   :  { %4597 = vrcp.f32 %v2418_v51 }
0x14cb   :  { %v2619_v53 = vpop.xlane.xlu1 %2618 }
0x14cc   :  { %4599 = vrcp.f32 %v2619_v53 }
0x14ce   :  { %v4596_v56 = vpop.eup %4595 }
0x14cf   :  { %v2622_v58 = vpop.xlane.xlu0 %2621  ;;  %v4496_v60 = vpop.permute.xlu1 %4495  ;;  %v2421_v63 = vmul.f32 %v4596_v56, %v4590_v52 }
0x14d0   :  { %4601 = vrcp.f32 %v2622_v58  ;;  %v4498_v46 = vunpack.i.h.bf16 %v4496_v60  ;;  %v4497_v1 = vunpack.i.l.bf16 %v4496_v60  ;;  %v4598_v6 = vpop.eup %4597 }
0x14d1   :  { %3838 = vmatprep.mubr.msk.f32.mxu0 %vm511_vm2, %v2421_v63  ;;  %v2422_v10 = vmul.f32 %v4598_v6, %v4588_v33  ;;  %v1704_v6 = vld [vmem:[#allocation7 + $0x320] sm:$0xff] }
0x14d2   :  { %v4250_v4 = vpack.c.bf16 %v4498_v46, %v4497_v1  ;;  %v1705_v1 = vld [vmem:[#allocation7 + $0x328] sm:$0xff] }
0x14d3   :  { %v4501_v7 = vpop.permute.xlu0 %4500  ;;  %v4506_v36 = vpop.permute.xlu1 %4505 }
0x14d4   :  { %v4503_v9 = vunpack.i.h.bf16 %v4501_v7  ;;  %v4502_v39 = vunpack.i.l.bf16 %v4501_v7  ;;  %4251 = vmatprep.subr.bf16.mxu0 %v4250_v4  ;;  %v4508_v23 = vunpack.i.h.bf16 %v4506_v36 }
0x14d5   :  { %4253 = vmatpush3.bf16.msra.mxu0 %v4250_v4  ;;  %v1707_v4 = vld [vmem:[#allocation7 + $0x358] sm:$0xff] }
0x14d6   :  { %v4600_v57 = vpop.eup %4599  ;;  %v4260_v11 = vpack.c.bf16 %v4503_v9, %v4502_v39  ;;  %v2739_v40 = vsel %vm419_vm0, %v5208_v38, %v4508_v23  ;;  %v4296_v7 = vpack.c.bf16 %v1707_v4, %v1705_v1  ;;  %v1706_v38 = vld [vmem:[#allocation7 + $0x350] sm:$0xff]  ;;  %v1709_v9 = vld [vmem:[#allocation7 + $0x388] sm:$0xff]  ;;  %v1711_v39 = vld [vmem:[#allocation7 + $0x3b8] sm:$0xff] }
0x14d7   :  { %v2625_v8 = vmul.f32 %v4600_v57, %v4592_v0  ;;  %v4507_v0 = vunpack.i.l.bf16 %v4506_v36  ;;  %v4298_v57 = vpack.c.bf16 %v1706_v38, %v1704_v6  ;;  %v1731_v36 = vld [vmem:[#allocation7 + $0x598] sm:$0xff]  ;;  %v2982_v1 = vld [vmem:[#allocation8 + $0x108] sm:$0xff] }
0x14d8   :  { %3839 = vmatmul.mubr.msk.f32.vlgmr.msra.gmra.mrb[16].mxu0 %vm511_vm2, %v2422_v10  ;;  %4261 = vmatprep.subr.bf16.mxu0 %v4260_v11  ;;  %v4300_v10 = vpack.c.bf16 %v1711_v39, %v1709_v9 }
0x14d9   :  { %4263 = vmatpush3.bf16.msra.mxu0 %v4260_v11  ;;  %3852 = vmatprep.mubr.msk.f32.mxu0 %vm511_vm2, %v2625_v8  ;;  %v2738_v56 = vsel %vm419_vm0, %v5210_v42, %v4507_v0  ;;  %v1708_v42 = vld [vmem:[#allocation7 + $0x380] sm:$0xff]  ;;  %v1710_v11 = vld [vmem:[#allocation7 + $0x3b0] sm:$0xff] }
0x14da   :  { %v4602_v12 = vpop.eup %4601  ;;  %4265 = vmatprep.subr.bf16.mxu0 %v4264_v13  ;;  %4297 = vmatprep.subr.bf16.mxu1 %v4296_v7  ;;  %v4302_v8 = vpack.c.bf16 %v1710_v11, %v1708_v42  ;;  %v1730_v0 = vld [vmem:[#allocation7 + $0x590] sm:$0xff] }
0x14db   :  { %v2626_v5 = vmul.f32 %v4602_v12, %v4594_v43  ;;  %4299 = vmatpush1.bf16.msra.mxu1 %v4298_v57  ;;  %v2744_v12 = vld [vmem:[#allocation10 + $0x19] ss:$0 sm:$0xff] }
0x14dc   :  { %4301 = vmatprep.subr.bf16.mxu1 %v4300_v10 }
0x14dd   :  { %3853 = vmatmul.mubr.msk.f32.vlgmr.msra.gmra.mrb[18].mxu0 %vm511_vm2, %v2626_v5 }
0x14de   :  { %4267 = vmatpush3.bf16.msra.mxu0 %v4264_v13 }
0x14df   :  { %4269 = vmatprep.subr.bf16.mxu0 %v4268_v14  ;;  %4303 = vmatpush1.bf16.msra.mxu1 %v4302_v8 }
0x14e2   :  { %4271 = vmatpush3.bf16.msra.mxu0 %v4268_v14 }
0x14e3   :  { %4273 = vmatprep.subr.bf16.mxu0 %v4272_v16 }
0x14e6   :  { %4275 = vmatpush3.bf16.msra.mxu0 %v4272_v16  ;;  %v1715_v16 = vld [vmem:[#allocation7 + $0x418] sm:$0xff] }
0x14e7   :  { %4277 = vmatprep.subr.bf16.mxu0 %v4276_v19  ;;  %v4304_v17 = vpack.c.bf16 %v1715_v16, %v1713_v62  ;;  %v2823_v16 = vld [vmem:[#allocation10 + $0x1b] ss:$0 sm:$0xff] }
0x14e9   :  { %4305 = vmatprep.subr.bf16.mxu1 %v4304_v17 }
0x14ea   :  { %4279 = vmatpush3.bf16.msra.mxu0 %v4276_v19 }
0x14eb   :  { %4281 = vmatprep.subr.bf16.mxu0 %v4280_v22 }
0x14ee   :  { %4283 = vmatpush3.bf16.msra.mxu0 %v4280_v22  ;;  %v4308_v22 = vpack.c.bf16 %v1719_v20, %v1717_v44 }
0x14ef   :  { %4285 = vmatprep.subr.bf16.mxu0 %v4284_v34 }
0x14f2   :  { %4287 = vmatpush3.bf16.msra.mxu0 %v4284_v34  ;;  %v1721_v34 = vld [vmem:[#allocation7 + $0x4a8] sm:$0xff] }
0x14f3   :  { %4289 = vmatprep.subr.bf16.mxu0 %v4288_v59  ;;  %v4312_v27 = vpack.c.bf16 %v1723_v26, %v1721_v34  ;;  %v2984_v34 = vld [vmem:[#allocation8 + $0x118] sm:$0xff] }
0x14f6   :  { %4291 = vmatpush3.bf16.msra.mxu0 %v4288_v59  ;;  %v1720_v59 = vld [vmem:[#allocation7 + $0x4a0] sm:$0xff] }
0x14f7   :  { %4293 = vmatprep.subr.bf16.mxu0 %v4292_v47  ;;  %v4314_v29 = vpack.c.bf16 %v1722_v28, %v1720_v59  ;;  %v2985_v28 = vld [vmem:[#allocation8 + $0x120] sm:$0xff] }
0x14fa   :  { %4295 = vmatpush3.bf16.msra.mxu0 %v4292_v47  ;;  %v1725_v47 = vld [vmem:[#allocation7 + $0x508] sm:$0xff] }
0x15ab   :  { %v3840_v30 = vpop.f32.mrb[16].mxu0 }
0x15ac   :  { %v2501_v31 = vpop.f32.mrb[17].mxu0 }
0x15ad   :  { %v4509_v54 = vpack.i.bf16 %v3840_v30, %v2501_v31  ;;  %v1727_v30 = vld [vmem:[#allocation7 + $0x538] sm:$0xff] }
0x15ae   :  { %v4316_v31 = vpack.c.bf16 %v1727_v30, %v1725_v47  ;;  %v3003_v30 = vld [vmem:[#allocation8 + $0x1b0] sm:$0xff] }
0x15af   :  { %4510 = vrot.lane.b32.xlu1 %v4509_v54, %s4806_s8  ;;  %v1724_v54 = vld [vmem:[#allocation7 + $0x500] sm:$0xff] }
0x15b0   :  { %v3854_v32 = vpop.f32.mrb[18].mxu0 }
0x15b1   :  { %v2705_v33 = vpop.f32.mrb[19].mxu0 }
0x15b2   :  { %v4514_v52 = vpack.i.bf16 %v3854_v32, %v2705_v33  ;;  %v1726_v32 = vld [vmem:[#allocation7 + $0x530] sm:$0xff] }
0x15b3   :  { %v4318_v33 = vpack.c.bf16 %v1726_v32, %v1724_v54  ;;  %v2987_v32 = vld [vmem:[#allocation8 + $0x130] sm:$0xff] }
0x15b4   :  { %4515 = vrot.lane.b32.xlu1 %v4514_v52, %s4807_s9  ;;  %v1729_v52 = vld [vmem:[#allocation7 + $0x568] sm:$0xff] }
0x15b5   :  { %v4320_v23 = vpack.c.bf16 %v1731_v36, %v1729_v52  ;;  %v3005_v36 = vld [vmem:[#allocation8 + $0x1c0] sm:$0xff] }
0x1621   :  { %v4511_v37 = vpop.permute.xlu1 %4510 }
0x1622   :  { %v4513_v49 = vunpack.i.h.bf16 %v4511_v37  ;;  %v4512_v43 = vunpack.i.l.bf16 %v4511_v37  ;;  %v1728_v37 = vld [vmem:[#allocation7 + $0x560] sm:$0xff] }
0x1624   :  { %v2740_v58 = vsel %vm1255_vm3, %v2738_v56, %v4512_v43  ;;  %v2741_v60 = vsel %vm1255_vm3, %v2739_v40, %v4513_v49  ;;  %v1733_v49 = vld [vmem:[#allocation7 + $0x5c8] sm:$0xff]  ;;  %v1735_v43 = vld [vmem:[#allocation7 + $0x5f8] sm:$0xff] }
0x1625   :  { %v4324_v40 = vpack.c.bf16 %v1735_v43, %v1733_v49  ;;  %v2990_v49 = vld [vmem:[#allocation8 + $0x148] sm:$0xff]  ;;  %v3007_v43 = vld [vmem:[#allocation8 + $0x1d0] sm:$0xff] }
0x1626   :  { %v4516_v50 = vpop.permute.xlu1 %4515 }
0x1627   :  { %v4518_v51 = vunpack.i.h.bf16 %v4516_v50  ;;  %v4517_v53 = vunpack.i.l.bf16 %v4516_v50  ;;  %v4322_v50 = vpack.c.bf16 %v1730_v0, %v1728_v37  ;;  %v3006_v37 = vld [vmem:[#allocation8 + $0x1c8] sm:$0xff]  ;;  %v2989_v0 = vld [vmem:[#allocation8 + $0x140] sm:$0xff] }
0x1629   :  { %v2742_v63 = vsel %vm1258_vm4, %v2740_v58, %v4517_v53  ;;  %v2743_v46 = vsel %vm1258_vm4, %v2741_v60, %v4518_v51  ;;  %v1732_v51 = vld [vmem:[#allocation7 + $0x5c0] sm:$0xff]  ;;  %v1734_v53 = vld [vmem:[#allocation7 + $0x5f0] sm:$0xff]  ;;  %v2998_v60 = vld [vmem:[#allocation8 + $0x188] sm:$0xff] }
0x162a   :  { %3887 = vmatprep.mubr.f32.mxu0 %v2742_v63  ;;  %v4326_v56 = vpack.c.bf16 %v1734_v53, %v1732_v51  ;;  %v2997_v58 = vld [vmem:[#allocation8 + $0x180] sm:$0xff]  ;;  %v2991_v51 = vld [vmem:[#allocation8 + $0x150] sm:$0xff]  ;;  %v2992_v53 = vld [vmem:[#allocation8 + $0x158] sm:$0xff] }
0x162b   :  { %3888 = vmatmul.mubr.f32.vlgmr.msra.gmra.mrb[20].mxu0 %v2743_v46  ;;  %v2981_v63 = vld [vmem:[#allocation8 + $0x100] sm:$0xff]  ;;  %v4328_v46 = vpack.c.bf16 %v2998_v60, %v2997_v58  ;;  %v3010_v60 = vld [vmem:[#allocation8 + $0x1e8] sm:$0xff] }
0x162c   :  { %v4330_v4 = vpack.c.bf16 %v2982_v1, %v2981_v63  ;;  %v3009_v58 = vld [vmem:[#allocation8 + $0x1e0] sm:$0xff]  ;;  %v4350_v63 = vpack.c.bf16 %v2992_v53, %v2991_v51 }
0x162d   :  { %4329 = vmatprep.subr.bf16.mxu0 %v4328_v46  ;;  %v4352_v46 = vpack.c.bf16 %v3010_v60, %v3009_v58  ;;  %v2993_v1 = vld [vmem:[#allocation8 + $0x160] sm:$0xff]  ;;  %v3013_v58 = vld [vmem:[#allocation10 + $0x1d] ss:$0 sm:$0xff] }
0x162e   :  { %4331 = vmatpush3.bf16.msra.mxu0 %v4330_v4  ;;  %v2994_v4 = vld [vmem:[#allocation8 + $0x168] sm:$0xff] }
0x16fe   :  { %v3889_v5 = vpop.f32.mrb[20].mxu0 }
0x16ff   :  { %v2811_v2 = vpop.f32.mrb[21].mxu0  ;;  %v2817_v48 = vadd.f32 %v3889_v5, %v2744_v12 }
0x1700   :  { %v2812_v61 = vadd.f32 %v2811_v2, %v2744_v12 }
0x1701   :  { %v5285_v14 = vadd.f32 %v2817_v48, %v5160_v25  ;;  %v1716_v25 = vld [vmem:[#allocation7 + $0x440] sm:$0xff] }
0x1702   :  { %v5279_v13 = vadd.f32 %v2812_v61, %v5155_v21  ;;  %v1712_v21 = vld [vmem:[#allocation7 + $0x3e0] sm:$0xff]  ;;  %v4310_v35 = vpack.c.bf16 %v1718_v24, %v1716_v25  ;;  %v3000_v25 = vld [vmem:[#allocation8 + $0x198] sm:$0xff] }
0x1703   :  { %v2831_v15 = vmul.f32 %v5285_v14, %v5285_v14  ;;  %v4306_v19 = vpack.c.bf16 %v1714_v18, %v1712_v21 }
0x1704   :  { %2824 = vadd.xlane.f32.xlu0 %v5279_v13  ;;  %v2830_v3 = vmul.f32 %v5279_v13, %v5279_v13 }
0x1705   :  { %4307 = vmatpush1.bf16.msra.mxu1 %v4306_v19 }
0x1706   :  { %2832 = vadd.xlane.f32.xlu1 %v2830_v3  ;;  %4309 = vmatprep.subr.bf16.mxu1 %v4308_v22 }
0x1708   :  { %2826 = vadd.xlane.f32.xlu0 %v5285_v14 }
0x1709   :  { %4311 = vmatpush1.bf16.msra.mxu1 %v4310_v35  ;;  %v2983_v35 = vld [vmem:[#allocation8 + $0x110] sm:$0xff] }
0x170a   :  { %4313 = vmatprep.subr.bf16.mxu1 %v4312_v27  ;;  %v4334_v26 = vpack.c.bf16 %v2984_v34, %v2983_v35  ;;  %v3002_v27 = vld [vmem:[#allocation8 + $0x1a8] sm:$0xff] }
0x170c   :  { %2834 = vadd.xlane.f32.xlu0 %v2831_v15  ;;  %v2822_v15 = vld [vmem:[#allocation10 + $0x1a] ss:$0 sm:$0xff] }
0x170d   :  { %4315 = vmatpush1.bf16.msra.mxu1 %v4314_v29  ;;  %v2986_v29 = vld [vmem:[#allocation8 + $0x128] sm:$0xff] }
0x170e   :  { %4317 = vmatprep.subr.bf16.mxu1 %v4316_v31  ;;  %v4338_v47 = vpack.c.bf16 %v2986_v29, %v2985_v28  ;;  %v3004_v31 = vld [vmem:[#allocation8 + $0x1b8] sm:$0xff] }
0x170f   :  { %v4340_v54 = vpack.c.bf16 %v3004_v31, %v3003_v30 }
0x1711   :  { %4319 = vmatpush1.bf16.msra.mxu1 %v4318_v33  ;;  %v2988_v33 = vld [vmem:[#allocation8 + $0x138] sm:$0xff] }
0x1712   :  { %4321 = vmatprep.subr.bf16.mxu1 %v4320_v23  ;;  %v4342_v52 = vpack.c.bf16 %v2988_v33, %v2987_v32  ;;  %v4344_v23 = vpack.c.bf16 %v3006_v37, %v3005_v36 }
0x1715   :  { %4323 = vmatpush1.bf16.msra.mxu1 %v4322_v50  ;;  %v4346_v50 = vpack.c.bf16 %v2990_v49, %v2989_v0 }
0x1716   :  { %4325 = vmatprep.subr.bf16.mxu1 %v4324_v40  ;;  %v3008_v40 = vld [vmem:[#allocation8 + $0x1d8] sm:$0xff] }
0x1719   :  { %4327 = vmatpush1.bf16.msra.mxu1 %v4326_v56  ;;  %v4348_v56 = vpack.c.bf16 %v3008_v40, %v3007_v43 }
0x1791   :  { %v2825_v6 = vpop.xlane.xlu0 %2824 }
0x1792   :  { %v2828_v7 = vmul.f32 0.0078125, %v2825_v6  ;;  %v3011_v6 = vld [vmem:[#allocation8 + $0x1f0] sm:$0xff] }
0x1793   :  { %v2833_v38 = vpop.xlane.xlu1 %2832 }
0x1794   :  { %v2840_v9 = vmul.f32 %v2828_v7, %v2828_v7  ;;  %v2836_v39 = vmul.f32 0.0078125, %v2833_v38  ;;  %v2838_v48 = vsub.f32 %v5279_v13, %v2828_v7  ;;  %v2999_v13 = vld [vmem:[#allocation8 + $0x190] sm:$0xff]  ;;  %v3012_v7 = vld [vmem:[#allocation8 + $0x1f8] sm:$0xff]  ;;  %v4354_v38 = vpack.c.bf16 %v2994_v4, %v2993_v1 }
0x1795   :  { %v2827_v57 = vpop.xlane.xlu0 %2826  ;;  %v4332_v24 = vpack.c.bf16 %v3000_v25, %v2999_v13 }
0x1796   :  { %v2842_v10 = vsub.f32 %v2836_v39, %v2840_v9  ;;  %v2829_v42 = vmul.f32 0.0078125, %v2827_v57  ;;  %v4356_v9 = vpack.c.bf16 %v3012_v7, %v3011_v6  ;;  %v2995_v39 = vld [vmem:[#allocation8 + $0x170] sm:$0xff]  ;;  %v2996_v57 = vld [vmem:[#allocation8 + $0x178] sm:$0xff] }
0x1797   :  { %4333 = vmatprep.subr.bf16.mxu0 %v4332_v24 }
0x1798   :  { %v2844_v11 = vadd.f32 1e-12, %v2842_v10  ;;  %v2841_v12 = vmul.f32 %v2829_v42, %v2829_v42  ;;  %v2839_v21 = vsub.f32 %v5285_v14, %v2829_v42  ;;  %4335 = vmatpush3.bf16.msra.mxu0 %v4334_v26  ;;  %v3001_v14 = vld [vmem:[#allocation8 + $0x1a0] sm:$0xff]  ;;  %v4358_v10 = vpack.c.bf16 %v2996_v57, %v2995_v39 }
0x1799   :  { %v2835_v8 = vpop.xlane.xlu0 %2834  ;;  %v4336_v59 = vpack.c.bf16 %v3002_v27, %v3001_v14  ;;  %v2855_v42 = vld [vmem:[#allocation10 + $0x1c] ss:$8 sm:$0x3] }
0x179a   :  { %4603 = vrsqrt.f32 %v2844_v11  ;;  %v2837_v5 = vmul.f32 0.0078125, %v2835_v8  ;;  %v2860_v11 = vrot.slane %v2855_v42, %v4978_v41  ;;  %v2864_v8 = vrot.slane %v2855_v42, %v4983_v45 }
0x179b   :  { %4337 = vmatprep.subr.bf16.mxu0 %v4336_v59 }
0x179c   :  { %v2843_v2 = vsub.f32 %v2837_v5, %v2841_v12  ;;  %4339 = vmatpush3.bf16.msra.mxu0 %v4338_v47 }
0x179d   :  { %4341 = vmatprep.subr.bf16.mxu0 %v4340_v54 }
0x179e   :  { %v2845_v61 = vadd.f32 1e-12, %v2843_v2 }
0x17a0   :  { %4605 = vrsqrt.f32 %v2845_v61  ;;  %4343 = vmatpush3.bf16.msra.mxu0 %v4342_v52 }
0x17a1   :  { %4345 = vmatprep.subr.bf16.mxu0 %v4344_v23 }
0x17a4   :  { %v4604_v3 = vpop.eup %4603  ;;  %4347 = vmatpush3.bf16.msra.mxu0 %v4346_v50 }
0x17a5   :  { %v2848_v62 = vmul.f32 %v4604_v3, %v2838_v48  ;;  %4349 = vmatprep.subr.bf16.mxu0 %v4348_v56 }
0x17a7   :  { %v2850_v17 = vmul.f32 %v2848_v62, %v2822_v15 }
0x17a8   :  { %4351 = vmatpush3.bf16.msra.mxu0 %v4350_v63 }
0x17a9   :  { %v5292_v18 = vadd.f32 %v2850_v17, %v2823_v16  ;;  %4353 = vmatprep.subr.bf16.mxu0 %v4352_v46 }
0x17aa   :  { %v4606_v19 = vpop.eup %4605 }
0x17ab   :  { %2932 = vmatmul.mubr.f32.vlgmr.msra.gmra.mrb[34].mxu1 %v5292_v18  ;;  %v2849_v44 = vmul.f32 %v4606_v19, %v2839_v21 }
0x17ac   :  { %2937 = vmatprep.mubr.f32.mxu1 %v4805_v55  ;;  %4355 = vmatpush3.bf16.msra.mxu0 %v4354_v38 }
0x17ad   :  { %v2851_v20 = vmul.f32 %v2849_v44, %v2822_v15  ;;  %4357 = vmatprep.subr.bf16.mxu0 %v4356_v9 }
0x17af   :  { %v5296_v22 = vadd.f32 %v2851_v20, %v2823_v16 }
0x17b0   :  { %4359 = vmatpush3.bf16.msra.mxu0 %v4358_v10  ;;  %v3131_v10 = vld [vmem:[#allocation11 + $0x10] sm:$0xff] }
0x17b1   :  { %2938 = vmatmul.mubr.f32.gmra.mrb[36].mxu1 %v5296_v22 }
0x17b2   :  { %3922 = vmatprep.mubr.msk.f32.mxu1 %vm4810_vm5, %v4805_v55 }
0x187e   :  { %v2933_v12 = vpop.f32.mrb[34].mxu1 }
0x187f   :  { %v2934_v5 = vadd.f32 %v2933_v12, %v2860_v11  ;;  %v2935_v2 = vpop.f32.mrb[35].mxu1 }
0x1880   :  { %v2936_v61 = vadd.f32 %v2935_v2, %v2864_v8  ;;  %v3135_v2 = vld [vmem:[#allocation11 + $0x50] sm:$0xff] }
0x1881   :  { %v2948_v48 = vmul.f32 0.044715, %v2934_v5  ;;  %v2944_v52 = vmul.f32 0.5, %v2934_v5 }
0x1882   :  { %v2949_v3 = vmul.f32 0.044715, %v2936_v61  ;;  %v2945_v32 = vmul.f32 0.5, %v2936_v61 }
0x1883   :  { %v2952_v15 = vmul.f32 %v2948_v48, %v2934_v5  ;;  %v3136_v48 = vld [vmem:[#allocation11 + $0x60] sm:$0xff] }
0x1884   :  { %v2953_v62 = vmul.f32 %v2949_v3, %v2936_v61  ;;  %v2939_v16 = vpop.f32.mrb[36].mxu1  ;;  %v3137_v3 = vld [vmem:[#allocation11 + $0x70] sm:$0xff] }
0x1885   :  { %v2956_v17 = vmul.f32 %v2952_v15, %v2934_v5  ;;  %v2940_v21 = vadd.f32 %v2939_v16, %v2860_v11  ;;  %v2941_v19 = vpop.f32.mrb[37].mxu1  ;;  %v4809_v11 = vmov 0.0|0.0   ;;  %v4370_v15 = vpack.c.bf16 %v3137_v3, %v3136_v48  ;;  %v3139_v16 = vld [vmem:[#allocation11 + $0x90] sm:$0xff]  ;;  %v3235_v48 = vld [vmem:[#allocation11 + $0xd8] sm:$0xff]  ;;  %v3236_v3 = vld [vmem:[#allocation11 + $0xe8] sm:$0xff] }
0x1886   :  { %v2942_v44 = vadd.f32 %v2941_v19, %v2864_v8  ;;  %v2957_v20 = vmul.f32 %v2953_v62, %v2936_v61  ;;  %4360 = vmatprep.subr.bf16.mxu1 %v4809_v11  ;;  %4384 = vmatprep.subr.bf16.mxu0 %v4809_v11  ;;  %v3132_v8 = vld [vmem:[#allocation11 + $0x20] sm:$0xff]  ;;  %v3141_v19 = vld [vmem:[#allocation11 + $0xb0] sm:$0xff] }
0x1887   :  { %v2960_v13 = vadd.f32 %v2956_v17, %v2934_v5  ;;  %v2950_v25 = vmul.f32 0.044715, %v2940_v21  ;;  %v2946_v40 = vmul.f32 0.5, %v2940_v21  ;;  %v3134_v5 = vld [vmem:[#allocation11 + $0x40] sm:$0xff] }
0x1888   :  { %v2951_v24 = vmul.f32 0.044715, %v2942_v44  ;;  %v2961_v41 = vadd.f32 %v2957_v20, %v2936_v61  ;;  %v2947_v43 = vmul.f32 0.5, %v2942_v44  ;;  %v4367_v61 = vpack.c.bf16 %v3135_v2, %v3134_v5  ;;  %v3138_v62 = vld [vmem:[#allocation11 + $0x80] sm:$0xff]  ;;  %v3232_v5 = vld [vmem:[#allocation11 + $0xa8] sm:$0xff]  ;;  %v3233_v2 = vld [vmem:[#allocation11 + $0xb8] sm:$0xff] }
0x1889   :  { %v2954_v35 = vmul.f32 %v2950_v25, %v2940_v21  ;;  %v2964_v45 = vmul.f32 0.7978846, %v2960_v13  ;;  %v4373_v17 = vpack.c.bf16 %v3139_v16, %v3138_v62  ;;  %v3142_v20 = vld [vmem:[#allocation11 + $0xc0] sm:$0xff]  ;;  %v3143_v13 = vld [vmem:[#allocation11 + $0xd0] sm:$0xff] }
0x188a   :  { %v2955_v34 = vmul.f32 %v2951_v24, %v2942_v44  ;;  %v2965_v26 = vmul.f32 0.7978846, %v2961_v41  ;;  %v4379_v25 = vpack.c.bf16 %v3143_v13, %v3142_v20  ;;  %v3144_v24 = vld [vmem:[#allocation11 + $0xe0] sm:$0xff]  ;;  %v3145_v41 = vld [vmem:[#allocation11 + $0xf0] sm:$0xff] }
0x188b   :  { %4607 = vtanh.f32 %v2964_v45  ;;  %v2958_v14 = vmul.f32 %v2954_v35, %v2940_v21  ;;  %v4382_v35 = vpack.c.bf16 %v3145_v41, %v3144_v24  ;;  %v3222_v45 = vld [vmem:[#allocation11 + $0x8] sm:$0xff]  ;;  %v3389_v16 = vld [vmem:[%s5357_s6 + $0x2] ss:$0 sm:$0xff]  ;;  %v3391_v20 = vld [vmem:[%s5357_s6 + $0x3] ss:$0 sm:$0xff] }
0x188c   :  { %4609 = vtanh.f32 %v2965_v26  ;;  %v2959_v27 = vmul.f32 %v2955_v34, %v2942_v44  ;;  %v3223_v34 = vld [vmem:[#allocation11 + $0x18] sm:$0xff]  ;;  %v3224_v26 = vld [vmem:[#allocation11 + $0x28] sm:$0xff] }
0x188d   :  { %v2962_v59 = vadd.f32 %v2958_v14, %v2940_v21  ;;  %v3140_v21 = vld [vmem:[#allocation11 + $0xa0] sm:$0xff]  ;;  %v4385_v14 = vpack.c.bf16 %v3223_v34, %v3222_v45 }
0x188e   :  { %v2963_v28 = vadd.f32 %v2959_v27, %v2942_v44  ;;  %v4376_v44 = vpack.c.bf16 %v3141_v19, %v3140_v21  ;;  %v3225_v27 = vld [vmem:[#allocation11 + $0x38] sm:$0xff] }
0x188f   :  { %v2966_v29 = vmul.f32 0.7978846, %v2962_v59  ;;  %v4388_v59 = vpack.c.bf16 %v3225_v27, %v3224_v26 }
0x1890   :  { %v2967_v47 = vmul.f32 0.7978846, %v2963_v28  ;;  %v3226_v28 = vld [vmem:[#allocation11 + $0x48] sm:$0xff] }
0x1891   :  { %4611 = vtanh.f32 %v2966_v29  ;;  %v3227_v29 = vld [vmem:[#allocation11 + $0x58] sm:$0xff] }
0x1892   :  { %4613 = vtanh.f32 %v2967_v47  ;;  %v4391_v47 = vpack.c.bf16 %v3227_v29, %v3226_v28 }
0x1895   :  { %v4608_v30 = vpop.eup %4607 }
0x1896   :  { %v4610_v31 = vpop.eup %4609  ;;  %v2972_v54 = vadd.f32 1.0, %v4608_v30  ;;  %v3229_v30 = vld [vmem:[#allocation11 + $0x78] sm:$0xff] }
0x1897   :  { %v2973_v33 = vadd.f32 1.0, %v4610_v31 }
0x1898   :  { %v2976_v37 = vmul.f32 %v2972_v54, %v2944_v52  ;;  %v3230_v54 = vld [vmem:[#allocation11 + $0x88] sm:$0xff] }
0x1899   :  { %v2977_v36 = vmul.f32 %v2973_v33, %v2945_v32  ;;  %v3231_v32 = vld [vmem:[#allocation11 + $0x98] sm:$0xff] }
0x189a   :  { %v4397_v33 = vpack.c.bf16 %v3231_v32, %v3230_v54 }
0x189b   :  { %v4612_v23 = vpop.eup %4611  ;;  %3078 = vmatprep.mubr.f32.mxu0 %v2977_v36 }
0x189c   :  { %v4614_v0 = vpop.eup %4613  ;;  %3079 = vmatmul.mubr.f32.vlgmr.msra.gmra.mrb[22].mxu0 %v2976_v37  ;;  %v2974_v49 = vadd.f32 1.0, %v4612_v23 }
0x189d   :  { %v2975_v50 = vadd.f32 1.0, %v4614_v0  ;;  %4386 = vmatpush3.bf16.msra.mxu0 %v4385_v14 }
0x189e   :  { %v2978_v53 = vmul.f32 %v2974_v49, %v2946_v40  ;;  %4387 = vmatprep.subr.bf16.mxu0 %v4809_v11 }
0x189f   :  { %v2979_v51 = vmul.f32 %v2975_v50, %v2947_v43 }
0x18a1   :  { %3083 = vmatprep.mubr.f32.mxu0 %v2979_v51  ;;  %4389 = vmatpush3.bf16.msra.mxu0 %v4388_v59 }
0x18a2   :  { %3084 = vmatmul.mubr.f32.gmra.mrb[24].mxu0 %v2978_v53  ;;  %4390 = vmatprep.subr.bf16.mxu0 %v4809_v11 }
0x18a3   :  { %3957 = vmatprep.mubr.msk.f32.mxu0 %vm4810_vm5, %v4805_v55  ;;  %v3228_v55 = vld [vmem:[#allocation11 + $0x68] sm:$0xff] }
0x18a4   :  { %v4394_v31 = vpack.c.bf16 %v3229_v30, %v3228_v55 }
0x18a5   :  { %4392 = vmatpush3.bf16.msra.mxu0 %v4391_v47 }
0x18a6   :  { %4393 = vmatprep.subr.bf16.mxu0 %v4809_v11 }
0x18a9   :  { %4395 = vmatpush3.bf16.msra.mxu0 %v4394_v31 }
0x18aa   :  { %4396 = vmatprep.subr.bf16.mxu0 %v4809_v11 }
0x18ad   :  { %4398 = vmatpush3.bf16.msra.mxu0 %v4397_v33 }
0x18ae   :  { %4399 = vmatprep.subr.bf16.mxu0 %v4809_v11 }
0x196f   :  { %v3598_v56 = vpop.f32.mrb[22].mxu0 }
0x1970   :  { %v3599_v60 = vpop.f32.mrb[23].mxu0 }
0x1971   :  { %v3600_v63 = vadd.f32 %v3599_v60, %v3598_v56 }
0x1973   :  { %v3081_v46 = vadd.f32 %v3600_v63, %v3013_v58 }
0x1975   :  { %v3601_v1 = vpop.f32.mrb[24].mxu0  ;;  %v5302_v4 = vadd.f32 %v3081_v46, %v5292_v18  ;;  %v3130_v18 = vld [vmem:[#allocation11] sm:$0xff] }
0x1976   :  { %v3602_v6 = vpop.f32.mrb[25].mxu0  ;;  %v4361_v42 = vpack.c.bf16 %v3131_v10, %v3130_v18  ;;  %v3092_v10 = vld [vmem:[#allocation10 + $0x1f] ss:$0 sm:$0xff] }
0x1977   :  { %v3603_v7 = vadd.f32 %v3602_v6, %v3601_v1  ;;  %3093 = vadd.xlane.f32.xlu1 %v5302_v4  ;;  %v3099_v9 = vmul.f32 %v5302_v4, %v5302_v4 }
0x1978   :  { %4362 = vmatpush3.bf16.msra.mxu1 %v4361_v42 }
0x1979   :  { %v3086_v38 = vadd.f32 %v3603_v7, %v3013_v58  ;;  %4363 = vmatprep.subr.bf16.mxu1 %v4809_v11 }
0x197b   :  { %3101 = vadd.xlane.f32.xlu1 %v3099_v9  ;;  %v5308_v39 = vadd.f32 %v3086_v38, %v5296_v22  ;;  %v3133_v22 = vld [vmem:[#allocation11 + $0x30] sm:$0xff]  ;;  %v3091_v38 = vld [vmem:[#allocation10 + $0x1e] ss:$0 sm:$0xff] }
0x197c   :  { %v4364_v12 = vpack.c.bf16 %v3133_v22, %v3132_v8 }
0x197d   :  { %3095 = vadd.xlane.f32.xlu0 %v5308_v39  ;;  %v3100_v57 = vmul.f32 %v5308_v39, %v5308_v39 }
0x197e   :  { %4365 = vmatpush3.bf16.msra.mxu1 %v4364_v12 }
0x197f   :  { %4366 = vmatprep.subr.bf16.mxu1 %v4809_v11 }
0x1981   :  { %3103 = vadd.xlane.f32.xlu0 %v3100_v57 }
0x1982   :  { %4368 = vmatpush3.bf16.msra.mxu1 %v4367_v61  ;;  %v4400_v61 = vpack.c.bf16 %v3233_v2, %v3232_v5 }
0x1983   :  { %4369 = vmatprep.subr.bf16.mxu1 %v4809_v11 }
0x1984   :  { %4401 = vmatpush3.bf16.msra.mxu0 %v4400_v61 }
0x1985   :  { %4402 = vmatprep.subr.bf16.mxu0 %v4809_v11 }
0x1986   :  { %4371 = vmatpush3.bf16.msra.mxu1 %v4370_v15  ;;  %v3237_v15 = vld [vmem:[#allocation11 + $0xf8] sm:$0xff] }
0x1987   :  { %4372 = vmatprep.subr.bf16.mxu1 %v4809_v11  ;;  %v4406_v62 = vpack.c.bf16 %v3237_v15, %v3236_v3 }
0x198a   :  { %4374 = vmatpush3.bf16.msra.mxu1 %v4373_v17 }
0x198b   :  { %4375 = vmatprep.subr.bf16.mxu1 %v4809_v11 }
0x198e   :  { %4377 = vmatpush3.bf16.msra.mxu1 %v4376_v44 }
0x198f   :  { %4378 = vmatprep.subr.bf16.mxu1 %v4809_v11 }
0x1992   :  { %4380 = vmatpush3.bf16.msra.mxu1 %v4379_v25 }
0x1993   :  { %4381 = vmatprep.subr.bf16.mxu1 %v4809_v11 }
0x1996   :  { %4383 = vmatpush3.bf16.msra.mxu1 %v4382_v35 }
0x1a04   :  { %v3094_v52 = vpop.xlane.xlu1 %3093 }
0x1a05   :  { %v3097_v36 = vmul.f32 0.0078125, %v3094_v52 }
0x1a07   :  { %v3109_v23 = vmul.f32 %v3097_v36, %v3097_v36  ;;  %v3107_v46 = vsub.f32 %v5302_v4, %v3097_v36  ;;  %v3234_v4 = vld [vmem:[#allocation11 + $0xc8] sm:$0xff] }
0x1a08   :  { %v3102_v37 = vpop.xlane.xlu1 %3101 }
0x1a09   :  { %v3105_v0 = vmul.f32 0.0078125, %v3102_v37 }
0x1a0a   :  { %v3096_v49 = vpop.xlane.xlu0 %3095 }
0x1a0b   :  { %v3111_v43 = vsub.f32 %v3105_v0, %v3109_v23  ;;  %v3098_v50 = vmul.f32 0.0078125, %v3096_v49 }
0x1a0d   :  { %v3113_v40 = vadd.f32 1e-12, %v3111_v43  ;;  %v3110_v53 = vmul.f32 %v3098_v50, %v3098_v50  ;;  %v3108_v6 = vsub.f32 %v5308_v39, %v3098_v50  ;;  %v4403_v39 = vpack.c.bf16 %v3235_v48, %v3234_v4 }
0x1a0e   :  { %v3104_v51 = vpop.xlane.xlu0 %3103 }
0x1a0f   :  { %v3106_v56 = vmul.f32 0.0078125, %v3104_v51  ;;  %4615 = vrsqrt.f32 %v3113_v40  ;;  %4404 = vmatpush3.bf16.msra.mxu0 %v4403_v39 }
0x1a10   :  { %4405 = vmatprep.subr.bf16.mxu0 %v4809_v11 }
0x1a11   :  { %v3112_v58 = vsub.f32 %v3106_v56, %v3110_v53 }
0x1a13   :  { %v3114_v60 = vadd.f32 1e-12, %v3112_v58  ;;  %4407 = vmatpush3.bf16.msra.mxu0 %v4406_v62 }
0x1a15   :  { %4617 = vrsqrt.f32 %v3114_v60 }
0x1a19   :  { %v4616_v63 = vpop.eup %4615 }
0x1a1a   :  { %v3117_v1 = vmul.f32 %v4616_v63, %v3107_v46 }
0x1a1c   :  { %v3119_v57 = vmul.f32 %v3117_v1, %v3091_v38 }
0x1a1e   :  { %v3121_v8 = vadd.f32 %v3119_v57, %v3092_v10 }
0x1a1f   :  { %v4618_v7 = vpop.eup %4617 }
0x1a20   :  { %v3118_v9 = vmul.f32 %v4618_v7, %v3108_v6 }
0x1a22   :  { %v3120_v18 = vmul.f32 %v3118_v9, %v3091_v38 }
0x1a24   :  { %v3122_v42 = vadd.f32 %v3120_v18, %v3092_v10 }
0x1a26   :  { %v3124_v22 = vrot.slane %v3122_v42, 7 }
0x1a28   :  { %v3127_v12 = vsel %vm3126_vm6, %v3121_v8, %v3124_v22 }
0x1a29   :  { %3923 = vmatmul.mubr.msk.f32.vlgmr.msra.gmra.mrb[38].mxu1 %vm3128_vm7, %v3127_v12 }
0x1afc   :  { %v3217_v17 = vpop.f32.mrb[38].mxu1 }
0x1afd   :  { %v3218_v21 = vadd.f32 %v3389_v16, %v3217_v17  ;;  %v3924_v19 = vpop.f32.mrb[39].mxu1 }
0x1aff   :  { %4619 = vtanh.f32 %v3218_v21 }
0x1b09   :  { %v4620_v44 = vpop.eup %4619 }
0x1b0a   :  { %3958 = vmatmul.mubr.f32.vlgmr.msra.gmra.mrb[26].mxu0 %v4620_v44 }
0x1bdd   :  { %v3309_v13 = vpop.f32.mrb[26].mxu0 }
0x1bde   :  { %v3310_v25 = vadd.f32 %v3391_v20, %v3309_v13  ;;  %v3959_v24 = vpop.f32.mrb[27].mxu0 }
0x1be0   :  { %v3313_v41 = vsub.f32 0.0, %v3310_v25 }
0x1be2   :  { %v3314_v11 = vmul.f32 1.442695, %v3313_v41 }
0x1be4   :  { %4621 = vpow2.f32 %v3314_v11 }
0x1bee   :  { %v4622_v35 = vpop.eup %4621 }
0x1bef   :  { %v3316_v45 = vadd.f32 1.0, %v4622_v35 }
0x1bf1   :  { %4623 = vrcp.f32 %v3316_v45 }
0x1bfb   :  { %v4624_v34 = vpop.eup %4623 }
0x1bfc   :  { %3319 = vst [vmem:[#allocation13] sm:$0xff] %v4624_v34 }
0x1bfd   :  { %4770 = shalt.err (!%p4767_p10)
}
0x1bfe   :  { %s4771_s17 = scalar_lea.hbm %s5358_s7, 128 }
0x1bff   :  { %p4772_p11 = scmp.ne.s32.totalorder %s5358_s7, %s4771_s17  ;;  %p4775_p12 = scmp.lt.u32.totalorder %s4771_s17, %s5358_s7 }
0x1c01   :  { %p4777_p13 = pnand %p4775_p12, %p4772_p11 }
0x1c03   :  { %4780 = shalt.err (!%p4777_p13)
}
0x1c04   :  { %3329 = dma.vmem_to_hbm [thread:$0]  %s3327_s30, 128, %s5358_s7, [#allocation4]  }
0x1c05   :  { %4789 = dma.done.wait [#allocation4], 128  }
0x1c06   :  { %4790 = vsyncadd [#allocation4], 4294967168 }
0x1c07   :  { %3333 = vsyncpa [#allocation3], 1 }
0x1c08   :  { %3334 = vsyncpa [#allocation6], 1 }
0x1c09   :  { %3335 = vsyncpa [#allocation9], 1 }
0x1c0a   :  { %3336 = vsyncpa [#allocation12], 1 }
0x1c0b   :  { %3337 = vsyncpa [#allocation4], 1 }

</bundles_post_ra>
